<compile_context>
chip_gen: v7x
topology: tpu7x:2x2x1
jax: 0.10.0
libtpu: 0.0.40
codegen_flags: <defaults>
</compile_context>

<pallas_src>
import functools

import numpy as np
import jax
import jax.numpy as jnp
from jax import lax
from jax.experimental import pallas as pl
from jax.experimental.pallas import tpu as pltpu

_NP = 128  # lane-padded channel width


def _out_hw(n):
    # Conv2d(kernel=3, stride=2, padding=1) output size.
    return (n - 1) // 2 + 1


# ----------------------------- Pallas kernel --------------------------------

def _make_window_kernel(b_blk, m0, m1, m2):
    """Fused 3-conv-block + adv_layer kernel (one batch *block* per grid step)."""

    def kernel(p1_ref, w1_ref, w2_ref, w3_ref, g2_ref, g3_ref, vec_ref, lw_ref,
               h1_ref, h2_ref, h3_ref, v_ref):
        cdt = p1_ref.dtype  # matmul operand dtype (f32 or bf16)

        def epilogue(y, r):
            # conv bias -> LeakyReLU(0.2) -> BatchNorm(eval) affine, all f32.
            y = y + vec_ref[r:r + 1, :]
            y = jnp.where(y >= 0.0, y, 0.2 * y)
            return y * vec_ref[r + 1:r + 2, :] + vec_ref[r + 2:r + 3, :]

        def conv_block(x_prev, g_ref, w_ref, m_in, m_out):
            # 3x3 / stride-2 / pad-1 conv, entirely in VMEM.
            # Per batch element: one one-hot gather matmul (exact selection,
            # kept in the operand dtype), then the 9 taps are lane-concatenated
            # into a (m_out, 9*128) patch slab.  Batch elements are stacked
            # along M and ONE long-K matmul (K = 9*128) does the whole conv.
            pats = []
            for b in range(b_blk):
                xb = x_prev[b * m_in:(b + 1) * m_in, :]          # (m_in, C)
                gat = jnp.dot(g_ref[...], xb)                    # (9*m_out, C)
                pats.append(jnp.concatenate(
                    [gat[t * m_out:(t + 1) * m_out, :] for t in range(9)],
                    axis=-1))                                    # (m_out, 9C)
            p = jnp.concatenate(pats, axis=0)                    # (b_blk*m_out, 9C)
            return jnp.dot(p, w_ref[...],
                           preferred_element_type=jnp.float32)   # (b_blk*m_out, C)

        # ---- block 1: K-padded (16) im2col matmul, batch already folded ----
        y1 = jnp.dot(p1_ref[...], w1_ref[...],
                     preferred_element_type=jnp.float32)
        y1 = epilogue(y1, 0)
        h1_ref[...] = y1.astype(h1_ref.dtype)

        # ---- block 2 ----
        y2 = epilogue(conv_block(y1.astype(cdt), g2_ref, w2_ref, m0, m1), 3)
        h2_ref[...] = y2.astype(h2_ref.dtype)

        # ---- block 3 (no BN: scale=1 / shift=0 rows) ----
        y3 = epilogue(conv_block(y2.astype(cdt), g3_ref, w3_ref, m1, m2), 6)
        h3_ref[...] = y3.astype(h3_ref.dtype)

        # ---- adv_layer folded in: validity[b] = <h3[b], lw> + lin_b ----
        rows = []
        for b in range(b_blk):
            pb = y3[b * m2:(b + 1) * m2, :] * lw_ref[...]        # (m2, 128)
            sb = jnp.sum(pb, axis=0, keepdims=True)              # (1, 128)
            sb = jnp.sum(sb, axis=1, keepdims=True)              # (1, 1)
            rows.append(sb + vec_ref[9:10, :])                   # lane 0 = val
        v_ref[...] = jnp.concatenate(rows, axis=0).astype(v_ref.dtype)

    return kernel


# --------------------------- JAX-side plumbing -------------------------------

def _im2col_block1(x_clip, b_blk):
    """3x3/stride-2/pad-1 patches of the single-channel raw input.

    K is zero-padded 9 -> 16 and batch elements are pre-folded into the M dim:
    output shape (B // b_blk, b_blk * m0, 16)."""
    b, _, h, w = x_clip.shape
    ho, wo = _out_hw(h), _out_hw(w)
    xp = jnp.pad(x_clip[:, 0], ((0, 0), (1, 1), (1, 1)))
    cols = []
    for ki in range(3):
        for kj in range(3):
            cols.append(xp[:, ki:ki + 2 * ho - 1:2, kj:kj + 2 * wo - 1:2])
    p = jnp.stack(cols, axis=-1).reshape(b, ho * wo, 9)
    p = jnp.pad(p, ((0, 0), (0, 0), (0, 7)))
    return p.reshape(b // b_blk, b_blk * ho * wo, 16)


def _pick_batch_block(b):
    # Fold several batch elements into one grid step (batch-folded matmul M)
    # while keeping >= 2 grid steps so dimension_semantics=("parallel",) can
    # still split the grid across the two TensorCores of a v7x megacore.
    for d in (8, 4, 2):
        if b % d == 0 and b // d >= 2:
            return d
    return 1


def _vmem_limit_bytes(wp, b_blk, m0, m1, m2):
    """Explicit (conservative) VMEM accounting for the scoped-vmem limit."""
    def nbytes(a):
        return a.size * jnp.dtype(a.dtype).itemsize

    cbytes = jnp.dtype(wp["w1"].dtype).itemsize
    weights = sum(nbytes(wp[k])
                  for k in ("w1", "w2", "w3", "g2", "g3", "vecs", "lw"))
    io = b_blk * (m0 * 16 * cbytes + (m0 + m1 + m2 + 1) * _NP * 4)
    scratch = (b_blk * 9 * (m1 + m2) * _NP * cbytes      # lane-folded patch slabs
               + 2 * b_blk * (m0 + m1 + m2) * _NP * 4)   # f32 activations
    est = 2 * weights + 2 * io + scratch + (4 << 20)
    return int(min(max(est, 32 << 20), 64 << 20))


@functools.partial(jax.jit, static_argnames=("hidden", "b_blk", "hidden_layout",
                                             "single_buffer_weights"))
def _single_window_forward(x_clip, wp, *, hidden, b_blk, hidden_layout,
                           single_buffer_weights):
    b, c_in, wl, nb = x_clip.shape
    assert c_in == 1 and b % b_blk == 0
    h1w, w1w = _out_hw(wl), _out_hw(nb)
    h2w, w2w = _out_hw(h1w), _out_hw(w1w)
    h3w, w3w = _out_hw(h2w), _out_hw(w2w)
    m0, m1, m2 = h1w * w1w, h2w * w2w, h3w * w3w
    g = b // b_blk
    cdt = wp["w1"].dtype  # weights pre-cast at init (bf16 by default)

    patches = _im2col_block1(x_clip, b_blk).astype(cdt)   # (g, b_blk*m0, 16)

    def wspec(shape):
        idx = lambda i: (0,) * len(shape)
        if single_buffer_weights:
            # Grid-invariant inputs: one VMEM buffer is enough (no double
            # buffering), halving the resident weight/gather footprint.
            return pl.BlockSpec(shape, idx, pipeline_mode=pl.Buffered(1))
        return pl.BlockSpec(shape, idx)

    h1, h2, h3, v = pl.pallas_call(
        _make_window_kernel(b_blk, m0, m1, m2),
        out_shape=(
            jax.ShapeDtypeStruct((g, b_blk * m0, _NP), jnp.float32),
            jax.ShapeDtypeStruct((g, b_blk * m1, _NP), jnp.float32),
            jax.ShapeDtypeStruct((g, b_blk * m2, _NP), jnp.float32),
            jax.ShapeDtypeStruct((g, b_blk, _NP), jnp.float32),
        ),
        grid=(g,),
        in_specs=[
            pl.BlockSpec((None, b_blk * m0, 16), lambda i: (i, 0, 0)),
            wspec((16, _NP)),            # block-1 weights (K padded 9 -> 16)
            wspec((9 * _NP, _NP)),       # block-2 K-folded tap weights
            wspec((9 * _NP, _NP)),       # block-3 K-folded tap weights
            wspec(wp["g2"].shape),       # one-hot gather (block 2)
            wspec(wp["g3"].shape),       # one-hot gather (block 3)
            wspec((10, _NP)),            # bias / BN scale / BN shift / lin_b
            wspec((m2, _NP)),            # pre-permuted adv_layer weights
        ],
        out_specs=(
            pl.BlockSpec((None, b_blk * m0, _NP), lambda i: (i, 0, 0)),
            pl.BlockSpec((None, b_blk * m1, _NP), lambda i: (i, 0, 0)),
            pl.BlockSpec((None, b_blk * m2, _NP), lambda i: (i, 0, 0)),
            pl.BlockSpec((None, b_blk, _NP), lambda i: (i, 0, 0)),
        ),
        compiler_params=pltpu.CompilerParams(
            dimension_semantics=("parallel",),   # batch blocks split over TCs
            vmem_limit_bytes=_vmem_limit_bytes(wp, b_blk, m0, m1, m2)),
    )(patches, wp["w1"], wp["w2"], wp["w3"], wp["g2"], wp["g3"], wp["vecs"],
      wp["lw"])

    h1 = h1.reshape(b, m0, _NP)
    h2 = h2.reshape(b, m1, _NP)
    h3 = h3.reshape(b, m2, _NP)
    validity = v.reshape(b, _NP)[:, :1]

    if hidden_layout == "slab":
        # Lane-padded (B, H*W, 128) slabs; skips the NCHW transpose HBM pass.
        return validity, [h1, h2, h3]

    def to_nchw(y, ho, wo):
        return jnp.transpose(y[:, :, :hidden].reshape(b, ho, wo, hidden),
                             (0, 3, 1, 2))

    hiddens = [to_nchw(h1, h1w, w1w), to_nchw(h2, h2w, w2w), to_nchw(h3, h3w, w3w)]
    return validity, hiddens


_SINGLE_BUFFER_WEIGHTS_OK = True


def single_window_forward(x_clip, wp, hidden, b_blk, hidden_layout="nchw"):
    """x_clip: (B, 1, wl, n_bins) -> (validity (B, 1), hiddens)."""
    global _SINGLE_BUFFER_WEIGHTS_OK
    if _SINGLE_BUFFER_WEIGHTS_OK:
        try:
            return _single_window_forward(
                x_clip, wp, hidden=hidden, b_blk=b_blk,
                hidden_layout=hidden_layout, single_buffer_weights=True)
        except Exception:
            # pl.Buffered(1) not supported by this JAX/Mosaic build; fall back
            # to default double-buffered (still correct, slightly more VMEM).
            _SINGLE_BUFFER_WEIGHTS_OK = False
    return _single_window_forward(
        x_clip, wp, hidden=hidden, b_blk=b_blk,
        hidden_layout=hidden_layout, single_buffer_weights=False)


def multi_window_discriminator_forward(x, x_len, params_list, win_lengths,
                                       start_frames_wins=None,
                                       compute_dtype="bfloat16",
                                       batch_block=None,
                                       hidden_layout="nchw"):
    if start_frames_wins is None:
        start_frames_wins = [None] * len(params_list)
    b = x.shape[0]
    b_blk = batch_block if batch_block is not None else _pick_batch_block(b)
    assert b % b_blk == 0
    hidden = params_list[0]["ref"]["blocks"][0]["w_nchw"].shape[0]
    validity, h = [], []
    for i, (entry, wl) in enumerate(zip(params_list, win_lengths)):
        start_frames = start_frames_wins[i]
        if start_frames is None:
            # Host sync only on the random-sampling path (matches nn clip()).
            t_end = int(jax.device_get(jnp.max(x_len))) - wl
            assert t_end >= 0
            start_frame = int(np.random.randint(0, t_end + 1))
            start_frames = [start_frame] * b
        else:
            start_frame = int(start_frames[0])
        start_frames_wins[i] = start_frames
        x_clip = x[:, :, start_frame:start_frame + wl]
        v, h_ = single_window_forward(x_clip, entry["pallas"][compute_dtype],
                                      hidden, b_blk, hidden_layout)
        validity.append(v)
        h += h_
    validity = sum(validity)  # elementwise sum across windows -> (B, 1)
    return validity, start_frames_wins, h


# ----------------------------- parameter init -------------------------------

def _make_conv_block(key, cin, cout, has_bn, eps=0.8):
    k1, k2, k3, k4, k5, k6 = jax.random.split(key, 6)
    w = 0.1 * jax.random.normal(k1, (cout, cin, 3, 3), jnp.float32)   # OIHW
    b = 0.1 * jax.random.normal(k2, (cout,), jnp.float32)
    if has_bn:
        gamma = 1.0 + 0.1 * jax.random.normal(k3, (cout,), jnp.float32)
        beta = 0.1 * jax.random.normal(k4, (cout,), jnp.float32)
        rmean = 0.1 * jax.random.normal(k5, (cout,), jnp.float32)
        rvar = jnp.abs(jax.random.normal(k6, (cout,), jnp.float32)) + 0.5
        scale = gamma / jnp.sqrt(rvar + eps)
        shift = beta - rmean * scale
    else:
        scale = jnp.ones((cout,), jnp.float32)
        shift = jnp.zeros((cout,), jnp.float32)
    return {"w_nchw": w, "b": b, "scale": scale, "shift": shift}


def _gather_matrix(h_in, w_in):
    """One-hot matrix mapping a flattened (h_in*w_in, C) activation slab to the
    9 stride-2/pad-1 tap patches, tap-major.  Out-of-bounds taps are all-zero
    rows (== zero padding)."""
    h_out, w_out = _out_hw(h_in), _out_hw(w_in)
    m = h_out * w_out
    g = np.zeros((9 * m, h_in * w_in), np.float32)
    for ki in range(3):
        for kj in range(3):
            t = 3 * ki + kj
            for i in range(h_out):
                si = 2 * i + ki - 1
                if not (0 <= si < h_in):
                    continue
                for j in range(w_out):
                    sj = 2 * j + kj - 1
                    if 0 <= sj < w_in:
                        g[t * m + i * w_out + j, si * w_in + sj] = 1.0
    return jnp.asarray(g)


def _prep_window_params(blocks, lin_w, lin_b, wl, nb, hidden, compute_dtype):
    assert hidden <= _NP
    cdt = jnp.bfloat16 if compute_dtype == "bfloat16" else jnp.float32
    h1w, w1w = _out_hw(wl), _out_hw(nb)
    h2w, w2w = _out_hw(h1w), _out_hw(w1w)
    h3w, w3w = _out_hw(h2w), _out_hw(w2w)
    m2 = h3w * w3w

    # block 1 weights: (hid, 1, 3, 3) -> (9, hid), zero-pad K 9->16, N hid->128.
    w1 = jnp.transpose(blocks[0]["w_nchw"][:, 0], (1, 2, 0)).reshape(9, hidden)
    w1 = jnp.zeros((16, _NP), jnp.float32).at[:9, :hidden].set(w1).astype(cdt)

    def kfold(blk):
        # (hid, hid, 3, 3) OIHW -> K-folded (9*128, 128): row t*128 + c_in.
        w = jnp.transpose(blk["w_nchw"], (2, 3, 1, 0)).reshape(9, hidden, hidden)
        wp_ = jnp.zeros((9, _NP, _NP), jnp.float32).at[:, :hidden, :hidden].set(w)
        return wp_.reshape(9 * _NP, _NP).astype(cdt)

    w2, w3 = kfold(blocks[1]), kfold(blocks[2])

    # rows 0..8: [b, scale, shift] per block, row 9 lane 0: adv_layer bias.
    vecs = jnp.zeros((10, _NP), jnp.float32)
    for i, blk in enumerate(blocks):
        vecs = vecs.at[3 * i + 0, :hidden].set(blk["b"])
        vecs = vecs.at[3 * i + 1, :hidden].set(blk["scale"])
        vecs = vecs.at[3 * i + 2, :hidden].set(blk["shift"])
    vecs = vecs.at[9, 0].set(lin_b[0, 0])

    # adv_layer weights pre-permuted from NCHW-flatten order to (spatial, chan).
    lw = jnp.transpose(lin_w.reshape(hidden, h3w, w3w), (1, 2, 0)).reshape(m2, hidden)
    lw = jnp.zeros((m2, _NP), jnp.float32).at[:, :hidden].set(lw)

    return {"w1": w1, "w2": w2, "w3": w3, "vecs": vecs, "lw": lw,
            "g2": _gather_matrix(h1w, w1w).astype(cdt),
            "g3": _gather_matrix(h2w, w2w).astype(cdt)}


def init_params(key, win_lengths, freq_length, c_in, hidden_size):
    params_list = []
    for wl in win_lengths:
        key, k1, k2, k3, k4, k5 = jax.random.split(key, 6)
        blocks = [
            _make_conv_block(k1, c_in, hidden_size, has_bn=True),
            _make_conv_block(k2, hidden_size, hidden_size, has_bn=True),
            _make_conv_block(k3, hidden_size, hidden_size, has_bn=False),
        ]
        h3w = _out_hw(_out_hw(_out_hw(wl)))
        w3w = _out_hw(_out_hw(_out_hw(freq_length)))
        feat = hidden_size * h3w * w3w
        lin_w = 0.1 * jax.random.normal(k4, (1, feat), jnp.float32)
        lin_b = 0.1 * jax.random.normal(k5, (1, 1), jnp.float32)
        params_list.append({
            "ref": {"blocks": blocks, "lin_w": lin_w, "lin_b": lin_b},
            "pallas": {
                "float32": _prep_window_params(blocks, lin_w, lin_b, wl,
                                               freq_length, hidden_size,
                                               "float32"),
                "bfloat16": _prep_window_params(blocks, lin_w, lin_b, wl,
                                                freq_length, hidden_size,
                                                "bfloat16"),
            },
        })
    return params_list


# ----------------------------- pure-JAX reference ---------------------------

def _ref_single(x_nchw, rp):
    x = x_nchw
    hs = []
    for blk in rp["blocks"]:
        y = lax.conv_general_dilated(
            x, blk["w_nchw"], window_strides=(2, 2), padding=((1, 1), (1, 1)),
            dimension_numbers=("NCHW", "OIHW", "NCHW"))
        y = y + blk["b"].reshape(1, -1, 1, 1)
        y = jnp.where(y >= 0.0, y, 0.2 * y)
        x = y * blk["scale"].reshape(1, -1, 1, 1) + blk["shift"].reshape(1, -1, 1, 1)
        hs.append(x)
    flat = x.reshape(x.shape[0], -1)
    return flat @ rp["lin_w"].T + rp["lin_b"], hs


# ----------------------------------- main ------------------------------------

if __name__ == "__main__":
    key = jax.random.PRNGKey(0)
    B, c_in, T, n_bins = 4, 1, 24, 16
    hidden_size = 32
    win_lengths = (8, 16)

    kx, kp = jax.random.split(key)
    x = jax.random.normal(kx, (B, c_in, T, n_bins), jnp.float32)
    x_len = jnp.array([T, T - 4, T - 2, T - 1], jnp.int32)
    params_list = init_params(kp, win_lengths, n_bins, c_in, hidden_size)

    start_frames_wins = [[3] * B, [2] * B]  # deterministic clips (no host sync)

    # pure-JAX reference (validity + NCHW hiddens)
    ref_v = jnp.zeros((B, 1), jnp.float32)
    ref_h = []
    for sf, wl, p in zip(start_frames_wins, win_lengths, params_list):
        rv, rh = _ref_single(x[:, :, sf[0]:sf[0] + wl], p["ref"])
        ref_v = ref_v + rv
        ref_h += rh

    # f32 MXU operands: tight tolerance.
    v32, sfw, h32 = multi_window_discriminator_forward(
        x, x_len, params_list, win_lengths,
        [list(s) for s in start_frames_wins], compute_dtype="float32")
    v32 = jax.block_until_ready(v32)
    assert v32.shape == (B, 1)
    assert len(h32) == 3 * len(win_lengths)
    for got, want in zip(h32, ref_h):
        assert got.shape == want.shape, (got.shape, want.shape)
        assert bool(jnp.allclose(got, want, rtol=2e-3, atol=2e-3))
    assert bool(jnp.allclose(v32, ref_v, rtol=2e-3, atol=2e-3)), (v32, ref_v)

    # bf16 MXU operands (default, v6e/v7x recommendation): f32 accumulation and
    # epilogue, looser tolerance.
    vbf, _, hbf = multi_window_discriminator_forward(
        x, x_len, params_list, win_lengths,
        [list(s) for s in start_frames_wins])
    vbf = jax.block_until_ready(vbf)
    for got, want in zip(hbf, ref_h):
        assert got.shape == want.shape
        assert bool(jnp.allclose(got, want, rtol=5e-2, atol=5e-2))
    assert bool(jnp.allclose(vbf, ref_v, rtol=5e-2, atol=5e-2)), (vbf, ref_v)

    print("KERNEL_OK")
</pallas_src>

<mosaic_0001>
module attributes {stable_mosaic.version = 11 : i64} {
  func.func @kernel(%arg0: i32, %arg1: memref<1x64x16xf32, #tpu.memory_space<vmem>>, %arg2: memref<16x128xf32, #tpu.memory_space<vmem>>, %arg3: memref<1152x128xf32, #tpu.memory_space<vmem>>, %arg4: memref<1152x128xf32, #tpu.memory_space<vmem>>, %arg5: memref<72x32xf32, #tpu.memory_space<vmem>>, %arg6: memref<18x8xf32, #tpu.memory_space<vmem>>, %arg7: memref<10x128xf32, #tpu.memory_space<vmem>>, %arg8: memref<2x128xf32, #tpu.memory_space<vmem>>, %arg9: memref<1x64x128xf32, #tpu.memory_space<vmem>>, %arg10: memref<1x16x128xf32, #tpu.memory_space<vmem>>, %arg11: memref<1x4x128xf32, #tpu.memory_space<vmem>>, %arg12: memref<1x2x128xf32, #tpu.memory_space<vmem>>) attributes {dimension_semantics = [#tpu.dimension_semantics<parallel>], iteration_bounds = array<i64: 2>, scalar_prefetch = 0 : i64, scratch_operands = 0 : i64, tpu.core_type = #tpu.core_type<tc>, window_params = [{transform_indices = @transform_0, window_bounds = array<i64: 1, 64, 16>}, {pipeline_mode = #tpu.pipeline_mode<synchronous>, transform_indices = @transform_1, window_bounds = array<i64: 16, 128>}, {pipeline_mode = #tpu.pipeline_mode<synchronous>, transform_indices = @transform_2, window_bounds = array<i64: 1152, 128>}, {pipeline_mode = #tpu.pipeline_mode<synchronous>, transform_indices = @transform_3, window_bounds = array<i64: 1152, 128>}, {pipeline_mode = #tpu.pipeline_mode<synchronous>, transform_indices = @transform_4, window_bounds = array<i64: 72, 32>}, {pipeline_mode = #tpu.pipeline_mode<synchronous>, transform_indices = @transform_5, window_bounds = array<i64: 18, 8>}, {pipeline_mode = #tpu.pipeline_mode<synchronous>, transform_indices = @transform_6, window_bounds = array<i64: 10, 128>}, {pipeline_mode = #tpu.pipeline_mode<synchronous>, transform_indices = @transform_7, window_bounds = array<i64: 2, 128>}, {transform_indices = @transform_8, window_bounds = array<i64: 1, 64, 128>}, {transform_indices = @transform_9, window_bounds = array<i64: 1, 16, 128>}, {transform_indices = @transform_10, window_bounds = array<i64: 1, 4, 128>}, {transform_indices = @transform_11, window_bounds = array<i64: 1, 2, 128>}]} {
    %c0 = arith.constant 0 : index
    %c0_0 = arith.constant 0 : index
    %c0_1 = arith.constant 0 : index
    %0 = vector.load %arg1[%c0, %c0_0, %c0_1] : memref<1x64x16xf32, #tpu.memory_space<vmem>>, vector<1x64x16xf32>
    %1 = vector.shape_cast %0 : vector<1x64x16xf32> to vector<64x16xf32>
    %c0_2 = arith.constant 0 : index
    %c0_3 = arith.constant 0 : index
    %2 = vector.load %arg2[%c0_2, %c0_3] : memref<16x128xf32, #tpu.memory_space<vmem>>, vector<16x128xf32>
    %cst = arith.constant dense<0.000000e+00> : vector<64x128xf32>
    %3 = tpu.matmul %1, %2, %cst {dimension_numbers = #tpu.dot_dimension_numbers<[1], [0], [0], [1], [0, 0, 1, 1], [], []>} : vector<64x16xf32>, vector<16x128xf32>, vector<64x128xf32> -> vector<64x128xf32>
    %c0_4 = arith.constant 0 : index
    %c0_5 = arith.constant 0 : index
    %4 = vector.load %arg7[%c0_4, %c0_5] : memref<10x128xf32, #tpu.memory_space<vmem>>, vector<1x128xf32>
    %5 = vector.broadcast %4 : vector<1x128xf32> to vector<64x128xf32>
    %6 = arith.addf %3, %5 : vector<64x128xf32>
    %cst_6 = arith.constant 0.000000e+00 : f32
    %7 = vector.broadcast %cst_6 : f32 to vector<64x128xf32>
    %8 = arith.cmpf oge, %6, %7 : vector<64x128xf32>
    %cst_7 = arith.constant 2.000000e-01 : f32
    %9 = vector.broadcast %cst_7 : f32 to vector<64x128xf32>
    %10 = arith.mulf %9, %6 : vector<64x128xf32>
    %11 = arith.select %8, %6, %10 : vector<64x128xi1>, vector<64x128xf32>
    %c1 = arith.constant 1 : index
    %c0_8 = arith.constant 0 : index
    %12 = vector.load %arg7[%c1, %c0_8] : memref<10x128xf32, #tpu.memory_space<vmem>>, vector<1x128xf32>
    %13 = vector.broadcast %12 : vector<1x128xf32> to vector<64x128xf32>
    %14 = arith.mulf %11, %13 : vector<64x128xf32>
    %c2 = arith.constant 2 : index
    %c0_9 = arith.constant 0 : index
    %15 = vector.load %arg7[%c2, %c0_9] : memref<10x128xf32, #tpu.memory_space<vmem>>, vector<1x128xf32>
    %16 = vector.broadcast %15 : vector<1x128xf32> to vector<64x128xf32>
    %17 = arith.addf %14, %16 : vector<64x128xf32>
    %c0_10 = arith.constant 0 : index
    %c0_11 = arith.constant 0 : index
    %c0_12 = arith.constant 0 : index
    %18 = vector.load %arg9[%c0_10, %c0_11, %c0_12] : memref<1x64x128xf32, #tpu.memory_space<vmem>>, vector<1x64x128xf32>
    %19 = vector.shape_cast %18 : vector<1x64x128xf32> to vector<64x128xf32>
    %20 = vector.shape_cast %17 : vector<64x128xf32> to vector<1x64x128xf32>
    tpu.vector_store %arg9[%c0_10, %c0_11, %c0_12], %20 {strides = array<i32>} : memref<1x64x128xf32, #tpu.memory_space<vmem>>, vector<1x64x128xf32>,
    %21 = vector.extract_strided_slice %17 {offsets = [0, 0], sizes = [32, 128], strides = [1, 1]} : vector<64x128xf32> to vector<32x128xf32>
    %c0_13 = arith.constant 0 : index
    %c0_14 = arith.constant 0 : index
    %22 = vector.load %arg5[%c0_13, %c0_14] : memref<72x32xf32, #tpu.memory_space<vmem>>, vector<72x32xf32>
    %cst_15 = arith.constant dense<0.000000e+00> : vector<72x128xf32>
    %23 = tpu.matmul %22, %21, %cst_15 {dimension_numbers = #tpu.dot_dimension_numbers<[1], [0], [0], [1], [0, 0, 1, 1], [], []>} : vector<72x32xf32>, vector<32x128xf32>, vector<72x128xf32> -> vector<72x128xf32>
    %24 = vector.extract_strided_slice %23 {offsets = [0, 0], sizes = [8, 128], strides = [1, 1]} : vector<72x128xf32> to vector<8x128xf32>
    %25 = vector.extract_strided_slice %23 {offsets = [8, 0], sizes = [8, 128], strides = [1, 1]} : vector<72x128xf32> to vector<8x128xf32>
    %26 = vector.extract_strided_slice %23 {offsets = [16, 0], sizes = [8, 128], strides = [1, 1]} : vector<72x128xf32> to vector<8x128xf32>
    %27 = vector.extract_strided_slice %23 {offsets = [24, 0], sizes = [8, 128], strides = [1, 1]} : vector<72x128xf32> to vector<8x128xf32>
    %28 = vector.extract_strided_slice %23 {offsets = [32, 0], sizes = [8, 128], strides = [1, 1]} : vector<72x128xf32> to vector<8x128xf32>
    %29 = vector.extract_strided_slice %23 {offsets = [40, 0], sizes = [8, 128], strides = [1, 1]} : vector<72x128xf32> to vector<8x128xf32>
    %30 = vector.extract_strided_slice %23 {offsets = [48, 0], sizes = [8, 128], strides = [1, 1]} : vector<72x128xf32> to vector<8x128xf32>
    %31 = vector.extract_strided_slice %23 {offsets = [56, 0], sizes = [8, 128], strides = [1, 1]} : vector<72x128xf32> to vector<8x128xf32>
    %32 = vector.extract_strided_slice %23 {offsets = [64, 0], sizes = [8, 128], strides = [1, 1]} : vector<72x128xf32> to vector<8x128xf32>
    %33 = tpu.concatenate %24, %25, %26, %27, %28, %29, %30, %31, %32 in 1 : vector<8x128xf32>, vector<8x128xf32>, vector<8x128xf32>, vector<8x128xf32>, vector<8x128xf32>, vector<8x128xf32>, vector<8x128xf32>, vector<8x128xf32>, vector<8x128xf32> -> vector<8x1152xf32>
    %34 = vector.extract_strided_slice %17 {offsets = [32, 0], sizes = [32, 128], strides = [1, 1]} : vector<64x128xf32> to vector<32x128xf32>
    %c0_16 = arith.constant 0 : index
    %c0_17 = arith.constant 0 : index
    %35 = vector.load %arg5[%c0_16, %c0_17] : memref<72x32xf32, #tpu.memory_space<vmem>>, vector<72x32xf32>
    %cst_18 = arith.constant dense<0.000000e+00> : vector<72x128xf32>
    %36 = tpu.matmul %35, %34, %cst_18 {dimension_numbers = #tpu.dot_dimension_numbers<[1], [0], [0], [1], [0, 0, 1, 1], [], []>} : vector<72x32xf32>, vector<32x128xf32>, vector<72x128xf32> -> vector<72x128xf32>
    %37 = vector.extract_strided_slice %36 {offsets = [0, 0], sizes = [8, 128], strides = [1, 1]} : vector<72x128xf32> to vector<8x128xf32>
    %38 = vector.extract_strided_slice %36 {offsets = [8, 0], sizes = [8, 128], strides = [1, 1]} : vector<72x128xf32> to vector<8x128xf32>
    %39 = vector.extract_strided_slice %36 {offsets = [16, 0], sizes = [8, 128], strides = [1, 1]} : vector<72x128xf32> to vector<8x128xf32>
    %40 = vector.extract_strided_slice %36 {offsets = [24, 0], sizes = [8, 128], strides = [1, 1]} : vector<72x128xf32> to vector<8x128xf32>
    %41 = vector.extract_strided_slice %36 {offsets = [32, 0], sizes = [8, 128], strides = [1, 1]} : vector<72x128xf32> to vector<8x128xf32>
    %42 = vector.extract_strided_slice %36 {offsets = [40, 0], sizes = [8, 128], strides = [1, 1]} : vector<72x128xf32> to vector<8x128xf32>
    %43 = vector.extract_strided_slice %36 {offsets = [48, 0], sizes = [8, 128], strides = [1, 1]} : vector<72x128xf32> to vector<8x128xf32>
    %44 = vector.extract_strided_slice %36 {offsets = [56, 0], sizes = [8, 128], strides = [1, 1]} : vector<72x128xf32> to vector<8x128xf32>
    %45 = vector.extract_strided_slice %36 {offsets = [64, 0], sizes = [8, 128], strides = [1, 1]} : vector<72x128xf32> to vector<8x128xf32>
    %46 = tpu.concatenate %37, %38, %39, %40, %41, %42, %43, %44, %45 in 1 : vector<8x128xf32>, vector<8x128xf32>, vector<8x128xf32>, vector<8x128xf32>, vector<8x128xf32>, vector<8x128xf32>, vector<8x128xf32>, vector<8x128xf32>, vector<8x128xf32> -> vector<8x1152xf32>
    %47 = tpu.concatenate %33, %46 in 0 : vector<8x1152xf32>, vector<8x1152xf32> -> vector<16x1152xf32>
    %c0_19 = arith.constant 0 : index
    %c0_20 = arith.constant 0 : index
    %48 = vector.load %arg3[%c0_19, %c0_20] : memref<1152x128xf32, #tpu.memory_space<vmem>>, vector<1152x128xf32>
    %cst_21 = arith.constant dense<0.000000e+00> : vector<16x128xf32>
    %49 = tpu.matmul %47, %48, %cst_21 {dimension_numbers = #tpu.dot_dimension_numbers<[1], [0], [0], [1], [0, 0, 1, 1], [], []>} : vector<16x1152xf32>, vector<1152x128xf32>, vector<16x128xf32> -> vector<16x128xf32>
    %c3 = arith.constant 3 : index
    %c0_22 = arith.constant 0 : index
    %50 = vector.load %arg7[%c3, %c0_22] : memref<10x128xf32, #tpu.memory_space<vmem>>, vector<1x128xf32>
    %51 = vector.broadcast %50 : vector<1x128xf32> to vector<16x128xf32>
    %52 = arith.addf %49, %51 : vector<16x128xf32>
    %cst_23 = arith.constant 0.000000e+00 : f32
    %53 = vector.broadcast %cst_23 : f32 to vector<16x128xf32>
    %54 = arith.cmpf oge, %52, %53 : vector<16x128xf32>
    %cst_24 = arith.constant 2.000000e-01 : f32
    %55 = vector.broadcast %cst_24 : f32 to vector<16x128xf32>
    %56 = arith.mulf %55, %52 : vector<16x128xf32>
    %57 = arith.select %54, %52, %56 : vector<16x128xi1>, vector<16x128xf32>
    %c4 = arith.constant 4 : index
    %c0_25 = arith.constant 0 : index
    %58 = vector.load %arg7[%c4, %c0_25] : memref<10x128xf32, #tpu.memory_space<vmem>>, vector<1x128xf32>
    %59 = vector.broadcast %58 : vector<1x128xf32> to vector<16x128xf32>
    %60 = arith.mulf %57, %59 : vector<16x128xf32>
    %c5 = arith.constant 5 : index
    %c0_26 = arith.constant 0 : index
    %61 = vector.load %arg7[%c5, %c0_26] : memref<10x128xf32, #tpu.memory_space<vmem>>, vector<1x128xf32>
    %62 = vector.broadcast %61 : vector<1x128xf32> to vector<16x128xf32>
    %63 = arith.addf %60, %62 : vector<16x128xf32>
    %c0_27 = arith.constant 0 : index
    %c0_28 = arith.constant 0 : index
    %c0_29 = arith.constant 0 : index
    %64 = vector.load %arg10[%c0_27, %c0_28, %c0_29] : memref<1x16x128xf32, #tpu.memory_space<vmem>>, vector<1x16x128xf32>
    %65 = vector.shape_cast %64 : vector<1x16x128xf32> to vector<16x128xf32>
    %66 = vector.shape_cast %63 : vector<16x128xf32> to vector<1x16x128xf32>
    tpu.vector_store %arg10[%c0_27, %c0_28, %c0_29], %66 {strides = array<i32>} : memref<1x16x128xf32, #tpu.memory_space<vmem>>, vector<1x16x128xf32>,
    %67 = vector.extract_strided_slice %63 {offsets = [0, 0], sizes = [8, 128], strides = [1, 1]} : vector<16x128xf32> to vector<8x128xf32>
    %c0_30 = arith.constant 0 : index
    %c0_31 = arith.constant 0 : index
    %68 = vector.load %arg6[%c0_30, %c0_31] : memref<18x8xf32, #tpu.memory_space<vmem>>, vector<18x8xf32>
    %cst_32 = arith.constant dense<0.000000e+00> : vector<18x128xf32>
    %69 = tpu.matmul %68, %67, %cst_32 {dimension_numbers = #tpu.dot_dimension_numbers<[1], [0], [0], [1], [0, 0, 1, 1], [], []>} : vector<18x8xf32>, vector<8x128xf32>, vector<18x128xf32> -> vector<18x128xf32>
    %70 = vector.extract_strided_slice %69 {offsets = [0, 0], sizes = [2, 128], strides = [1, 1]} : vector<18x128xf32> to vector<2x128xf32>
    %71 = vector.extract_strided_slice %69 {offsets = [2, 0], sizes = [2, 128], strides = [1, 1]} : vector<18x128xf32> to vector<2x128xf32>
    %72 = vector.extract_strided_slice %69 {offsets = [4, 0], sizes = [2, 128], strides = [1, 1]} : vector<18x128xf32> to vector<2x128xf32>
    %73 = vector.extract_strided_slice %69 {offsets = [6, 0], sizes = [2, 128], strides = [1, 1]} : vector<18x128xf32> to vector<2x128xf32>
    %74 = vector.extract_strided_slice %69 {offsets = [8, 0], sizes = [2, 128], strides = [1, 1]} : vector<18x128xf32> to vector<2x128xf32>
    %75 = vector.extract_strided_slice %69 {offsets = [10, 0], sizes = [2, 128], strides = [1, 1]} : vector<18x128xf32> to vector<2x128xf32>
    %76 = vector.extract_strided_slice %69 {offsets = [12, 0], sizes = [2, 128], strides = [1, 1]} : vector<18x128xf32> to vector<2x128xf32>
    %77 = vector.extract_strided_slice %69 {offsets = [14, 0], sizes = [2, 128], strides = [1, 1]} : vector<18x128xf32> to vector<2x128xf32>
    %78 = vector.extract_strided_slice %69 {offsets = [16, 0], sizes = [2, 128], strides = [1, 1]} : vector<18x128xf32> to vector<2x128xf32>
    %79 = tpu.concatenate %70, %71, %72, %73, %74, %75, %76, %77, %78 in 1 : vector<2x128xf32>, vector<2x128xf32>, vector<2x128xf32>, vector<2x128xf32>, vector<2x128xf32>, vector<2x128xf32>, vector<2x128xf32>, vector<2x128xf32>, vector<2x128xf32> -> vector<2x1152xf32>
    %80 = vector.extract_strided_slice %63 {offsets = [8, 0], sizes = [8, 128], strides = [1, 1]} : vector<16x128xf32> to vector<8x128xf32>
    %c0_33 = arith.constant 0 : index
    %c0_34 = arith.constant 0 : index
    %81 = vector.load %arg6[%c0_33, %c0_34] : memref<18x8xf32, #tpu.memory_space<vmem>>, vector<18x8xf32>
    %cst_35 = arith.constant dense<0.000000e+00> : vector<18x128xf32>
    %82 = tpu.matmul %81, %80, %cst_35 {dimension_numbers = #tpu.dot_dimension_numbers<[1], [0], [0], [1], [0, 0, 1, 1], [], []>} : vector<18x8xf32>, vector<8x128xf32>, vector<18x128xf32> -> vector<18x128xf32>
    %83 = vector.extract_strided_slice %82 {offsets = [0, 0], sizes = [2, 128], strides = [1, 1]} : vector<18x128xf32> to vector<2x128xf32>
    %84 = vector.extract_strided_slice %82 {offsets = [2, 0], sizes = [2, 128], strides = [1, 1]} : vector<18x128xf32> to vector<2x128xf32>
    %85 = vector.extract_strided_slice %82 {offsets = [4, 0], sizes = [2, 128], strides = [1, 1]} : vector<18x128xf32> to vector<2x128xf32>
    %86 = vector.extract_strided_slice %82 {offsets = [6, 0], sizes = [2, 128], strides = [1, 1]} : vector<18x128xf32> to vector<2x128xf32>
    %87 = vector.extract_strided_slice %82 {offsets = [8, 0], sizes = [2, 128], strides = [1, 1]} : vector<18x128xf32> to vector<2x128xf32>
    %88 = vector.extract_strided_slice %82 {offsets = [10, 0], sizes = [2, 128], strides = [1, 1]} : vector<18x128xf32> to vector<2x128xf32>
    %89 = vector.extract_strided_slice %82 {offsets = [12, 0], sizes = [2, 128], strides = [1, 1]} : vector<18x128xf32> to vector<2x128xf32>
    %90 = vector.extract_strided_slice %82 {offsets = [14, 0], sizes = [2, 128], strides = [1, 1]} : vector<18x128xf32> to vector<2x128xf32>
    %91 = vector.extract_strided_slice %82 {offsets = [16, 0], sizes = [2, 128], strides = [1, 1]} : vector<18x128xf32> to vector<2x128xf32>
    %92 = tpu.concatenate %83, %84, %85, %86, %87, %88, %89, %90, %91 in 1 : vector<2x128xf32>, vector<2x128xf32>, vector<2x128xf32>, vector<2x128xf32>, vector<2x128xf32>, vector<2x128xf32>, vector<2x128xf32>, vector<2x128xf32>, vector<2x128xf32> -> vector<2x1152xf32>
    %93 = tpu.concatenate %79, %92 in 0 : vector<2x1152xf32>, vector<2x1152xf32> -> vector<4x1152xf32>
    %c0_36 = arith.constant 0 : index
    %c0_37 = arith.constant 0 : index
    %94 = vector.load %arg4[%c0_36, %c0_37] : memref<1152x128xf32, #tpu.memory_space<vmem>>, vector<1152x128xf32>
    %cst_38 = arith.constant dense<0.000000e+00> : vector<4x128xf32>
    %95 = tpu.matmul %93, %94, %cst_38 {dimension_numbers = #tpu.dot_dimension_numbers<[1], [0], [0], [1], [0, 0, 1, 1], [], []>} : vector<4x1152xf32>, vector<1152x128xf32>, vector<4x128xf32> -> vector<4x128xf32>
    %c6 = arith.constant 6 : index
    %c0_39 = arith.constant 0 : index
    %96 = vector.load %arg7[%c6, %c0_39] : memref<10x128xf32, #tpu.memory_space<vmem>>, vector<1x128xf32>
    %97 = vector.broadcast %96 : vector<1x128xf32> to vector<4x128xf32>
    %98 = arith.addf %95, %97 : vector<4x128xf32>
    %cst_40 = arith.constant 0.000000e+00 : f32
    %99 = vector.broadcast %cst_40 : f32 to vector<4x128xf32>
    %100 = arith.cmpf oge, %98, %99 : vector<4x128xf32>
    %cst_41 = arith.constant 2.000000e-01 : f32
    %101 = vector.broadcast %cst_41 : f32 to vector<4x128xf32>
    %102 = arith.mulf %101, %98 : vector<4x128xf32>
    %103 = arith.select %100, %98, %102 : vector<4x128xi1>, vector<4x128xf32>
    %c7 = arith.constant 7 : index
    %c0_42 = arith.constant 0 : index
    %104 = vector.load %arg7[%c7, %c0_42] : memref<10x128xf32, #tpu.memory_space<vmem>>, vector<1x128xf32>
    %105 = vector.broadcast %104 : vector<1x128xf32> to vector<4x128xf32>
    %106 = arith.mulf %103, %105 : vector<4x128xf32>
    %c8 = arith.constant 8 : index
    %c0_43 = arith.constant 0 : index
    %107 = vector.load %arg7[%c8, %c0_43] : memref<10x128xf32, #tpu.memory_space<vmem>>, vector<1x128xf32>
    %108 = vector.broadcast %107 : vector<1x128xf32> to vector<4x128xf32>
    %109 = arith.addf %106, %108 : vector<4x128xf32>
    %c0_44 = arith.constant 0 : index
    %c0_45 = arith.constant 0 : index
    %c0_46 = arith.constant 0 : index
    %110 = vector.load %arg11[%c0_44, %c0_45, %c0_46] : memref<1x4x128xf32, #tpu.memory_space<vmem>>, vector<1x4x128xf32>
    %111 = vector.shape_cast %110 : vector<1x4x128xf32> to vector<4x128xf32>
    %112 = vector.shape_cast %109 : vector<4x128xf32> to vector<1x4x128xf32>
    tpu.vector_store %arg11[%c0_44, %c0_45, %c0_46], %112 {strides = array<i32>} : memref<1x4x128xf32, #tpu.memory_space<vmem>>, vector<1x4x128xf32>,
    %113 = vector.extract_strided_slice %109 {offsets = [0, 0], sizes = [2, 128], strides = [1, 1]} : vector<4x128xf32> to vector<2x128xf32>
    %c0_47 = arith.constant 0 : index
    %c0_48 = arith.constant 0 : index
    %114 = vector.load %arg8[%c0_47, %c0_48] : memref<2x128xf32, #tpu.memory_space<vmem>>, vector<2x128xf32>
    %115 = arith.mulf %113, %114 : vector<2x128xf32>
    %cst_49 = arith.constant dense<0.000000e+00> : vector<128xf32>
    %116 = vector.multi_reduction <add>, %115, %cst_49 [0] : vector<2x128xf32> to vector<128xf32>
    %117 = vector.shape_cast %116 : vector<128xf32> to vector<1x128xf32>
    %cst_50 = arith.constant dense<0.000000e+00> : vector<1xf32>
    %118 = vector.multi_reduction <add>, %117, %cst_50 [1] : vector<1x128xf32> to vector<1xf32>
    %119 = vector.shape_cast %118 : vector<1xf32> to vector<1x1xf32>
    %c9 = arith.constant 9 : index
    %c0_51 = arith.constant 0 : index
    %120 = vector.load %arg7[%c9, %c0_51] : memref<10x128xf32, #tpu.memory_space<vmem>>, vector<1x128xf32>
    %121 = vector.broadcast %119 : vector<1x1xf32> to vector<1x128xf32>
    %122 = arith.addf %121, %120 : vector<1x128xf32>
    %123 = vector.extract_strided_slice %109 {offsets = [2, 0], sizes = [2, 128], strides = [1, 1]} : vector<4x128xf32> to vector<2x128xf32>
    %c0_52 = arith.constant 0 : index
    %c0_53 = arith.constant 0 : index
    %124 = vector.load %arg8[%c0_52, %c0_53] : memref<2x128xf32, #tpu.memory_space<vmem>>, vector<2x128xf32>
    %125 = arith.mulf %123, %124 : vector<2x128xf32>
    %cst_54 = arith.constant dense<0.000000e+00> : vector<128xf32>
    %126 = vector.multi_reduction <add>, %125, %cst_54 [0] : vector<2x128xf32> to vector<128xf32>
    %127 = vector.shape_cast %126 : vector<128xf32> to vector<1x128xf32>
    %cst_55 = arith.constant dense<0.000000e+00> : vector<1xf32>
    %128 = vector.multi_reduction <add>, %127, %cst_55 [1] : vector<1x128xf32> to vector<1xf32>
    %129 = vector.shape_cast %128 : vector<1xf32> to vector<1x1xf32>
    %c9_56 = arith.constant 9 : index
    %c0_57 = arith.constant 0 : index
    %130 = vector.load %arg7[%c9_56, %c0_57] : memref<10x128xf32, #tpu.memory_space<vmem>>, vector<1x128xf32>
    %131 = vector.broadcast %129 : vector<1x1xf32> to vector<1x128xf32>
    %132 = arith.addf %131, %130 : vector<1x128xf32>
    %133 = tpu.concatenate %122, %132 in 0 : vector<1x128xf32>, vector<1x128xf32> -> vector<2x128xf32>
    %c0_58 = arith.constant 0 : index
    %c0_59 = arith.constant 0 : index
    %c0_60 = arith.constant 0 : index
    %134 = vector.load %arg12[%c0_58, %c0_59, %c0_60] : memref<1x2x128xf32, #tpu.memory_space<vmem>>, vector<1x2x128xf32>
    %135 = vector.shape_cast %134 : vector<1x2x128xf32> to vector<2x128xf32>
    %136 = vector.shape_cast %133 : vector<2x128xf32> to vector<1x2x128xf32>
    tpu.vector_store %arg12[%c0_58, %c0_59, %c0_60], %136 {strides = array<i32>} : memref<1x2x128xf32, #tpu.memory_space<vmem>>, vector<1x2x128xf32>,
    return
  }
  func.func @transform_0(%arg0: i32) -> (i32, i32, i32) {
    %c0_i32 = arith.constant 0 : i32
    %c0_i32_0 = arith.constant 0 : i32
    %c0_i32_1 = arith.constant 0 : i32
    return %arg0, %c0_i32, %c0_i32_0 : i32, i32, i32
  }
  func.func @transform_1(%arg0: i32) -> (i32, i32) {
    %c0_i32 = arith.constant 0 : i32
    %c0_i32_0 = arith.constant 0 : i32
    %c0_i32_1 = arith.constant 0 : i32
    return %c0_i32, %c0_i32_0 : i32, i32
  }
  func.func @transform_2(%arg0: i32) -> (i32, i32) {
    %c0_i32 = arith.constant 0 : i32
    %c0_i32_0 = arith.constant 0 : i32
    %c0_i32_1 = arith.constant 0 : i32
    return %c0_i32, %c0_i32_0 : i32, i32
  }
  func.func @transform_3(%arg0: i32) -> (i32, i32) {
    %c0_i32 = arith.constant 0 : i32
    %c0_i32_0 = arith.constant 0 : i32
    %c0_i32_1 = arith.constant 0 : i32
    return %c0_i32, %c0_i32_0 : i32, i32
  }
  func.func @transform_4(%arg0: i32) -> (i32, i32) {
    %c0_i32 = arith.constant 0 : i32
    %c0_i32_0 = arith.constant 0 : i32
    %c0_i32_1 = arith.constant 0 : i32
    return %c0_i32, %c0_i32_0 : i32, i32
  }
  func.func @transform_5(%arg0: i32) -> (i32, i32) {
    %c0_i32 = arith.constant 0 : i32
    %c0_i32_0 = arith.constant 0 : i32
    %c0_i32_1 = arith.constant 0 : i32
    return %c0_i32, %c0_i32_0 : i32, i32
  }
  func.func @transform_6(%arg0: i32) -> (i32, i32) {
    %c0_i32 = arith.constant 0 : i32
    %c0_i32_0 = arith.constant 0 : i32
    %c0_i32_1 = arith.constant 0 : i32
    return %c0_i32, %c0_i32_0 : i32, i32
  }
  func.func @transform_7(%arg0: i32) -> (i32, i32) {
    %c0_i32 = arith.constant 0 : i32
    %c0_i32_0 = arith.constant 0 : i32
    %c0_i32_1 = arith.constant 0 : i32
    return %c0_i32, %c0_i32_0 : i32, i32
  }
  func.func @transform_8(%arg0: i32) -> (i32, i32, i32) {
    %c0_i32 = arith.constant 0 : i32
    %c0_i32_0 = arith.constant 0 : i32
    %c0_i32_1 = arith.constant 0 : i32
    return %arg0, %c0_i32, %c0_i32_0 : i32, i32, i32
  }
  func.func @transform_9(%arg0: i32) -> (i32, i32, i32) {
    %c0_i32 = arith.constant 0 : i32
    %c0_i32_0 = arith.constant 0 : i32
    %c0_i32_1 = arith.constant 0 : i32
    return %arg0, %c0_i32, %c0_i32_0 : i32, i32, i32
  }
  func.func @transform_10(%arg0: i32) -> (i32, i32, i32) {
    %c0_i32 = arith.constant 0 : i32
    %c0_i32_0 = arith.constant 0 : i32
    %c0_i32_1 = arith.constant 0 : i32
    return %arg0, %c0_i32, %c0_i32_0 : i32, i32, i32
  }
  func.func @transform_11(%arg0: i32) -> (i32, i32, i32) {
    %c0_i32 = arith.constant 0 : i32
    %c0_i32_0 = arith.constant 0 : i32
    %c0_i32_1 = arith.constant 0 : i32
    return %arg0, %c0_i32, %c0_i32_0 : i32, i32, i32
  }
}

module attributes {stable_mosaic.version = 11 : i64} {
  func.func @kernel(%arg0: i32, %arg1: memref<1x64x16xf32, #tpu.memory_space<vmem>>, %arg2: memref<16x128xf32, #tpu.memory_space<vmem>>, %arg3: memref<1152x128xf32, #tpu.memory_space<vmem>>, %arg4: memref<1152x128xf32, #tpu.memory_space<vmem>>, %arg5: memref<72x32xf32, #tpu.memory_space<vmem>>, %arg6: memref<18x8xf32, #tpu.memory_space<vmem>>, %arg7: memref<10x128xf32, #tpu.memory_space<vmem>>, %arg8: memref<2x128xf32, #tpu.memory_space<vmem>>, %arg9: memref<1x64x128xf32, #tpu.memory_space<vmem>>, %arg10: memref<1x16x128xf32, #tpu.memory_space<vmem>>, %arg11: memref<1x4x128xf32, #tpu.memory_space<vmem>>, %arg12: memref<1x2x128xf32, #tpu.memory_space<vmem>>) attributes {dimension_semantics = [#tpu.dimension_semantics<parallel>], iteration_bounds = array<i64: 2>, scalar_prefetch = 0 : i64, scratch_operands = 0 : i64, tpu.core_type = #tpu.core_type<tc>, window_params = [{transform_indices = @transform_0, window_bounds = array<i64: 1, 64, 16>}, {pipeline_mode = #tpu.pipeline_mode<synchronous>, transform_indices = @transform_1, window_bounds = array<i64: 16, 128>}, {pipeline_mode = #tpu.pipeline_mode<synchronous>, transform_indices = @transform_2, window_bounds = array<i64: 1152, 128>}, {pipeline_mode = #tpu.pipeline_mode<synchronous>, transform_indices = @transform_3, window_bounds = array<i64: 1152, 128>}, {pipeline_mode = #tpu.pipeline_mode<synchronous>, transform_indices = @transform_4, window_bounds = array<i64: 72, 32>}, {pipeline_mode = #tpu.pipeline_mode<synchronous>, transform_indices = @transform_5, window_bounds = array<i64: 18, 8>}, {pipeline_mode = #tpu.pipeline_mode<synchronous>, transform_indices = @transform_6, window_bounds = array<i64: 10, 128>}, {pipeline_mode = #tpu.pipeline_mode<synchronous>, transform_indices = @transform_7, window_bounds = array<i64: 2, 128>}, {transform_indices = @transform_8, window_bounds = array<i64: 1, 64, 128>}, {transform_indices = @transform_9, window_bounds = array<i64: 1, 16, 128>}, {transform_indices = @transform_10, window_bounds = array<i64: 1, 4, 128>}, {transform_indices = @transform_11, window_bounds = array<i64: 1, 2, 128>}]} {
    %c0 = arith.constant 0 : index
    %c0_0 = arith.constant 0 : index
    %c0_1 = arith.constant 0 : index
    %0 = vector.load %arg1[%c0, %c0_0, %c0_1] : memref<1x64x16xf32, #tpu.memory_space<vmem>>, vector<1x64x16xf32>
    %1 = vector.shape_cast %0 : vector<1x64x16xf32> to vector<64x16xf32>
    %c0_2 = arith.constant 0 : index
    %c0_3 = arith.constant 0 : index
    %2 = vector.load %arg2[%c0_2, %c0_3] : memref<16x128xf32, #tpu.memory_space<vmem>>, vector<16x128xf32>
    %cst = arith.constant dense<0.000000e+00> : vector<64x128xf32>
    %3 = tpu.matmul %1, %2, %cst {dimension_numbers = #tpu.dot_dimension_numbers<[1], [0], [0], [1], [0, 0, 1, 1], [], []>} : vector<64x16xf32>, vector<16x128xf32>, vector<64x128xf32> -> vector<64x128xf32>
    %c0_4 = arith.constant 0 : index
    %c0_5 = arith.constant 0 : index
    %4 = vector.load %arg7[%c0_4, %c0_5] : memref<10x128xf32, #tpu.memory_space<vmem>>, vector<1x128xf32>
    %5 = vector.broadcast %4 : vector<1x128xf32> to vector<64x128xf32>
    %6 = arith.addf %3, %5 : vector<64x128xf32>
    %cst_6 = arith.constant 0.000000e+00 : f32
    %7 = vector.broadcast %cst_6 : f32 to vector<64x128xf32>
    %8 = arith.cmpf oge, %6, %7 : vector<64x128xf32>
    %cst_7 = arith.constant 2.000000e-01 : f32
    %9 = vector.broadcast %cst_7 : f32 to vector<64x128xf32>
    %10 = arith.mulf %9, %6 : vector<64x128xf32>
    %11 = arith.select %8, %6, %10 : vector<64x128xi1>, vector<64x128xf32>
    %c1 = arith.constant 1 : index
    %c0_8 = arith.constant 0 : index
    %12 = vector.load %arg7[%c1, %c0_8] : memref<10x128xf32, #tpu.memory_space<vmem>>, vector<1x128xf32>
    %13 = vector.broadcast %12 : vector<1x128xf32> to vector<64x128xf32>
    %14 = arith.mulf %11, %13 : vector<64x128xf32>
    %c2 = arith.constant 2 : index
    %c0_9 = arith.constant 0 : index
    %15 = vector.load %arg7[%c2, %c0_9] : memref<10x128xf32, #tpu.memory_space<vmem>>, vector<1x128xf32>
    %16 = vector.broadcast %15 : vector<1x128xf32> to vector<64x128xf32>
    %17 = arith.addf %14, %16 : vector<64x128xf32>
    %c0_10 = arith.constant 0 : index
    %c0_11 = arith.constant 0 : index
    %c0_12 = arith.constant 0 : index
    %18 = vector.load %arg9[%c0_10, %c0_11, %c0_12] : memref<1x64x128xf32, #tpu.memory_space<vmem>>, vector<1x64x128xf32>
    %19 = vector.shape_cast %18 : vector<1x64x128xf32> to vector<64x128xf32>
    %20 = vector.shape_cast %17 : vector<64x128xf32> to vector<1x64x128xf32>
    tpu.vector_store %arg9[%c0_10, %c0_11, %c0_12], %20 {strides = array<i32>} : memref<1x64x128xf32, #tpu.memory_space<vmem>>, vector<1x64x128xf32>,
    %21 = vector.extract_strided_slice %17 {offsets = [0, 0], sizes = [32, 128], strides = [1, 1]} : vector<64x128xf32> to vector<32x128xf32>
    %c0_13 = arith.constant 0 : index
    %c0_14 = arith.constant 0 : index
    %22 = vector.load %arg5[%c0_13, %c0_14] : memref<72x32xf32, #tpu.memory_space<vmem>>, vector<72x32xf32>
    %cst_15 = arith.constant dense<0.000000e+00> : vector<72x128xf32>
    %23 = tpu.matmul %22, %21, %cst_15 {dimension_numbers = #tpu.dot_dimension_numbers<[1], [0], [0], [1], [0, 0, 1, 1], [], []>} : vector<72x32xf32>, vector<32x128xf32>, vector<72x128xf32> -> vector<72x128xf32>
    %24 = vector.extract_strided_slice %23 {offsets = [0, 0], sizes = [8, 128], strides = [1, 1]} : vector<72x128xf32> to vector<8x128xf32>
    %25 = vector.extract_strided_slice %23 {offsets = [8, 0], sizes = [8, 128], strides = [1, 1]} : vector<72x128xf32> to vector<8x128xf32>
    %26 = vector.extract_strided_slice %23 {offsets = [16, 0], sizes = [8, 128], strides = [1, 1]} : vector<72x128xf32> to vector<8x128xf32>
    %27 = vector.extract_strided_slice %23 {offsets = [24, 0], sizes = [8, 128], strides = [1, 1]} : vector<72x128xf32> to vector<8x128xf32>
    %28 = vector.extract_strided_slice %23 {offsets = [32, 0], sizes = [8, 128], strides = [1, 1]} : vector<72x128xf32> to vector<8x128xf32>
    %29 = vector.extract_strided_slice %23 {offsets = [40, 0], sizes = [8, 128], strides = [1, 1]} : vector<72x128xf32> to vector<8x128xf32>
    %30 = vector.extract_strided_slice %23 {offsets = [48, 0], sizes = [8, 128], strides = [1, 1]} : vector<72x128xf32> to vector<8x128xf32>
    %31 = vector.extract_strided_slice %23 {offsets = [56, 0], sizes = [8, 128], strides = [1, 1]} : vector<72x128xf32> to vector<8x128xf32>
    %32 = vector.extract_strided_slice %23 {offsets = [64, 0], sizes = [8, 128], strides = [1, 1]} : vector<72x128xf32> to vector<8x128xf32>
    %33 = tpu.concatenate %24, %25, %26, %27, %28, %29, %30, %31, %32 in 1 : vector<8x128xf32>, vector<8x128xf32>, vector<8x128xf32>, vector<8x128xf32>, vector<8x128xf32>, vector<8x128xf32>, vector<8x128xf32>, vector<8x128xf32>, vector<8x128xf32> -> vector<8x1152xf32>
    %34 = vector.extract_strided_slice %17 {offsets = [32, 0], sizes = [32, 128], strides = [1, 1]} : vector<64x128xf32> to vector<32x128xf32>
    %c0_16 = arith.constant 0 : index
    %c0_17 = arith.constant 0 : index
    %35 = vector.load %arg5[%c0_16, %c0_17] : memref<72x32xf32, #tpu.memory_space<vmem>>, vector<72x32xf32>
    %cst_18 = arith.constant dense<0.000000e+00> : vector<72x128xf32>
    %36 = tpu.matmul %35, %34, %cst_18 {dimension_numbers = #tpu.dot_dimension_numbers<[1], [0], [0], [1], [0, 0, 1, 1], [], []>} : vector<72x32xf32>, vector<32x128xf32>, vector<72x128xf32> -> vector<72x128xf32>
    %37 = vector.extract_strided_slice %36 {offsets = [0, 0], sizes = [8, 128], strides = [1, 1]} : vector<72x128xf32> to vector<8x128xf32>
    %38 = vector.extract_strided_slice %36 {offsets = [8, 0], sizes = [8, 128], strides = [1, 1]} : vector<72x128xf32> to vector<8x128xf32>
    %39 = vector.extract_strided_slice %36 {offsets = [16, 0], sizes = [8, 128], strides = [1, 1]} : vector<72x128xf32> to vector<8x128xf32>
    %40 = vector.extract_strided_slice %36 {offsets = [24, 0], sizes = [8, 128], strides = [1, 1]} : vector<72x128xf32> to vector<8x128xf32>
    %41 = vector.extract_strided_slice %36 {offsets = [32, 0], sizes = [8, 128], strides = [1, 1]} : vector<72x128xf32> to vector<8x128xf32>
    %42 = vector.extract_strided_slice %36 {offsets = [40, 0], sizes = [8, 128], strides = [1, 1]} : vector<72x128xf32> to vector<8x128xf32>
    %43 = vector.extract_strided_slice %36 {offsets = [48, 0], sizes = [8, 128], strides = [1, 1]} : vector<72x128xf32> to vector<8x128xf32>
    %44 = vector.extract_strided_slice %36 {offsets = [56, 0], sizes = [8, 128], strides = [1, 1]} : vector<72x128xf32> to vector<8x128xf32>
    %45 = vector.extract_strided_slice %36 {offsets = [64, 0], sizes = [8, 128], strides = [1, 1]} : vector<72x128xf32> to vector<8x128xf32>
    %46 = tpu.concatenate %37, %38, %39, %40, %41, %42, %43, %44, %45 in 1 : vector<8x128xf32>, vector<8x128xf32>, vector<8x128xf32>, vector<8x128xf32>, vector<8x128xf32>, vector<8x128xf32>, vector<8x128xf32>, vector<8x128xf32>, vector<8x128xf32> -> vector<8x1152xf32>
    %47 = tpu.concatenate %33, %46 in 0 : vector<8x1152xf32>, vector<8x1152xf32> -> vector<16x1152xf32>
    %c0_19 = arith.constant 0 : index
    %c0_20 = arith.constant 0 : index
    %48 = vector.load %arg3[%c0_19, %c0_20] : memref<1152x128xf32, #tpu.memory_space<vmem>>, vector<1152x128xf32>
    %cst_21 = arith.constant dense<0.000000e+00> : vector<16x128xf32>
    %49 = tpu.matmul %47, %48, %cst_21 {dimension_numbers = #tpu.dot_dimension_numbers<[1], [0], [0], [1], [0, 0, 1, 1], [], []>} : vector<16x1152xf32>, vector<1152x128xf32>, vector<16x128xf32> -> vector<16x128xf32>
    %c3 = arith.constant 3 : index
    %c0_22 = arith.constant 0 : index
    %50 = vector.load %arg7[%c3, %c0_22] : memref<10x128xf32, #tpu.memory_space<vmem>>, vector<1x128xf32>
    %51 = vector.broadcast %50 : vector<1x128xf32> to vector<16x128xf32>
    %52 = arith.addf %49, %51 : vector<16x128xf32>
    %cst_23 = arith.constant 0.000000e+00 : f32
    %53 = vector.broadcast %cst_23 : f32 to vector<16x128xf32>
    %54 = arith.cmpf oge, %52, %53 : vector<16x128xf32>
    %cst_24 = arith.constant 2.000000e-01 : f32
    %55 = vector.broadcast %cst_24 : f32 to vector<16x128xf32>
    %56 = arith.mulf %55, %52 : vector<16x128xf32>
    %57 = arith.select %54, %52, %56 : vector<16x128xi1>, vector<16x128xf32>
    %c4 = arith.constant 4 : index
    %c0_25 = arith.constant 0 : index
    %58 = vector.load %arg7[%c4, %c0_25] : memref<10x128xf32, #tpu.memory_space<vmem>>, vector<1x128xf32>
    %59 = vector.broadcast %58 : vector<1x128xf32> to vector<16x128xf32>
    %60 = arith.mulf %57, %59 : vector<16x128xf32>
    %c5 = arith.constant 5 : index
    %c0_26 = arith.constant 0 : index
    %61 = vector.load %arg7[%c5, %c0_26] : memref<10x128xf32, #tpu.memory_space<vmem>>, vector<1x128xf32>
    %62 = vector.broadcast %61 : vector<1x128xf32> to vector<16x128xf32>
    %63 = arith.addf %60, %62 : vector<16x128xf32>
    %c0_27 = arith.constant 0 : index
    %c0_28 = arith.constant 0 : index
    %c0_29 = arith.constant 0 : index
    %64 = vector.load %arg10[%c0_27, %c0_28, %c0_29] : memref<1x16x128xf32, #tpu.memory_space<vmem>>, vector<1x16x128xf32>
    %65 = vector.shape_cast %64 : vector<1x16x128xf32> to vector<16x128xf32>
    %66 = vector.shape_cast %63 : vector<16x128xf32> to vector<1x16x128xf32>
    tpu.vector_store %arg10[%c0_27, %c0_28, %c0_29], %66 {strides = array<i32>} : memref<1x16x128xf32, #tpu.memory_space<vmem>>, vector<1x16x128xf32>,
    %67 = vector.extract_strided_slice %63 {offsets = [0, 0], sizes = [8, 128], strides = [1, 1]} : vector<16x128xf32> to vector<8x128xf32>
    %c0_30 = arith.constant 0 : index
    %c0_31 = arith.constant 0 : index
    %68 = vector.load %arg6[%c0_30, %c0_31] : memref<18x8xf32, #tpu.memory_space<vmem>>, vector<18x8xf32>
    %cst_32 = arith.constant dense<0.000000e+00> : vector<18x128xf32>
    %69 = tpu.matmul %68, %67, %cst_32 {dimension_numbers = #tpu.dot_dimension_numbers<[1], [0], [0], [1], [0, 0, 1, 1], [], []>} : vector<18x8xf32>, vector<8x128xf32>, vector<18x128xf32> -> vector<18x128xf32>
    %70 = vector.extract_strided_slice %69 {offsets = [0, 0], sizes = [2, 128], strides = [1, 1]} : vector<18x128xf32> to vector<2x128xf32>
    %71 = vector.extract_strided_slice %69 {offsets = [2, 0], sizes = [2, 128], strides = [1, 1]} : vector<18x128xf32> to vector<2x128xf32>
    %72 = vector.extract_strided_slice %69 {offsets = [4, 0], sizes = [2, 128], strides = [1, 1]} : vector<18x128xf32> to vector<2x128xf32>
    %73 = vector.extract_strided_slice %69 {offsets = [6, 0], sizes = [2, 128], strides = [1, 1]} : vector<18x128xf32> to vector<2x128xf32>
    %74 = vector.extract_strided_slice %69 {offsets = [8, 0], sizes = [2, 128], strides = [1, 1]} : vector<18x128xf32> to vector<2x128xf32>
    %75 = vector.extract_strided_slice %69 {offsets = [10, 0], sizes = [2, 128], strides = [1, 1]} : vector<18x128xf32> to vector<2x128xf32>
    %76 = vector.extract_strided_slice %69 {offsets = [12, 0], sizes = [2, 128], strides = [1, 1]} : vector<18x128xf32> to vector<2x128xf32>
    %77 = vector.extract_strided_slice %69 {offsets = [14, 0], sizes = [2, 128], strides = [1, 1]} : vector<18x128xf32> to vector<2x128xf32>
    %78 = vector.extract_strided_slice %69 {offsets = [16, 0], sizes = [2, 128], strides = [1, 1]} : vector<18x128xf32> to vector<2x128xf32>
    %79 = tpu.concatenate %70, %71, %72, %73, %74, %75, %76, %77, %78 in 1 : vector<2x128xf32>, vector<2x128xf32>, vector<2x128xf32>, vector<2x128xf32>, vector<2x128xf32>, vector<2x128xf32>, vector<2x128xf32>, vector<2x128xf32>, vector<2x128xf32> -> vector<2x1152xf32>
    %80 = vector.extract_strided_slice %63 {offsets = [8, 0], sizes = [8, 128], strides = [1, 1]} : vector<16x128xf32> to vector<8x128xf32>
    %c0_33 = arith.constant 0 : index
    %c0_34 = arith.constant 0 : index
    %81 = vector.load %arg6[%c0_33, %c0_34] : memref<18x8xf32, #tpu.memory_space<vmem>>, vector<18x8xf32>
    %cst_35 = arith.constant dense<0.000000e+00> : vector<18x128xf32>
    %82 = tpu.matmul %81, %80, %cst_35 {dimension_numbers = #tpu.dot_dimension_numbers<[1], [0], [0], [1], [0, 0, 1, 1], [], []>} : vector<18x8xf32>, vector<8x128xf32>, vector<18x128xf32> -> vector<18x128xf32>
    %83 = vector.extract_strided_slice %82 {offsets = [0, 0], sizes = [2, 128], strides = [1, 1]} : vector<18x128xf32> to vector<2x128xf32>
    %84 = vector.extract_strided_slice %82 {offsets = [2, 0], sizes = [2, 128], strides = [1, 1]} : vector<18x128xf32> to vector<2x128xf32>
    %85 = vector.extract_strided_slice %82 {offsets = [4, 0], sizes = [2, 128], strides = [1, 1]} : vector<18x128xf32> to vector<2x128xf32>
    %86 = vector.extract_strided_slice %82 {offsets = [6, 0], sizes = [2, 128], strides = [1, 1]} : vector<18x128xf32> to vector<2x128xf32>
    %87 = vector.extract_strided_slice %82 {offsets = [8, 0], sizes = [2, 128], strides = [1, 1]} : vector<18x128xf32> to vector<2x128xf32>
    %88 = vector.extract_strided_slice %82 {offsets = [10, 0], sizes = [2, 128], strides = [1, 1]} : vector<18x128xf32> to vector<2x128xf32>
    %89 = vector.extract_strided_slice %82 {offsets = [12, 0], sizes = [2, 128], strides = [1, 1]} : vector<18x128xf32> to vector<2x128xf32>
    %90 = vector.extract_strided_slice %82 {offsets = [14, 0], sizes = [2, 128], strides = [1, 1]} : vector<18x128xf32> to vector<2x128xf32>
    %91 = vector.extract_strided_slice %82 {offsets = [16, 0], sizes = [2, 128], strides = [1, 1]} : vector<18x128xf32> to vector<2x128xf32>
    %92 = tpu.concatenate %83, %84, %85, %86, %87, %88, %89, %90, %91 in 1 : vector<2x128xf32>, vector<2x128xf32>, vector<2x128xf32>, vector<2x128xf32>, vector<2x128xf32>, vector<2x128xf32>, vector<2x128xf32>, vector<2x128xf32>, vector<2x128xf32> -> vector<2x1152xf32>
    %93 = tpu.concatenate %79, %92 in 0 : vector<2x1152xf32>, vector<2x1152xf32> -> vector<4x1152xf32>
    %c0_36 = arith.constant 0 : index
    %c0_37 = arith.constant 0 : index
    %94 = vector.load %arg4[%c0_36, %c0_37] : memref<1152x128xf32, #tpu.memory_space<vmem>>, vector<1152x128xf32>
    %cst_38 = arith.constant dense<0.000000e+00> : vector<4x128xf32>
    %95 = tpu.matmul %93, %94, %cst_38 {dimension_numbers = #tpu.dot_dimension_numbers<[1], [0], [0], [1], [0, 0, 1, 1], [], []>} : vector<4x1152xf32>, vector<1152x128xf32>, vector<4x128xf32> -> vector<4x128xf32>
    %c6 = arith.constant 6 : index
    %c0_39 = arith.constant 0 : index
    %96 = vector.load %arg7[%c6, %c0_39] : memref<10x128xf32, #tpu.memory_space<vmem>>, vector<1x128xf32>
    %97 = vector.broadcast %96 : vector<1x128xf32> to vector<4x128xf32>
    %98 = arith.addf %95, %97 : vector<4x128xf32>
    %cst_40 = arith.constant 0.000000e+00 : f32
    %99 = vector.broadcast %cst_40 : f32 to vector<4x128xf32>
    %100 = arith.cmpf oge, %98, %99 : vector<4x128xf32>
    %cst_41 = arith.constant 2.000000e-01 : f32
    %101 = vector.broadcast %cst_41 : f32 to vector<4x128xf32>
    %102 = arith.mulf %101, %98 : vector<4x128xf32>
    %103 = arith.select %100, %98, %102 : vector<4x128xi1>, vector<4x128xf32>
    %c7 = arith.constant 7 : index
    %c0_42 = arith.constant 0 : index
    %104 = vector.load %arg7[%c7, %c0_42] : memref<10x128xf32, #tpu.memory_space<vmem>>, vector<1x128xf32>
    %105 = vector.broadcast %104 : vector<1x128xf32> to vector<4x128xf32>
    %106 = arith.mulf %103, %105 : vector<4x128xf32>
    %c8 = arith.constant 8 : index
    %c0_43 = arith.constant 0 : index
    %107 = vector.load %arg7[%c8, %c0_43] : memref<10x128xf32, #tpu.memory_space<vmem>>, vector<1x128xf32>
    %108 = vector.broadcast %107 : vector<1x128xf32> to vector<4x128xf32>
    %109 = arith.addf %106, %108 : vector<4x128xf32>
    %c0_44 = arith.constant 0 : index
    %c0_45 = arith.constant 0 : index
    %c0_46 = arith.constant 0 : index
    %110 = vector.load %arg11[%c0_44, %c0_45, %c0_46] : memref<1x4x128xf32, #tpu.memory_space<vmem>>, vector<1x4x128xf32>
    %111 = vector.shape_cast %110 : vector<1x4x128xf32> to vector<4x128xf32>
    %112 = vector.shape_cast %109 : vector<4x128xf32> to vector<1x4x128xf32>
    tpu.vector_store %arg11[%c0_44, %c0_45, %c0_46], %112 {strides = array<i32>} : memref<1x4x128xf32, #tpu.memory_space<vmem>>, vector<1x4x128xf32>,
    %113 = vector.extract_strided_slice %109 {offsets = [0, 0], sizes = [2, 128], strides = [1, 1]} : vector<4x128xf32> to vector<2x128xf32>
    %c0_47 = arith.constant 0 : index
    %c0_48 = arith.constant 0 : index
    %114 = vector.load %arg8[%c0_47, %c0_48] : memref<2x128xf32, #tpu.memory_space<vmem>>, vector<2x128xf32>
    %115 = arith.mulf %113, %114 : vector<2x128xf32>
    %cst_49 = arith.constant dense<0.000000e+00> : vector<128xf32>
    %116 = vector.multi_reduction <add>, %115, %cst_49 [0] : vector<2x128xf32> to vector<128xf32>
    %117 = vector.shape_cast %116 : vector<128xf32> to vector<1x128xf32>
    %cst_50 = arith.constant dense<0.000000e+00> : vector<1xf32>
    %118 = vector.multi_reduction <add>, %117, %cst_50 [1] : vector<1x128xf32> to vector<1xf32>
    %119 = vector.shape_cast %118 : vector<1xf32> to vector<1x1xf32>
    %c9 = arith.constant 9 : index
    %c0_51 = arith.constant 0 : index
    %120 = vector.load %arg7[%c9, %c0_51] : memref<10x128xf32, #tpu.memory_space<vmem>>, vector<1x128xf32>
    %121 = vector.broadcast %119 : vector<1x1xf32> to vector<1x128xf32>
    %122 = arith.addf %121, %120 : vector<1x128xf32>
    %123 = vector.extract_strided_slice %109 {offsets = [2, 0], sizes = [2, 128], strides = [1, 1]} : vector<4x128xf32> to vector<2x128xf32>
    %c0_52 = arith.constant 0 : index
    %c0_53 = arith.constant 0 : index
    %124 = vector.load %arg8[%c0_52, %c0_53] : memref<2x128xf32, #tpu.memory_space<vmem>>, vector<2x128xf32>
    %125 = arith.mulf %123, %124 : vector<2x128xf32>
    %cst_54 = arith.constant dense<0.000000e+00> : vector<128xf32>
    %126 = vector.multi_reduction <add>, %125, %cst_54 [0] : vector<2x128xf32> to vector<128xf32>
    %127 = vector.shape_cast %126 : vector<128xf32> to vector<1x128xf32>
    %cst_55 = arith.constant dense<0.000000e+00> : vector<1xf32>
    %128 = vector.multi_reduction <add>, %127, %cst_55 [1] : vector<1x128xf32> to vector<1xf32>
    %129 = vector.shape_cast %128 : vector<1xf32> to vector<1x1xf32>
    %c9_56 = arith.constant 9 : index
    %c0_57 = arith.constant 0 : index
    %130 = vector.load %arg7[%c9_56, %c0_57] : memref<10x128xf32, #tpu.memory_space<vmem>>, vector<1x128xf32>
    %131 = vector.broadcast %129 : vector<1x1xf32> to vector<1x128xf32>
    %132 = arith.addf %131, %130 : vector<1x128xf32>
    %133 = tpu.concatenate %122, %132 in 0 : vector<1x128xf32>, vector<1x128xf32> -> vector<2x128xf32>
    %c0_58 = arith.constant 0 : index
    %c0_59 = arith.constant 0 : index
    %c0_60 = arith.constant 0 : index
    %134 = vector.load %arg12[%c0_58, %c0_59, %c0_60] : memref<1x2x128xf32, #tpu.memory_space<vmem>>, vector<1x2x128xf32>
    %135 = vector.shape_cast %134 : vector<1x2x128xf32> to vector<2x128xf32>
    %136 = vector.shape_cast %133 : vector<2x128xf32> to vector<1x2x128xf32>
    tpu.vector_store %arg12[%c0_58, %c0_59, %c0_60], %136 {strides = array<i32>} : memref<1x2x128xf32, #tpu.memory_space<vmem>>, vector<1x2x128xf32>,
    return
  }
  func.func @transform_0(%arg0: i32) -> (i32, i32, i32) {
    %c0_i32 = arith.constant 0 : i32
    %c0_i32_0 = arith.constant 0 : i32
    %c0_i32_1 = arith.constant 0 : i32
    return %arg0, %c0_i32, %c0_i32_0 : i32, i32, i32
  }
  func.func @transform_1(%arg0: i32) -> (i32, i32) {
    %c0_i32 = arith.constant 0 : i32
    %c0_i32_0 = arith.constant 0 : i32
    %c0_i32_1 = arith.constant 0 : i32
    return %c0_i32, %c0_i32_0 : i32, i32
  }
  func.func @transform_2(%arg0: i32) -> (i32, i32) {
    %c0_i32 = arith.constant 0 : i32
    %c0_i32_0 = arith.constant 0 : i32
    %c0_i32_1 = arith.constant 0 : i32
    return %c0_i32, %c0_i32_0 : i32, i32
  }
  func.func @transform_3(%arg0: i32) -> (i32, i32) {
    %c0_i32 = arith.constant 0 : i32
    %c0_i32_0 = arith.constant 0 : i32
    %c0_i32_1 = arith.constant 0 : i32
    return %c0_i32, %c0_i32_0 : i32, i32
  }
  func.func @transform_4(%arg0: i32) -> (i32, i32) {
    %c0_i32 = arith.constant 0 : i32
    %c0_i32_0 = arith.constant 0 : i32
    %c0_i32_1 = arith.constant 0 : i32
    return %c0_i32, %c0_i32_0 : i32, i32
  }
  func.func @transform_5(%arg0: i32) -> (i32, i32) {
    %c0_i32 = arith.constant 0 : i32
    %c0_i32_0 = arith.constant 0 : i32
    %c0_i32_1 = arith.constant 0 : i32
    return %c0_i32, %c0_i32_0 : i32, i32
  }
  func.func @transform_6(%arg0: i32) -> (i32, i32) {
    %c0_i32 = arith.constant 0 : i32
    %c0_i32_0 = arith.constant 0 : i32
    %c0_i32_1 = arith.constant 0 : i32
    return %c0_i32, %c0_i32_0 : i32, i32
  }
  func.func @transform_7(%arg0: i32) -> (i32, i32) {
    %c0_i32 = arith.constant 0 : i32
    %c0_i32_0 = arith.constant 0 : i32
    %c0_i32_1 = arith.constant 0 : i32
    return %c0_i32, %c0_i32_0 : i32, i32
  }
  func.func @transform_8(%arg0: i32) -> (i32, i32, i32) {
    %c0_i32 = arith.constant 0 : i32
    %c0_i32_0 = arith.constant 0 : i32
    %c0_i32_1 = arith.constant 0 : i32
    return %arg0, %c0_i32, %c0_i32_0 : i32, i32, i32
  }
  func.func @transform_9(%arg0: i32) -> (i32, i32, i32) {
    %c0_i32 = arith.constant 0 : i32
    %c0_i32_0 = arith.constant 0 : i32
    %c0_i32_1 = arith.constant 0 : i32
    return %arg0, %c0_i32, %c0_i32_0 : i32, i32, i32
  }
  func.func @transform_10(%arg0: i32) -> (i32, i32, i32) {
    %c0_i32 = arith.constant 0 : i32
    %c0_i32_0 = arith.constant 0 : i32
    %c0_i32_1 = arith.constant 0 : i32
    return %arg0, %c0_i32, %c0_i32_0 : i32, i32, i32
  }
  func.func @transform_11(%arg0: i32) -> (i32, i32, i32) {
    %c0_i32 = arith.constant 0 : i32
    %c0_i32_0 = arith.constant 0 : i32
    %c0_i32_1 = arith.constant 0 : i32
    return %arg0, %c0_i32, %c0_i32_0 : i32, i32, i32
  }
}

</mosaic_0001>

<bundles_post_ra>
// kernel: _single_window_forward.1
= control target key start
LH: loop header
LB: loop body
LE: loop exit
PB: predicated region body
PF: predicated region fallthrough
CT: control target
= control target key end

     0   :  { %s4396_s0 = inlined_call_operand.vmem [shape: f32[2,64,16], index: 0, kind: input, shape index: {}]   ;;  %s4397_s1 = inlined_call_operand.vmem [shape: f32[16,128], index: 1, kind: input, shape index: {}]   ;;  %s4398_s2 = inlined_call_operand.vmem [shape: f32[1152,128], index: 2, kind: input, shape index: {}]   ;;  %s4399_s3 = inlined_call_operand.hbm [shape: f32[1152,128], index: 3, kind: input, shape index: {}]   ;;  %s4400_s4 = inlined_call_operand.vmem [shape: f32[72,32], index: 4, kind: input, shape index: {}]   ;;  %s4401_s5 = inlined_call_operand.vmem [shape: f32[18,8], index: 5, kind: input, shape index: {}]   ;;  %s4402_s6 = inlined_call_operand.vmem [shape: f32[10,128], index: 6, kind: input, shape index: {}]   ;;  %s4403_s7 = inlined_call_operand.vmem [shape: f32[2,128], index: 7, kind: input, shape index: {}]   ;;  %s4404_s8 = inlined_call_operand.vmem [shape: f32[2,64,128], index: 8, kind: output, shape index: {0}]   ;;  %s4405_s9 = inlined_call_operand.hbm [shape: f32[2,16,128], index: 9, kind: output, shape index: {1}]   ;;  %s4406_s10 = inlined_call_operand.vmem [shape: f32[2,4,128], index: 10, kind: output, shape index: {2}]   ;;  %s4407_s11 = inlined_call_operand.vmem [shape: f32[2,2,128], index: 11, kind: output, shape index: {3}]  }
   0x1   :  { %4412 = sst [smem:[#allocation9_spill]] %s4396_s0 }
   0x2   :  { %17 = vsyncpa [#allocation3], 0 }
   0x3   :  { %18 = vsyncpa [#allocation4], 0 }
   0x4   :  { %20 = vsyncpa [#allocation4 + $0x1], 0  ;;  %s3562_s17 = smov 0   ;;  %s3564_s18 = smov 0  }
   0x5   :  { %s3566_s19 = smov 0   ;;  %s3568_s20 = smov 0  }
   0x6 LB: > { %s3583_s21 = sadd.s32 4294967295, %s3491_s20   ;;  %s2395_s22 = sadd.s32 4294967294, %s3491_s20   ;;  %s3491_s20 = sphi %s3568_s20, %s4429_s20   ;;  %s3487_s19 = sphi %s3566_s19, %s4428_s19   ;;  %s3483_s18 = sphi %s3564_s18, %s4427_s18   ;;  %s3479_s17 = sphi %s3562_s17, %s4426_s17  }
   0x7   : > { %s3587_s23 = sadd.s32 1, %s3491_s20   ;;  %s232_s24 = sadd.s32 1, %s3487_s19 }
   0x8   : > { %s229_s25 = ssub.s32 %s3491_s20, %s3587_s23  ;;  %p242_p0 = scmp.ne.s32.totalorder %s3487_s19, %s3483_s18 }
   0x9   : > { %p230_p1 = scmp.eq.s32.totalorder %s229_s25, 0  ;;  %p243_p2 = scmp.eq.s32.totalorder %s3583_s21, 1 }
   0xa   : > { %p248_p3 = scmp.ne.s32.totalorder %s3483_s18, %s3479_s17  ;;  %p249_p4 = scmp.eq.s32.totalorder %s2395_s22, 1 }
   0xb   : > { %s3598_s26 = scalar_select %p230_p1, %s3487_s19, %s232_s24  }
   0xc   : > { %p3600_p5 = por %p243_p2, %p242_p0  ;;  %p3604_p6 = por %p249_p4, %p248_p3 }
   0xd   : > { %4413 = sst [smem:[#allocation8_spill]] %s3598_s26  ;;  %p2396_p7 = scmp.ge.s32.totalorder %s3491_s20, 1 }
   0xe   : > { %s4414_s27 = scalar_select %p3600_p5, 1, 0 }
   0xf   : > { %s4415_s28 = scalar_select %p3604_p6, 1, 0 }
  0x10   : > { %p308_p8 = scmp.lt.s32.totalorder %s3491_s20, 3  ;;  %p4408_p9 = scmp.eq.s32.totalorder %s3583_s21, 0 }
  0x11   : > { %s3493_s30 = smov [#allocation2]   ;;  %s3397_s16 = scalar_lea.hbm %s4399_s3, 18432 }
  0x12   : > { %p3611_p10 = pnand %p2396_p7, %p308_p8  ;;  %s326_s12 = sshll.u32 %s3493_s30, 4  ;;  %s327_s12 = int_to_ptr.vmem [resolvable:$true] %s326_s12 }
  0x13   : > { %p3398_p13 = scmp.ne.s32.totalorder %s4399_s3, %s3397_s16  ;;  %p3404_p3 = scmp.lt.u32.totalorder %s3397_s16, %s4399_s3 }
  0x14   : > { %s4416_s29 = scalar_select %p3611_p10, 1, 0 }
  0x15   : > { %p3346_p11 = pneg %p3611_p10 }
  0x17   : > { %p3619_p12 = pnand %p4408_p9, %p3346_p11 }
  0x19   : > { %p3399_p0 = pneg %p3619_p12 }
  0x1b   : > { %p3400_p1 = pnand %p3399_p0, %p3398_p13 }
  0x1d   : > { %p3401_p2 = pneg %p3400_p1 }
  0x1f   : > { %p3406_p4 = pnand %p3404_p3, %p3401_p2 }
  0x21   : > { %3409 = shalt.err (!%p3406_p4)
}
  0x22   : > { %s3410_s26 = scalar_lea.vmem %s327_s12, 18432  ;;  %p3418_p9 = scmp.lt.s32.totalorder %s327_s12, %s327_s12 }
  0x23   : > { %p3411_p7 = scmp.ne.s32.totalorder %s327_s12, %s3410_s26  ;;  %p3419_p6 = scmp.lt.s32.totalorder %s3410_s26, %s3410_s26 }
  0x25   : > { %p3413_p8 = pnand %p3411_p7, %p3399_p0  ;;  %p3420_p5 = por %p3419_p6, %p3418_p9 }
  0x27   : > { %p3414_p11 = pneg %p3413_p8 }
  0x29   : > { %p3421_p10 = pnand %p3420_p5, %p3414_p11 }
  0x2b   : > { %3424 = shalt.err (!%p3421_p10)
}
  0x2c   : > { %s3494_s14 = smov 128   ;;  %s3495_s15 = smov 8  }
  0x2d   : > { %3349 = dma.hbm_to_vmem [thread:$0]  (!%p3619_p12), %s4399_s3, 18432, %s327_s12, [#allocation3], %s3494_s14, %s3494_s14, %s3495_s15  }
  0x2e   : > { %p4418_p13 = scmp.ne.s32.totalorder %s4416_s29, 0 }
  0x2f   : > { %p4419_p1 = scmp.eq.s32.totalorder (!%p4418_p13), %s3583_s21, 0 }
  0x30   : > { %362 = sbr.rel (%p4418_p13) target bundleno = 1469 (0x5bd), region = 52 }
  0x37   : > { %3470 = dma.done.wait (%p4419_p1), [#allocation3], 18432   ;;  %p4420_p0 = pmov %p4419_p1 }
  0x38   : > { %p415_p5 = scmp.lt.s32.totalorder %s3583_s21, 1  ;;  %s4421_s0 = sld [smem:[#allocation9_spill]]  ;;  %vm448_vm0 = vcmask 130048   ;;  %v441_v0 = vld [vmem:[%s4397_s1] sm:$0xff]  ;;  %v442_v1 = vld [vmem:[%s4397_s1 + $0x8] sm:$0xff]  ;;  %v3496_v11 = vmov 0.0|0.0  }
  0x39   : > { %3472 = vsyncadd (%p4420_p0), [#allocation3], 4294948864  ;;  %v3010_v3 = vpack.c.bf16 %v442_v1, %v441_v0  ;;  %vm3497_vm1 = vmmov 0   ;;  %v3498_v12 = vmov 0.0   ;;  %v2408_v13 = vld [vmem:[%s4402_s6] ss:$0 sm:$0xff] }
  0x3a   : > { %s3647_s26 = scalar_select %p415_p5, %s3583_s21, 1  ;;  %v3681_v20 = vld [vmem:[%s4402_s6 + $0x1] ss:$0 sm:$0xff]  ;;  %v3686_v29 = vld [vmem:[%s4402_s6 + $0x2] ss:$0 sm:$0xff]  ;;  %v910_v56 = vld [vmem:[%s4398_s2 + $0x88] sm:$0xff] }
  0x3b   : > { %3011 = vmatprep.subr.bf16.mxu0 %v3010_v3  ;;  %3338 = vmatprep.subr.bf16.mxu1 %v3010_v3  ;;  %v909_v55 = vld [vmem:[%s4398_s2 + $0x80] sm:$0xff]  ;;  %vm645_vm10 = vcmask 261120   ;;  %vm1442_vm13 = vcmask 64512   ;;  %vm1651_vm14 = vcmask 1041408   ;;  %p4423_p9 = scmp.ne.s32.totalorder %s4414_s27, 0 }
  0x3c   : > { %s2458_s13 = sshll.u32 %s3647_s26, 6  ;;  %3013 = vmatpush3.bf16.msra.mxu0 %v3010_v3  ;;  %3339 = vmatpush3.bf16.msra.mxu1 %v3010_v3  ;;  %v3026_v0 = vpack.c.bf16 %v910_v56, %v909_v55  ;;  %v893_v1 = vld [vmem:[%s4398_s2] sm:$0xff]  ;;  %v902_v56 = vld [vmem:[%s4398_s2 + $0x48] sm:$0xff]  ;;  %s2406_s24 = sshll.u32 %s3647_s26, 2 }
  0x3d   : > { %3014 = vmatprep.subr.bf16.mxu1 %v3496_v11  ;;  %3020 = vmatprep.subr.bf16.mxu0 %v3496_v11  ;;  %s3695_s15 = scalar_lea.vmem %s4404_s8, %s2458_s13  ;;  %v901_v55 = vld [vmem:[%s4398_s2 + $0x40] sm:$0xff] }
  0x3e   : > { %s419_s29 = scalar_lea.vmem %s4421_s0, %s2458_s13  ;;  %s4411_s0 = sand.u32 1, %s3483_s18  }
  0x3f   : > { %v433_v2 = vld [vmem:[%s419_s29] sm:$0xff]  ;;  %v434_v5 = vld [vmem:[%s419_s29 + $0x8] sm:$0xff]  ;;  %v435_v7 = vld [vmem:[%s419_s29 + $0x10] sm:$0xff] }
  0x40   : > { %2836 = vmatprep.mubr.msk.f32.mxu0 %vm448_vm0, %v433_v2  ;;  %v437_v4 = vld [vmem:[%s419_s29 + $0x20] sm:$0xff]  ;;  %v438_v6 = vld [vmem:[%s419_s29 + $0x28] sm:$0xff]  ;;  %v439_v8 = vld [vmem:[%s419_s29 + $0x30] sm:$0xff] }
  0x41   : > { %2842 = vmatprep.mubr.msk.f32.mxu1 %vm448_vm0, %v437_v4  ;;  %2837 = vmatmul.mubr.msk.f32.vlgmr.msra.gmra.mrb[0].mxu0 %vm448_vm0, %v434_v5  ;;  %v436_v9 = vld [vmem:[%s419_s29 + $0x18] sm:$0xff]  ;;  %v894_v5 = vld [vmem:[%s4398_s2 + $0x8] sm:$0xff] }
  0x42   : > { %2843 = vmatmul.mubr.msk.f32.vlgmr.msra.gmra.mrb[0].mxu1 %vm448_vm0, %v438_v6  ;;  %2839 = vmatprep.mubr.msk.f32.mxu0 %vm448_vm0, %v435_v7  ;;  %v440_v10 = vld [vmem:[%s419_s29 + $0x38] sm:$0xff]  ;;  %v941_v6 = vld [vmem:[%s4398_s2 + $0x180] sm:$0xff]  ;;  %v942_v7 = vld [vmem:[%s4398_s2 + $0x188] sm:$0xff]  ;;  %s2401_s29 = sshll.u32 %s4411_s0, 4  ;;  %s428_s0 = scalar_lea.vmem %s4406_s10, %s2406_s24 }
  0x43   : > { %2845 = vmatprep.mubr.msk.f32.mxu1 %vm448_vm0, %v439_v8  ;;  %v911_v8 = vld [vmem:[%s4398_s2 + $0x90] sm:$0xff]  ;;  %s4422_s24 = sand.u32 1, %s3483_s18  }
  0x44   : > { %s4348_s16 = scalar_lea.sflag [#allocation4], %s4422_s24 }
  0x45   : > { %2840 = vmatmul.mubr.msk.f32.gmra.mrb[2].mxu0 %vm448_vm0, %v436_v9  ;;  %v912_v9 = vld [vmem:[%s4398_s2 + $0x98] sm:$0xff] }
  0x46   : > { %2846 = vmatmul.mubr.msk.f32.gmra.mrb[2].mxu1 %vm448_vm0, %v440_v10  ;;  %2891 = vmatprep.mubr.msk.f32.mxu0 %vm3497_vm1, %v3498_v12 }
  0x47   : > { %2856 = vmatprep.mubr.msk.f32.mxu1 %vm3497_vm1, %v3498_v12 }
 0x114   : > { %v2838_v14 = vpop.f32.mrb[0].mxu0 }
 0x115   : > { %v2844_v15 = vpop.f32.mrb[0].mxu1  ;;  %v545_v16 = vadd.f32 %v2838_v14, %v2408_v13  ;;  %v539_v17 = vpop.f32.mrb[1].mxu0 }
 0x116   : > { %v565_v18 = vadd.f32 %v2844_v15, %v2408_v13  ;;  %v559_v19 = vpop.f32.mrb[1].mxu1  ;;  %v540_v21 = vadd.f32 %v2408_v13, %v539_v17  ;;  %v3028_v15 = vpack.c.bf16 %v894_v5, %v893_v1  ;;  %v896_v17 = vld [vmem:[%s4398_s2 + $0x18] sm:$0xff]  ;;  %v950_v1 = vld [vmem:[%s4398_s2 + $0x1c8] sm:$0xff] }
 0x117   : > { %v560_v22 = vadd.f32 %v2408_v13, %v559_v19  ;;  %vm579_vm2 = vcmp.ge.f32.partialorder %v545_v16, 0.0  ;;  %v587_v23 = vmul.f32 0.2, %v545_v16 }
 0x118   : > { %vm583_vm3 = vcmp.ge.f32.partialorder %v565_v18, 0.0  ;;  %v591_v24 = vmul.f32 0.2, %v565_v18  ;;  %vm578_vm4 = vcmp.ge.f32.partialorder %v540_v21, 0.0  ;;  %v586_v25 = vmul.f32 0.2, %v540_v21 }
 0x119   : > { %v2841_v26 = vpop.f32.mrb[2].mxu0  ;;  %vm582_vm5 = vcmp.ge.f32.partialorder %v560_v22, 0.0  ;;  %v2847_v27 = vpop.f32.mrb[2].mxu1  ;;  %v595_v28 = vsel %vm579_vm2, %v545_v16, %v587_v23  ;;  %v590_v33 = vmul.f32 0.2, %v560_v22  ;;  %v895_v16 = vld [vmem:[%s4398_s2 + $0x10] sm:$0xff] }
 0x11a   : > { %v555_v30 = vadd.f32 %v2841_v26, %v2408_v13  ;;  %v549_v31 = vpop.f32.mrb[3].mxu0  ;;  %v599_v32 = vsel %vm583_vm3, %v565_v18, %v591_v24  ;;  %v569_v34 = vpop.f32.mrb[3].mxu1  ;;  %v608_v35 = vmul.f32 %v3681_v20, %v595_v28  ;;  %v594_v36 = vsel %vm578_vm4, %v540_v21, %v586_v25  ;;  %v913_v21 = vld [vmem:[%s4398_s2 + $0xa0] sm:$0xff]  ;;  %v926_v23 = vld [vmem:[%s4398_s2 + $0x108] sm:$0xff]  ;;  %v943_v25 = vld [vmem:[%s4398_s2 + $0x190] sm:$0xff] }
 0x11b   : > { %v550_v37 = vadd.f32 %v2408_v13, %v549_v31  ;;  %v612_v38 = vmul.f32 %v3681_v20, %v599_v32  ;;  %v607_v39 = vmul.f32 %v3681_v20, %v594_v36  ;;  %v598_v41 = vsel %vm582_vm5, %v560_v22, %v590_v33  ;;  %v925_v22 = vld [vmem:[%s4398_s2 + $0x100] sm:$0xff]  ;;  %v914_v24 = vld [vmem:[%s4398_s2 + $0xa8] sm:$0xff]  ;;  %v944_v26 = vld [vmem:[%s4398_s2 + $0x198] sm:$0xff] }
 0x11c   : > { %vm581_vm6 = vcmp.ge.f32.partialorder %v555_v30, 0.0  ;;  %v589_v40 = vmul.f32 0.2, %v555_v30  ;;  %v621_v42 = vadd.f32 %v3686_v29, %v608_v35  ;;  %v611_v47 = vmul.f32 %v3681_v20, %v598_v41  ;;  %v915_v33 = vld [vmem:[%s4398_s2 + $0xb0] sm:$0xff]  ;;  %v928_v36 = vld [vmem:[%s4398_s2 + $0x118] sm:$0xff] }
 0x11d   : > { %vm580_vm7 = vcmp.ge.f32.partialorder %v550_v37, 0.0  ;;  %v588_v43 = vmul.f32 0.2, %v550_v37  ;;  %v625_v44 = vadd.f32 %v3686_v29, %v612_v38  ;;  %v620_v45 = vadd.f32 %v3686_v29, %v607_v39  ;;  %v927_v35 = vld [vmem:[%s4398_s2 + $0x110] sm:$0xff]  ;;  %v945_v38 = vld [vmem:[%s4398_s2 + $0x1a0] sm:$0xff]  ;;  %v946_v39 = vld [vmem:[%s4398_s2 + $0x1a8] sm:$0xff] }
 0x11e   : > { %v597_v46 = vsel %vm581_vm6, %v555_v30, %v589_v40  ;;  %v575_v48 = vadd.f32 %v2847_v27, %v2408_v13  ;;  %629 = vst [vmem:[%s3695_s15 + $0x8] sm:$0xff] %v621_v42  ;;  %v570_v51 = vadd.f32 %v2408_v13, %v569_v34  ;;  %v624_v54 = vadd.f32 %v3686_v29, %v611_v47  ;;  %v636_v13 = vld [vmem:[%s4400_s4] sm:$0xff]  ;;  %v637_v27 = vld [vmem:[%s4400_s4 + $0x8] sm:$0xff]  ;;  %v638_v40 = vld [vmem:[%s4400_s4 + $0x10] sm:$0xff] }
 0x11f   : > { %v610_v49 = vmul.f32 %v3681_v20, %v597_v46  ;;  %v596_v50 = vsel %vm580_vm7, %v550_v37, %v588_v43  ;;  %633 = vst [vmem:[%s3695_s15 + $0x28] sm:$0xff] %v625_v44  ;;  %628 = vst [vmem:[%s3695_s15] sm:$0xff] %v620_v45  ;;  %v3015_v53 = vpack.c.bf16 %v621_v42, %v620_v45  ;;  %v898_v30 = vld [vmem:[%s4398_s2 + $0x28] sm:$0xff]  ;;  %v916_v37 = vld [vmem:[%s4398_s2 + $0xb8] sm:$0xff] }
 0x120   : > { %v609_v52 = vmul.f32 %v3681_v20, %v596_v50  ;;  %vm585_vm8 = vcmp.ge.f32.partialorder %v575_v48, 0.0  ;;  %v593_v58 = vmul.f32 0.2, %v575_v48  ;;  %vm584_vm9 = vcmp.ge.f32.partialorder %v570_v51, 0.0  ;;  %632 = vst [vmem:[%s3695_s15 + $0x20] sm:$0xff] %v624_v54  ;;  %v899_v42 = vld [vmem:[%s4398_s2 + $0x30] sm:$0xff] }
 0x121   : > { %v623_v57 = vadd.f32 %v3686_v29, %v610_v49  ;;  %v592_v59 = vmul.f32 0.2, %v570_v51  ;;  %3016 = vmatpush3.bf16.msra.mxu1 %v3015_v53  ;;  %v3021_v61 = vpack.c.bf16 %v625_v44, %v624_v54  ;;  %v3058_v18 = vpack.c.bf16 %v942_v7, %v941_v6  ;;  %v900_v43 = vld [vmem:[%s4398_s2 + $0x38] sm:$0xff]  ;;  %v917_v46 = vld [vmem:[%s4398_s2 + $0xc0] sm:$0xff]  ;;  %v930_v49 = vld [vmem:[%s4398_s2 + $0x128] sm:$0xff] }
 0x122   : > { %v622_v60 = vadd.f32 %v3686_v29, %v609_v52  ;;  %3017 = vmatprep.subr.bf16.mxu1 %v3496_v11  ;;  %v601_v62 = vsel %vm585_vm8, %v575_v48, %v593_v58  ;;  %v3032_v28 = vpack.c.bf16 %v896_v17, %v895_v16  ;;  %v3060_v31 = vpack.c.bf16 %v926_v23, %v925_v22  ;;  %v929_v48 = vld [vmem:[%s4398_s2 + $0x120] sm:$0xff]  ;;  %v918_v50 = vld [vmem:[%s4398_s2 + $0xc8] sm:$0xff]  ;;  %v948_v52 = vld [vmem:[%s4398_s2 + $0x1b8] sm:$0xff] }
 0x123   : > { %631 = vst [vmem:[%s3695_s15 + $0x18] sm:$0xff] %v623_v57  ;;  %v600_v63 = vsel %vm584_vm9, %v570_v51, %v592_v59  ;;  %v614_v3 = vmul.f32 %v3681_v20, %v601_v62  ;;  %3022 = vmatpush3.bf16.msra.mxu0 %v3021_v61  ;;  %v3034_v32 = vpack.c.bf16 %v914_v24, %v913_v21  ;;  %v947_v51 = vld [vmem:[%s4398_s2 + $0x1b0] sm:$0xff]  ;;  %v639_v53 = vld [vmem:[%s4400_s4 + $0x18] sm:$0xff]  ;;  %v644_v24 = vld [vmem:[%s4400_s4 + $0x40] sm:$0xff] }
 0x124   : > { %630 = vst [vmem:[%s3695_s15 + $0x10] sm:$0xff] %v622_v60  ;;  %v3018_v2 = vpack.c.bf16 %v623_v57, %v622_v60  ;;  %v613_v4 = vmul.f32 %v3681_v20, %v600_v63  ;;  %3023 = vmatprep.subr.bf16.mxu0 %v3496_v11  ;;  %v3030_v20 = vpack.c.bf16 %v912_v9, %v911_v8  ;;  %v919_v59 = vld [vmem:[%s4398_s2 + $0xd0] sm:$0xff]  ;;  %v932_v62 = vld [vmem:[%s4398_s2 + $0x138] sm:$0xff]  ;;  %v933_v9 = vld [vmem:[%s4398_s2 + $0x140] sm:$0xff] }
 0x125   : > { %v627_v10 = vadd.f32 %v3686_v29, %v614_v3  ;;  %v3062_v34 = vpack.c.bf16 %v944_v26, %v943_v25  ;;  %v3064_v44 = vpack.c.bf16 %v928_v36, %v927_v35  ;;  %v3038_v45 = vpack.c.bf16 %v916_v37, %v915_v33  ;;  %v931_v61 = vld [vmem:[%s4398_s2 + $0x130] sm:$0xff]  ;;  %v920_v63 = vld [vmem:[%s4398_s2 + $0xd8] sm:$0xff]  ;;  %v953_v37 = vld [vmem:[%s4398_s2 + $0x1e0] sm:$0xff] }
 0x126   : > { %3019 = vmatpush3.bf16.msra.mxu1 %v3018_v2  ;;  %v626_v14 = vadd.f32 %v3686_v29, %v613_v4  ;;  %v897_v29 = vld [vmem:[%s4398_s2 + $0x20] sm:$0xff]  ;;  %v3066_v47 = vpack.c.bf16 %v946_v39, %v945_v38  ;;  %v3040_v54 = vpack.c.bf16 %v900_v43, %v899_v42  ;;  %v3068_v57 = vpack.c.bf16 %v930_v49, %v929_v48  ;;  %v903_v4 = vld [vmem:[%s4398_s2 + $0x50] sm:$0xff]  ;;  %v904_v7 = vld [vmem:[%s4398_s2 + $0x58] sm:$0xff] }
 0x127   : > { %3027 = vmatprep.subr.bf16.mxu1 %v3026_v0  ;;  %635 = vst [vmem:[%s3695_s15 + $0x38] sm:$0xff] %v627_v10  ;;  %v3036_v41 = vpack.c.bf16 %v898_v30, %v897_v29  ;;  %v3042_v58 = vpack.c.bf16 %v918_v50, %v917_v46  ;;  %v3070_v60 = vpack.c.bf16 %v948_v52, %v947_v51  ;;  %v949_v0 = vld [vmem:[%s4398_s2 + $0x1c0] sm:$0xff]  ;;  %v642_v21 = vld [vmem:[%s4400_s4 + $0x30] sm:$0xff]  ;;  %v643_v23 = vld [vmem:[%s4400_s4 + $0x38] sm:$0xff] }
 0x128   : > { %634 = vst [vmem:[%s3695_s15 + $0x30] sm:$0xff] %v626_v14  ;;  %v3024_v19 = vpack.c.bf16 %v627_v10, %v626_v14  ;;  %v640_v2 = vld [vmem:[%s4400_s4 + $0x20] sm:$0xff]  ;;  %v3044_v3 = vpack.c.bf16 %v902_v56, %v901_v55  ;;  %v3072_v5 = vpack.c.bf16 %v932_v62, %v931_v61  ;;  %v3046_v6 = vpack.c.bf16 %v920_v63, %v919_v59  ;;  %v934_v10 = vld [vmem:[%s4398_s2 + $0x148] sm:$0xff]  ;;  %v923_v25 = vld [vmem:[%s4398_s2 + $0xf0] sm:$0xff]  ;;  %s4267_s15 = scalar_lea.vmem [#allocation5], %s2401_s29 }
 0x129   : > { %2857 = vmatmul.mubr.msk.f32.vlgmr.msra.gmra.mrb[4].mxu1 %vm645_vm10, %v636_v13  ;;  %v3074_v8 = vpack.c.bf16 %v950_v1, %v949_v0  ;;  %v922_v14 = vld [vmem:[%s4398_s2 + $0xe8] sm:$0xff]  ;;  %v3048_v16 = vpack.c.bf16 %v904_v7, %v903_v4  ;;  %v3076_v17 = vpack.c.bf16 %v934_v10, %v933_v9  ;;  %v924_v26 = vld [vmem:[%s4398_s2 + $0xf8] sm:$0xff]  ;;  %v907_v30 = vld [vmem:[%s4398_s2 + $0x70] sm:$0xff]  ;;  %s2242_s30 = sshll.u32 %s4267_s15, 4  ;;  %s4344_s30 = int_to_ptr.vmem [resolvable:$true] %s2242_s30 }
 0x12a   : > { %2859 = vmatprep.mubr.msk.f32.mxu1 %vm3497_vm1, %v3498_v12  ;;  %3025 = vmatpush3.bf16.msra.mxu0 %v3024_v19  ;;  %v905_v19 = vld [vmem:[%s4398_s2 + $0x60] sm:$0xff]  ;;  %v952_v29 = vld [vmem:[%s4398_s2 + $0x1d8] sm:$0xff]  ;;  %v954_v38 = vld [vmem:[%s4398_s2 + $0x1e8] sm:$0xff]  ;;  %s3425_s12 = scalar_lea.vmem %s4344_s30, 256 }
 0x12b   : > { %3029 = vmatpush3.bf16.msra.mxu1 %v3028_v15  ;;  %3059 = vmatprep.subr.bf16.mxu0 %v3058_v18  ;;  %v641_v15 = vld [vmem:[%s4400_s4 + $0x28] sm:$0xff]  ;;  %v936_v35 = vld [vmem:[%s4398_s2 + $0x158] sm:$0xff]  ;;  %v973_v39 = vld [vmem:[%s4398_s2 + $0x280] sm:$0xff]  ;;  %p3426_p6 = scmp.ne.s32.totalorder %s4344_s30, %s3425_s12 }
 0x12c   : > { %3031 = vmatprep.subr.bf16.mxu1 %v3030_v20  ;;  %v906_v20 = vld [vmem:[%s4398_s2 + $0x68] sm:$0xff]  ;;  %v937_v42 = vld [vmem:[%s4398_s2 + $0x160] sm:$0xff]  ;;  %v955_v46 = vld [vmem:[%s4398_s2 + $0x1f0] sm:$0xff] }
 0x12d   : > { %2860 = vmatmul.mubr.msk.f32.gmra.mrb[6].mxu1 %vm645_vm10, %v637_v27  ;;  %2892 = vmatmul.mubr.msk.f32.vlgmr.msra.gmra.mrb[4].mxu0 %vm645_vm10, %v636_v13  ;;  %v921_v13 = vld [vmem:[%s4398_s2 + $0xe0] sm:$0xff]  ;;  %v3052_v22 = vpack.c.bf16 %v906_v20, %v905_v19  ;;  %v938_v43 = vld [vmem:[%s4398_s2 + $0x168] sm:$0xff]  ;;  %v939_v49 = vld [vmem:[%s4398_s2 + $0x170] sm:$0xff]  ;;  %p3427_p10 = pnand %p3426_p6, %p4423_p9 }
 0x12e   : > { %2862 = vmatprep.mubr.msk.f32.mxu1 %vm3497_vm1, %v3498_v12  ;;  %2894 = vmatprep.mubr.msk.f32.mxu0 %vm3497_vm1, %v3498_v12  ;;  %v3050_v18 = vpack.c.bf16 %v922_v14, %v921_v13  ;;  %v940_v50 = vld [vmem:[%s4398_s2 + $0x178] sm:$0xff]  ;;  %v1005_v52 = vld [vmem:[%s4398_s2 + $0x380] sm:$0xff]  ;;  %v975_v59 = vld [vmem:[%s4398_s2 + $0x290] sm:$0xff] }
 0x12f   : > { %3033 = vmatpush3.bf16.msra.mxu1 %v3032_v28  ;;  %3061 = vmatpush3.bf16.msra.mxu0 %v3060_v31  ;;  %v3054_v28 = vpack.c.bf16 %v924_v26, %v923_v25  ;;  %v908_v31 = vld [vmem:[%s4398_s2 + $0x78] sm:$0xff]  ;;  %v3088_v51 = vpack.c.bf16 %v940_v50, %v939_v49  ;;  %v957_v56 = vld [vmem:[%s4398_s2 + $0x200] sm:$0xff]  ;;  %v959_v0 = vld [vmem:[%s4398_s2 + $0x210] sm:$0xff]  ;;  %p3428_p12 = pneg %p3427_p10 }
 0x130   : > { %3035 = vmatprep.subr.bf16.mxu1 %v3034_v32  ;;  %3063 = vmatprep.subr.bf16.mxu0 %v3062_v34  ;;  %v3056_v33 = vpack.c.bf16 %v908_v31, %v907_v30  ;;  %v935_v34 = vld [vmem:[%s4398_s2 + $0x150] sm:$0xff]  ;;  %v960_v1 = vld [vmem:[%s4398_s2 + $0x218] sm:$0xff]  ;;  %v977_v4 = vld [vmem:[%s4398_s2 + $0x2a0] sm:$0xff] }
 0x131   : > { %2863 = vmatmul.mubr.msk.f32.gmra.mrb[8].mxu1 %vm645_vm10, %v638_v40  ;;  %2895 = vmatmul.mubr.msk.f32.gmra.mrb[6].mxu0 %vm645_vm10, %v637_v27  ;;  %v951_v27 = vld [vmem:[%s4398_s2 + $0x1d0] sm:$0xff]  ;;  %v3080_v36 = vpack.c.bf16 %v936_v35, %v935_v34  ;;  %v3096_v7 = vpack.c.bf16 %v960_v1, %v959_v0  ;;  %v962_v9 = vld [vmem:[%s4398_s2 + $0x228] sm:$0xff]  ;;  %v989_v14 = vld [vmem:[%s4398_s2 + $0x300] sm:$0xff] }
 0x132   : > { %2865 = vmatprep.mubr.msk.f32.mxu1 %vm3497_vm1, %v3498_v12  ;;  %2897 = vmatprep.mubr.msk.f32.mxu0 %vm3497_vm1, %v3498_v12  ;;  %v3078_v32 = vpack.c.bf16 %v952_v29, %v951_v27  ;;  %v980_v19 = vld [vmem:[%s4398_s2 + $0x2b8] sm:$0xff]  ;;  %v1007_v20 = vld [vmem:[%s4398_s2 + $0x390] sm:$0xff]  ;;  %v982_v34 = vld [vmem:[%s4398_s2 + $0x2c8] sm:$0xff] }
 0x133   : > { %3037 = vmatpush3.bf16.msra.mxu1 %v3036_v41  ;;  %3065 = vmatpush3.bf16.msra.mxu0 %v3064_v44  ;;  %v974_v41 = vld [vmem:[%s4398_s2 + $0x288] sm:$0xff]  ;;  %v963_v25 = vld [vmem:[%s4398_s2 + $0x230] sm:$0xff]  ;;  %v964_v26 = vld [vmem:[%s4398_s2 + $0x238] sm:$0xff] }
 0x134   : > { %3039 = vmatprep.subr.bf16.mxu1 %v3038_v45  ;;  %3067 = vmatprep.subr.bf16.mxu0 %v3066_v47  ;;  %v3090_v44 = vpack.c.bf16 %v974_v41, %v973_v39  ;;  %v3084_v45 = vpack.c.bf16 %v938_v43, %v937_v42  ;;  %v956_v47 = vld [vmem:[%s4398_s2 + $0x1f8] sm:$0xff]  ;;  %v991_v30 = vld [vmem:[%s4398_s2 + $0x310] sm:$0xff]  ;;  %v1009_v35 = vld [vmem:[%s4398_s2 + $0x3a0] sm:$0xff]  ;;  %v3104_v39 = vpack.c.bf16 %v964_v26, %v963_v25 }
 0x135   : > { %2866 = vmatmul.mubr.msk.f32.gmra.mrb[10].mxu1 %vm645_vm10, %v639_v53  ;;  %2898 = vmatmul.mubr.msk.f32.gmra.mrb[8].mxu0 %vm645_vm10, %v638_v40  ;;  %v3082_v40 = vpack.c.bf16 %v954_v38, %v953_v37  ;;  %v3086_v48 = vpack.c.bf16 %v956_v47, %v955_v46  ;;  %v992_v31 = vld [vmem:[%s4398_s2 + $0x318] sm:$0xff]  ;;  %v965_v41 = vld [vmem:[%s4398_s2 + $0x240] sm:$0xff]  ;;  %v966_v42 = vld [vmem:[%s4398_s2 + $0x248] sm:$0xff] }
 0x136   : > { %2900 = vmatprep.mubr.msk.f32.mxu0 %vm3497_vm1, %v3498_v12  ;;  %2868 = vmatprep.mubr.msk.f32.mxu1 %vm3497_vm1, %v3498_v12  ;;  %v994_v46 = vld [vmem:[%s4398_s2 + $0x328] sm:$0xff]  ;;  %v983_v47 = vld [vmem:[%s4398_s2 + $0x2d0] sm:$0xff]  ;;  %v984_v50 = vld [vmem:[%s4398_s2 + $0x2d8] sm:$0xff] }
 0x137   : > { %3041 = vmatpush3.bf16.msra.mxu1 %v3040_v54  ;;  %3069 = vmatpush3.bf16.msra.mxu0 %v3068_v57  ;;  %v958_v57 = vld [vmem:[%s4398_s2 + $0x208] sm:$0xff] }
 0x138   : > { %3043 = vmatprep.subr.bf16.mxu1 %v3042_v58  ;;  %3071 = vmatprep.subr.bf16.mxu0 %v3070_v60  ;;  %v976_v60 = vld [vmem:[%s4398_s2 + $0x298] sm:$0xff]  ;;  %v3092_v61 = vpack.c.bf16 %v958_v57, %v957_v56  ;;  %v967_v57 = vld [vmem:[%s4398_s2 + $0x250] sm:$0xff] }
 0x139   : > { %2901 = vmatmul.mubr.msk.f32.gmra.mrb[10].mxu0 %vm645_vm10, %v639_v53  ;;  %2869 = vmatmul.mubr.msk.f32.gmra.mrb[12].mxu1 %vm645_vm10, %v640_v2  ;;  %v1006_v53 = vld [vmem:[%s4398_s2 + $0x388] sm:$0xff]  ;;  %v3094_v63 = vpack.c.bf16 %v976_v60, %v975_v59  ;;  %v3110_v59 = vpack.c.bf16 %v984_v50, %v983_v47  ;;  %v1019_v50 = vld [vmem:[%s4398_s2 + $0x3f0] sm:$0xff] }
 0x13a   : > { %2871 = vmatprep.mubr.msk.f32.mxu1 %vm3497_vm1, %v3498_v12  ;;  %2903 = vmatprep.mubr.msk.f32.mxu0 %vm3497_vm1, %v3498_v12  ;;  %v3122_v54 = vpack.c.bf16 %v1006_v53, %v1005_v52  ;;  %v1012_v52 = vld [vmem:[%s4398_s2 + $0x3b8] sm:$0xff] }
 0x13b   : > { %3045 = vmatpush3.bf16.msra.mxu1 %v3044_v3  ;;  %3073 = vmatpush3.bf16.msra.mxu0 %v3072_v5  ;;  %v978_v5 = vld [vmem:[%s4398_s2 + $0x2a8] sm:$0xff] }
 0x13c   : > { %3047 = vmatprep.subr.bf16.mxu1 %v3046_v6  ;;  %3075 = vmatprep.subr.bf16.mxu0 %v3074_v8  ;;  %v961_v8 = vld [vmem:[%s4398_s2 + $0x220] sm:$0xff]  ;;  %v3098_v13 = vpack.c.bf16 %v978_v5, %v977_v4  ;;  %v1014_v4 = vld [vmem:[%s4398_s2 + $0x3c8] sm:$0xff] }
 0x13d   : > { %2872 = vmatmul.mubr.msk.f32.gmra.mrb[14].mxu1 %vm645_vm10, %v641_v15  ;;  %2904 = vmatmul.mubr.msk.f32.gmra.mrb[12].mxu0 %vm645_vm10, %v640_v2 }
 0x13e   : > { %2874 = vmatprep.mubr.msk.f32.mxu1 %vm3497_vm1, %v3498_v12  ;;  %2906 = vmatprep.mubr.msk.f32.mxu0 %vm3497_vm1, %v3498_v12 }
 0x13f   : > { %3049 = vmatpush3.bf16.msra.mxu1 %v3048_v16  ;;  %3077 = vmatpush3.bf16.msra.mxu0 %v3076_v17  ;;  %v979_v16 = vld [vmem:[%s4398_s2 + $0x2b0] sm:$0xff] }
 0x140   : > { %3051 = vmatprep.subr.bf16.mxu1 %v3050_v18  ;;  %3079 = vmatprep.subr.bf16.mxu0 %v3078_v32  ;;  %v981_v32 = vld [vmem:[%s4398_s2 + $0x2c0] sm:$0xff] }
 0x141   : > { %2875 = vmatmul.mubr.msk.f32.gmra.mrb[16].mxu1 %vm645_vm10, %v642_v21  ;;  %2907 = vmatmul.mubr.msk.f32.gmra.mrb[14].mxu0 %vm645_vm10, %v641_v15  ;;  %v990_v15 = vld [vmem:[%s4398_s2 + $0x308] sm:$0xff]  ;;  %v3106_v43 = vpack.c.bf16 %v982_v34, %v981_v32  ;;  %v1000_v32 = vld [vmem:[%s4398_s2 + $0x358] sm:$0xff] }
 0x142   : > { %2877 = vmatprep.mubr.msk.f32.mxu1 %vm3497_vm1, %v3498_v12  ;;  %2909 = vmatprep.mubr.msk.f32.mxu0 %vm3497_vm1, %v3498_v12 }
 0x143   : > { %3053 = vmatpush3.bf16.msra.mxu1 %v3052_v22  ;;  %3081 = vmatpush3.bf16.msra.mxu0 %v3080_v36  ;;  %v1010_v36 = vld [vmem:[%s4398_s2 + $0x3a8] sm:$0xff] }
 0x144   : > { %3055 = vmatprep.subr.bf16.mxu1 %v3054_v28  ;;  %3083 = vmatprep.subr.bf16.mxu0 %v3082_v40  ;;  %v3102_v28 = vpack.c.bf16 %v980_v19, %v979_v16  ;;  %v3128_v40 = vpack.c.bf16 %v992_v31, %v991_v30  ;;  %v998_v16 = vld [vmem:[%s4398_s2 + $0x348] sm:$0xff]  ;;  %v999_v31 = vld [vmem:[%s4398_s2 + $0x350] sm:$0xff] }
 0x145   : > { %2878 = vmatmul.mubr.msk.f32.gmra.mrb[18].mxu1 %vm645_vm10, %v643_v23  ;;  %2910 = vmatmul.mubr.msk.f32.gmra.mrb[16].mxu0 %vm645_vm10, %v642_v21  ;;  %v1008_v21 = vld [vmem:[%s4398_s2 + $0x398] sm:$0xff] }
 0x146   : > { %2912 = vmatprep.mubr.msk.f32.mxu0 %vm3497_vm1, %v3498_v12  ;;  %2880 = vmatprep.mubr.msk.f32.mxu1 %vm3497_vm1, %v3498_v12  ;;  %v3126_v29 = vpack.c.bf16 %v1008_v21, %v1007_v20  ;;  %v988_v20 = vld [vmem:[%s4398_s2 + $0x2f8] sm:$0xff]  ;;  %v1015_v21 = vld [vmem:[%s4398_s2 + $0x3d0] sm:$0xff] }
 0x147   : > { %3057 = vmatpush3.bf16.msra.mxu1 %v3056_v33  ;;  %3085 = vmatpush3.bf16.msra.mxu0 %v3084_v45  ;;  %v993_v45 = vld [vmem:[%s4398_s2 + $0x320] sm:$0xff] }
 0x148   : > { %3091 = vmatprep.subr.bf16.mxu1 %v3090_v44  ;;  %3087 = vmatprep.subr.bf16.mxu0 %v3086_v48  ;;  %v3130_v44 = vpack.c.bf16 %v1010_v36, %v1009_v35  ;;  %v3132_v56 = vpack.c.bf16 %v994_v46, %v993_v45  ;;  %v1018_v36 = vld [vmem:[%s4398_s2 + $0x3e8] sm:$0xff]  ;;  %v1001_v45 = vld [vmem:[%s4398_s2 + $0x360] sm:$0xff] }
 0x149   : > { %2913 = vmatmul.mubr.msk.f32.gmra.mrb[18].mxu0 %vm645_vm10, %v643_v23  ;;  %2881 = vmatmul.mubr.msk.f32.gmra.mrb[20].mxu1 %vm645_vm10, %v644_v24  ;;  %v3100_v23 = vpack.c.bf16 %v962_v9, %v961_v8  ;;  %v969_v9 = vld [vmem:[%s4398_s2 + $0x260] sm:$0xff]  ;;  %v1002_v46 = vld [vmem:[%s4398_s2 + $0x368] sm:$0xff] }
 0x14a   : > { %2915 = vmatprep.mubr.msk.f32.mxu0 %vm3497_vm1, %v3498_v12 }
 0x14b   : > { %3089 = vmatpush3.bf16.msra.mxu0 %v3088_v51  ;;  %v1011_v51 = vld [vmem:[%s4398_s2 + $0x3b0] sm:$0xff] }
 0x14c   : > { %3123 = vmatprep.subr.bf16.mxu0 %v3122_v54  ;;  %v3134_v60 = vpack.c.bf16 %v1012_v52, %v1011_v51  ;;  %v1020_v51 = vld [vmem:[%s4398_s2 + $0x3f8] sm:$0xff] }
 0x14d   : > { %2916 = vmatmul.mubr.msk.f32.gmra.mrb[20].mxu0 %vm645_vm10, %v644_v24  ;;  %v3124_v24 = vpack.c.bf16 %v990_v15, %v989_v14  ;;  %v997_v15 = vld [vmem:[%s4398_s2 + $0x340] sm:$0xff] }
 0x14e   : > { %v3140_v26 = vpack.c.bf16 %v998_v16, %v997_v15  ;;  %v1035_v16 = vld [vmem:[%s4398_s2 + $0x470] sm:$0xff] }
 0x1fc   : > { %v739_v55 = vpop.f32.mrb[4].mxu1 }
 0x1fd   : > { %v2858_v58 = vpop.f32.mrb[5].mxu1 }
 0x1fe   : > { %v968_v58 = vld [vmem:[%s4398_s2 + $0x258] sm:$0xff] }
 0x200   : > { %v744_v62 = vpop.f32.mrb[6].mxu1  ;;  %v849_v2 = vpop.f32.mrb[4].mxu0 }
 0x201   : > { %v2861_v3 = vpop.f32.mrb[7].mxu1  ;;  %1106 = vmatprep.mubr.f32.mxu1 %v744_v62  ;;  %v2893_v6 = vpop.f32.mrb[5].mxu0  ;;  %v996_v62 = vld [vmem:[%s4398_s2 + $0x338] sm:$0xff] }
 0x202   : > { %1107 = vmatmul.mubr.f32.vlgmr.msra.gmra.mrb[22].mxu1 %v739_v55  ;;  %v3108_v55 = vpack.c.bf16 %v966_v42, %v965_v41  ;;  %v1013_v3 = vld [vmem:[%s4398_s2 + $0x3c0] sm:$0xff]  ;;  %v3144_v42 = vpack.c.bf16 %v1000_v32, %v999_v31 }
 0x203   : > { %3093 = vmatpush3.bf16.msra.mxu1 %v3092_v61  ;;  %v995_v61 = vld [vmem:[%s4398_s2 + $0x330] sm:$0xff]  ;;  %v3138_v14 = vpack.c.bf16 %v1014_v4, %v1013_v3 }
 0x204   : > { %3095 = vmatprep.subr.bf16.mxu1 %v3094_v63  ;;  %v749_v10 = vpop.f32.mrb[8].mxu1  ;;  %v854_v17 = vpop.f32.mrb[6].mxu0  ;;  %v985_v63 = vld [vmem:[%s4398_s2 + $0x2e0] sm:$0xff]  ;;  %v3136_v8 = vpack.c.bf16 %v996_v62, %v995_v61  ;;  %v1027_v4 = vld [vmem:[%s4398_s2 + $0x430] sm:$0xff] }
 0x205   : > { %v2864_v18 = vpop.f32.mrb[9].mxu1  ;;  %v2896_v22 = vpop.f32.mrb[7].mxu0  ;;  %1111 = vmatprep.mubr.f32.mxu1 %v854_v17  ;;  %v987_v17 = vld [vmem:[%s4398_s2 + $0x2f0] sm:$0xff]  ;;  %v1025_v62 = vld [vmem:[%s4398_s2 + $0x420] sm:$0xff] }
 0x206   : > { %1112 = vmatmul.mubr.f32.gmra.mrb[24].mxu1 %v849_v2  ;;  %v986_v2 = vld [vmem:[%s4398_s2 + $0x2e8] sm:$0xff]  ;;  %v1016_v22 = vld [vmem:[%s4398_s2 + $0x3d8] sm:$0xff] }
 0x207   : > { %3097 = vmatpush3.bf16.msra.mxu1 %v3096_v7  ;;  %v3112_v7 = vpack.c.bf16 %v968_v58, %v967_v57  ;;  %v3142_v30 = vpack.c.bf16 %v1016_v22, %v1015_v21  ;;  %v3150_v57 = vpack.c.bf16 %v1020_v51, %v1019_v50  ;;  %v1003_v58 = vld [vmem:[%s4398_s2 + $0x370] sm:$0xff] }
 0x208   : > { %v754_v27 = vpop.f32.mrb[10].mxu1  ;;  %3099 = vmatprep.subr.bf16.mxu1 %v3098_v13  ;;  %v859_v33 = vpop.f32.mrb[8].mxu0  ;;  %v3114_v13 = vpack.c.bf16 %v986_v2, %v985_v63  ;;  %v1026_v63 = vld [vmem:[%s4398_s2 + $0x428] sm:$0xff] }
 0x209   : > { %1181 = vmatprep.mubr.f32.mxu0 %v754_v27  ;;  %v2867_v37 = vpop.f32.mrb[11].mxu1  ;;  %v2899_v38 = vpop.f32.mrb[9].mxu0  ;;  %v971_v27 = vld [vmem:[%s4398_s2 + $0x270] sm:$0xff]  ;;  %v3162_v3 = vpack.c.bf16 %v1026_v63, %v1025_v62 }
 0x20a   : > { %1182 = vmatmul.mubr.f32.vlgmr.msra.gmra.mrb[22].mxu0 %v749_v10  ;;  %v970_v10 = vld [vmem:[%s4398_s2 + $0x268] sm:$0xff]  ;;  %v1021_v37 = vld [vmem:[%s4398_s2 + $0x400] sm:$0xff] }
 0x20b   : > { %3101 = vmatpush3.bf16.msra.mxu1 %v3100_v23  ;;  %3125 = vmatpush3.bf16.msra.mxu0 %v3124_v24  ;;  %v3116_v25 = vpack.c.bf16 %v970_v10, %v969_v9  ;;  %v1022_v38 = vld [vmem:[%s4398_s2 + $0x408] sm:$0xff]  ;;  %v1032_v9 = vld [vmem:[%s4398_s2 + $0x458] sm:$0xff] }
 0x20c   : > { %3103 = vmatprep.subr.bf16.mxu1 %v3102_v28  ;;  %3127 = vmatprep.subr.bf16.mxu0 %v3126_v29  ;;  %v864_v48 = vpop.f32.mrb[10].mxu0  ;;  %v4090_v49 = vpop.f32.mrb[12].mxu1  ;;  %v972_v28 = vld [vmem:[%s4398_s2 + $0x278] sm:$0xff]  ;;  %v3118_v29 = vpack.c.bf16 %v988_v20, %v987_v17 }
 0x20d   : > { %1186 = vmatprep.mubr.f32.mxu0 %v864_v48  ;;  %v2870_v53 = vpop.f32.mrb[13].mxu1  ;;  %v2902_v54 = vpop.f32.mrb[11].mxu0  ;;  %v3120_v41 = vpack.c.bf16 %v972_v28, %v971_v27  ;;  %v1036_v17 = vld [vmem:[%s4398_s2 + $0x478] sm:$0xff] }
 0x20e   : > { %1187 = vmatmul.mubr.f32.gmra.mrb[24].mxu0 %v859_v33  ;;  %v1017_v33 = vld [vmem:[%s4398_s2 + $0x3e0] sm:$0xff]  ;;  %v1023_v54 = vld [vmem:[%s4398_s2 + $0x410] sm:$0xff] }
 0x20f   : > { %3105 = vmatpush3.bf16.msra.mxu1 %v3104_v39  ;;  %3129 = vmatpush3.bf16.msra.mxu0 %v3128_v40 }
 0x210   : > { %3107 = vmatprep.subr.bf16.mxu1 %v3106_v43  ;;  %3131 = vmatprep.subr.bf16.mxu0 %v3130_v44  ;;  %v764_v0 = vpop.f32.mrb[14].mxu1  ;;  %v4116_v1 = vpop.f32.mrb[12].mxu0  ;;  %v3146_v43 = vpack.c.bf16 %v1018_v36, %v1017_v33  ;;  %v3154_v44 = vpack.c.bf16 %v1022_v38, %v1021_v37 }
 0x211   : > { %v2873_v5 = vpop.f32.mrb[15].mxu1  ;;  %1256 = vmatprep.mubr.f32.mxu1 %v764_v0  ;;  %v2905_v6 = vpop.f32.mrb[13].mxu0 }
 0x212   : > { %v1028_v5 = vld [vmem:[%s4398_s2 + $0x438] sm:$0xff]  ;;  %v1029_v6 = vld [vmem:[%s4398_s2 + $0x440] sm:$0xff] }
 0x213   : > { %3109 = vmatpush3.bf16.msra.mxu1 %v3108_v55  ;;  %3133 = vmatpush3.bf16.msra.mxu0 %v3132_v56  ;;  %v1024_v55 = vld [vmem:[%s4398_s2 + $0x418] sm:$0xff]  ;;  %v3148_v56 = vpack.c.bf16 %v1002_v46, %v1001_v45 }
 0x214   : > { %3111 = vmatprep.subr.bf16.mxu1 %v3110_v59  ;;  %3135 = vmatprep.subr.bf16.mxu0 %v3134_v60  ;;  %v4142_v18 = vpop.f32.mrb[14].mxu0  ;;  %v4144_v19 = vpop.f32.mrb[16].mxu1  ;;  %v1004_v59 = vld [vmem:[%s4398_s2 + $0x378] sm:$0xff]  ;;  %v3158_v61 = vpack.c.bf16 %v1024_v55, %v1023_v54 }
 0x215   : > { %v2876_v23 = vpop.f32.mrb[17].mxu1  ;;  %v2908_v24 = vpop.f32.mrb[15].mxu0  ;;  %v3152_v2 = vpack.c.bf16 %v1004_v59, %v1003_v58  ;;  %v2438_v58 = vld [vmem:[%s4402_s6 + $0x4] ss:$0 sm:$0xff] }
 0x217   : > { %3113 = vmatpush3.bf16.msra.mxu1 %v3112_v7  ;;  %3137 = vmatpush3.bf16.msra.mxu0 %v3136_v8  ;;  %v1030_v7 = vld [vmem:[%s4398_s2 + $0x448] sm:$0xff]  ;;  %v1031_v8 = vld [vmem:[%s4398_s2 + $0x450] sm:$0xff] }
 0x218   : > { %3115 = vmatprep.subr.bf16.mxu1 %v3114_v13  ;;  %3139 = vmatprep.subr.bf16.mxu0 %v3138_v14  ;;  %v774_v34 = vpop.f32.mrb[18].mxu1  ;;  %v4170_v35 = vpop.f32.mrb[16].mxu0  ;;  %v3174_v10 = vpack.c.bf16 %v1032_v9, %v1031_v8  ;;  %v1033_v13 = vld [vmem:[%s4398_s2 + $0x460] sm:$0xff]  ;;  %v1034_v14 = vld [vmem:[%s4398_s2 + $0x468] sm:$0xff] }
 0x219   : > { %1331 = vmatprep.mubr.f32.mxu0 %v774_v34  ;;  %v2911_v39 = vpop.f32.mrb[17].mxu0  ;;  %v2879_v40 = vpop.f32.mrb[19].mxu1  ;;  %v3178_v15 = vpack.c.bf16 %v1034_v14, %v1033_v13  ;;  %v1693_v8 = vld [vmem:[#allocation2 + $0x100] sm:$0xff]  ;;  %v1694_v9 = vld [vmem:[#allocation2 + $0x108] sm:$0xff] }
 0x21b   : > { %3117 = vmatpush3.bf16.msra.mxu1 %v3116_v25  ;;  %3141 = vmatpush3.bf16.msra.mxu0 %v3140_v26  ;;  %v2437_v25 = vld [vmem:[%s4402_s6 + $0x3] ss:$0 sm:$0xff] }
 0x21c   : > { %3119 = vmatprep.subr.bf16.mxu1 %v3118_v29  ;;  %3143 = vmatprep.subr.bf16.mxu0 %v3142_v30  ;;  %v884_v47 = vpop.f32.mrb[18].mxu0  ;;  %v779_v48 = vpop.f32.mrb[20].mxu1 }
 0x21d   : > { %v2914_v52 = vpop.f32.mrb[19].mxu0  ;;  %v2882_v53 = vpop.f32.mrb[21].mxu1 }
 0x21f   : > { %3121 = vmatpush3.bf16.msra.mxu1 %v3120_v41  ;;  %3145 = vmatpush3.bf16.msra.mxu0 %v3144_v42 }
 0x220   : > { %3147 = vmatprep.subr.bf16.mxu0 %v3146_v43  ;;  %3155 = vmatprep.subr.bf16.mxu1 %v3154_v44  ;;  %v889_v60 = vpop.f32.mrb[20].mxu0 }
 0x221   : > { %v2917_v0 = vpop.f32.mrb[21].mxu0 }
 0x222   : > { %1257 = vmatmul.mubr.f32.vlgmr.msra.gmra.mrb[26].mxu1 %v4090_v49  ;;  %v3166_v49 = vpack.c.bf16 %v1028_v5, %v1027_v4  ;;  %v1677_v0 = vld [vmem:[#allocation2 + $0x80] sm:$0xff]  ;;  %v1662_v5 = vld [vmem:[#allocation2 + $0x8] sm:$0xff] }
 0x223   : > { %3149 = vmatpush3.bf16.msra.mxu0 %v3148_v56  ;;  %3157 = vmatpush3.bf16.msra.mxu1 %v3154_v44 }
 0x224   : > { %1261 = vmatprep.mubr.f32.mxu1 %v4142_v18  ;;  %3151 = vmatprep.subr.bf16.mxu0 %v3150_v57  ;;  %v3182_v18 = vpack.c.bf16 %v1036_v17, %v1035_v16  ;;  %v1679_v16 = vld [vmem:[#allocation2 + $0x90] sm:$0xff]  ;;  %v1680_v17 = vld [vmem:[#allocation2 + $0x98] sm:$0xff] }
 0x225   : > { %3159 = vmatprep.subr.bf16.mxu1 %v3158_v61 }
 0x226   : > { %1262 = vmatmul.mubr.f32.gmra.mrb[28].mxu1 %v4116_v1  ;;  %v3170_v1 = vpack.c.bf16 %v1030_v7, %v1029_v6  ;;  %v1710_v6 = vld [vmem:[#allocation2 + $0x188] sm:$0xff] }
 0x227   : > { %3153 = vmatpush3.bf16.msra.mxu0 %v3152_v2  ;;  %3161 = vmatpush3.bf16.msra.mxu1 %v3158_v61  ;;  %v2439_v61 = vld [vmem:[%s4402_s6 + $0x5] ss:$0 sm:$0xff]  ;;  %v1678_v2 = vld [vmem:[#allocation2 + $0x88] sm:$0xff] }
 0x228   : > { %3163 = vmatprep.subr.bf16.mxu1 %v3162_v3  ;;  %2950 = vmatprep.mubr.f32.mxu1 %v779_v48  ;;  %v3186_v13 = vpack.c.bf16 %v1678_v2, %v1677_v0  ;;  %v1702_v2 = vld [vmem:[#allocation2 + $0x148] sm:$0xff] }
 0x229   : > { %2964 = vmatprep.subr.mxu0 %v3498_v12 }
 0x22a   : > { %1332 = vmatmul.mubr.f32.vlgmr.msra.gmra.mrb[26].mxu0 %v4144_v19 }
 0x22b   : > { %3165 = vmatpush3.bf16.msra.mxu1 %v3162_v3  ;;  %1336 = vmatprep.mubr.f32.mxu0 %v884_v47  ;;  %v1661_v3 = vld [vmem:[#allocation2] sm:$0xff] }
 0x22c   : > { %3167 = vmatprep.subr.bf16.mxu1 %v3166_v49  ;;  %v3188_v14 = vpack.c.bf16 %v1662_v5, %v1661_v3  ;;  %v1687_v3 = vld [vmem:[#allocation2 + $0xd0] sm:$0xff] }
 0x22d   : > { %v1719_v5 = vld [vmem:[#allocation2 + $0x1d0] sm:$0xff] }
 0x22e   : > { %1337 = vmatmul.mubr.f32.gmra.mrb[28].mxu0 %v4170_v35 }
 0x22f   : > { %3169 = vmatpush3.bf16.msra.mxu1 %v3166_v49  ;;  %2966 = vmatprep.mubr.msk.f32.mxu0 %vm3497_vm1, %v3498_v12  ;;  %v1709_v49 = vld [vmem:[#allocation2 + $0x180] sm:$0xff] }
 0x230   : > { %3171 = vmatprep.subr.bf16.mxu1 %v3170_v1 }
 0x233   : > { %3173 = vmatpush3.bf16.msra.mxu1 %v3170_v1  ;;  %v1439_v1 = vld [vmem:[%s4401_s5] sm:$0xff] }
 0x234   : > { %3175 = vmatprep.subr.bf16.mxu1 %v3174_v10 }
 0x237   : > { %3177 = vmatpush3.bf16.msra.mxu1 %v3174_v10 }
 0x238   : > { %3179 = vmatprep.subr.bf16.mxu1 %v3178_v15 }
 0x23b   : > { %3181 = vmatpush3.bf16.msra.mxu1 %v3178_v15  ;;  %v3218_v15 = vpack.c.bf16 %v1710_v6, %v1709_v49  ;;  %v1720_v49 = vld [vmem:[#allocation2 + $0x1d8] sm:$0xff] }
 0x23c   : > { %3183 = vmatprep.subr.bf16.mxu1 %v3182_v18 }
 0x23f   : > { %3185 = vmatpush3.bf16.msra.mxu1 %v3182_v18  ;;  %v1663_v18 = vld [vmem:[#allocation2 + $0x10] sm:$0xff] }
 0x240   : > { %2953 = vmatprep.subr.mxu1 %v3498_v12 }
 0x242   : > { %2951 = vmatmul.mubr.f32.vlgmr.msra.gmra.mrb[30].mxu1 %v889_v60 }
 0x243   : > { %2955 = vmatprep.mubr.msk.f32.mxu1 %vm3497_vm1, %v3498_v12 }
 0x2d5   : > { %v2529_v19 = vpop.f32.mrb[22].mxu1 }
 0x2d6   : > { %v2530_v20 = vpop.f32.mrb[23].mxu1 }
 0x2d7   : > { %v2531_v21 = vadd.f32 %v2530_v20, %v2529_v19  ;;  %v3220_v19 = vpack.c.bf16 %v1694_v9, %v1693_v8  ;;  %v1664_v20 = vld [vmem:[#allocation2 + $0x18] sm:$0xff]  ;;  %v1671_v8 = vld [vmem:[#allocation2 + $0x50] sm:$0xff] }
 0x2d8   : > { %v1672_v9 = vld [vmem:[#allocation2 + $0x58] sm:$0xff] }
 0x2d9   : > { %v2532_v22 = vpop.f32.mrb[24].mxu1  ;;  %v1109_v28 = vadd.f32 %v2531_v21, %v2437_v25  ;;  %v1711_v21 = vld [vmem:[#allocation2 + $0x190] sm:$0xff] }
 0x2da   : > { %v2533_v23 = vpop.f32.mrb[25].mxu1 }
 0x2db   : > { %v2534_v24 = vadd.f32 %v2533_v23, %v2532_v22  ;;  %v1712_v22 = vld [vmem:[#allocation2 + $0x198] sm:$0xff]  ;;  %v1440_v23 = vld [vmem:[%s4401_s5 + $0x8] sm:$0xff] }
 0x2dd   : > { %v2567_v26 = vpop.f32.mrb[22].mxu0  ;;  %v1114_v31 = vadd.f32 %v2534_v24, %v2437_v25  ;;  %v1695_v24 = vld [vmem:[#allocation2 + $0x110] sm:$0xff]  ;;  %v1696_v25 = vld [vmem:[#allocation2 + $0x118] sm:$0xff] }
 0x2de   : > { %v2568_v27 = vpop.f32.mrb[23].mxu0 }
 0x2df   : > { %v2569_v29 = vadd.f32 %v2568_v27, %v2567_v26  ;;  %v3190_v26 = vpack.c.bf16 %v1680_v17, %v1679_v16  ;;  %v1681_v27 = vld [vmem:[#allocation2 + $0xa0] sm:$0xff]  ;;  %v1690_v16 = vld [vmem:[#allocation2 + $0xe8] sm:$0xff] }
 0x2e0   : > { %v1721_v17 = vld [vmem:[#allocation2 + $0x1e0] sm:$0xff] }
 0x2e1   : > { %v1184_v30 = vadd.f32 %v2569_v29, %v1109_v28  ;;  %v2570_v32 = vpop.f32.mrb[24].mxu0  ;;  %v1682_v28 = vld [vmem:[#allocation2 + $0xa8] sm:$0xff]  ;;  %v1441_v29 = vld [vmem:[%s4401_s5 + $0x10] sm:$0x3] }
 0x2e2   : > { %v2571_v33 = vpop.f32.mrb[25].mxu0 }
 0x2e3   : > { %v2572_v34 = vadd.f32 %v2571_v33, %v2570_v32  ;;  %v1713_v32 = vld [vmem:[#allocation2 + $0x1a0] sm:$0xff]  ;;  %v1714_v33 = vld [vmem:[#allocation2 + $0x1a8] sm:$0xff] }
 0x2e5   : > { %v1189_v35 = vadd.f32 %v2572_v34, %v1114_v31  ;;  %v3222_v31 = vpack.c.bf16 %v1712_v22, %v1711_v21  ;;  %v3224_v34 = vpack.c.bf16 %v1696_v25, %v1695_v24  ;;  %v1673_v22 = vld [vmem:[#allocation2 + $0x60] sm:$0xff] }
 0x2e6   : > { %v1705_v25 = vld [vmem:[#allocation2 + $0x160] sm:$0xff] }
 0x2f5   : > { %v2605_v36 = vpop.f32.mrb[26].mxu1 }
 0x2f6   : > { %v2606_v37 = vpop.f32.mrb[27].mxu1 }
 0x2f7   : > { %v2607_v38 = vadd.f32 %v2606_v37, %v2605_v36  ;;  %v1666_v36 = vld [vmem:[#allocation2 + $0x28] sm:$0xff]  ;;  %v1697_v37 = vld [vmem:[#allocation2 + $0x120] sm:$0xff] }
 0x2f9   : > { %v1259_v39 = vadd.f32 %v2607_v38, %v1184_v30  ;;  %v2608_v40 = vpop.f32.mrb[28].mxu1  ;;  %v3192_v30 = vpack.c.bf16 %v1664_v20, %v1663_v18  ;;  %v3194_v38 = vpack.c.bf16 %v1682_v28, %v1681_v27  ;;  %v1722_v18 = vld [vmem:[#allocation2 + $0x1e8] sm:$0xff] }
 0x2fa   : > { %v2609_v41 = vpop.f32.mrb[29].mxu1  ;;  %v3242_v24 = vpack.c.bf16 %v1722_v18, %v1721_v17  ;;  %v1746_v17 = vld [vmem:[#allocation2 + $0x2a8] sm:$0xff] }
 0x2fb   : > { %v2610_v42 = vadd.f32 %v2609_v41, %v2608_v40  ;;  %v1683_v40 = vld [vmem:[#allocation2 + $0xb0] sm:$0xff]  ;;  %v1684_v41 = vld [vmem:[#allocation2 + $0xb8] sm:$0xff] }
 0x2fd   : > { %v1264_v43 = vadd.f32 %v2610_v42, %v1189_v35  ;;  %v2643_v44 = vpop.f32.mrb[26].mxu0  ;;  %v1665_v35 = vld [vmem:[#allocation2 + $0x20] sm:$0xff]  ;;  %v3226_v42 = vpack.c.bf16 %v1714_v33, %v1713_v32  ;;  %v1675_v32 = vld [vmem:[#allocation2 + $0x70] sm:$0xff]  ;;  %v1676_v33 = vld [vmem:[#allocation2 + $0x78] sm:$0xff] }
 0x2fe   : > { %v2644_v45 = vpop.f32.mrb[27].mxu0 }
 0x2ff   : > { %v2645_v46 = vadd.f32 %v2644_v45, %v2643_v44  ;;  %v1716_v44 = vld [vmem:[#allocation2 + $0x1b8] sm:$0xff]  ;;  %v3196_v45 = vpack.c.bf16 %v1666_v36, %v1665_v35  ;;  %v3216_v35 = vpack.c.bf16 %v1676_v33, %v1675_v32  ;;  %v1729_v33 = vld [vmem:[#allocation2 + $0x220] sm:$0xff] }
 0x300   : > { %v1724_v36 = vld [vmem:[#allocation2 + $0x1f8] sm:$0xff] }
 0x301   : > { %v2646_v47 = vpop.f32.mrb[28].mxu0  ;;  %v1334_v48 = vadd.f32 %v2645_v46, %v1259_v39  ;;  %v1698_v39 = vld [vmem:[#allocation2 + $0x128] sm:$0xff] }
 0x302   : > { %v2647_v50 = vpop.f32.mrb[29].mxu0  ;;  %v3228_v46 = vpack.c.bf16 %v1698_v39, %v1697_v37  ;;  %v1707_v37 = vld [vmem:[#allocation2 + $0x170] sm:$0xff] }
 0x303   : > { %v2648_v51 = vadd.f32 %v2647_v50, %v2646_v47  ;;  %v3198_v47 = vpack.c.bf16 %v1684_v41, %v1683_v40  ;;  %v1668_v50 = vld [vmem:[#allocation2 + $0x38] sm:$0xff]  ;;  %v1741_v41 = vld [vmem:[#allocation2 + $0x280] sm:$0xff] }
 0x305   : > { %v1339_v52 = vadd.f32 %v2648_v51, %v1264_v43  ;;  %v1715_v43 = vld [vmem:[#allocation2 + $0x1b0] sm:$0xff] }
 0x306   : > { %v1699_v51 = vld [vmem:[#allocation2 + $0x130] sm:$0xff] }
 0x315   : > { %v2952_v53 = vpop.f32.mrb[30].mxu1 }
 0x316   : > { %v1414_v54 = vadd.f32 %v2952_v53, %v1339_v52  ;;  %v1408_v55 = vpop.f32.mrb[31].mxu1  ;;  %v3230_v52 = vpack.c.bf16 %v1716_v44, %v1715_v43  ;;  %v1700_v53 = vld [vmem:[#allocation2 + $0x138] sm:$0xff]  ;;  %v1773_v44 = vld [vmem:[#allocation2 + $0x380] sm:$0xff] }
 0x317   : > { %v1409_v56 = vadd.f32 %v1408_v55, %v1334_v48  ;;  %v1667_v48 = vld [vmem:[#allocation2 + $0x30] sm:$0xff]  ;;  %v1686_v55 = vld [vmem:[#allocation2 + $0xc8] sm:$0xff] }
 0x318   : > { %vm1418_vm11 = vcmp.ge.f32.partialorder %v1414_v54, 0.0  ;;  %v1420_v57 = vmul.f32 0.2, %v1414_v54 }
 0x319   : > { %vm1417_vm12 = vcmp.ge.f32.partialorder %v1409_v56, 0.0  ;;  %v1419_v59 = vmul.f32 0.2, %v1409_v56 }
 0x31a   : > { %v1422_v60 = vsel %vm1418_vm11, %v1414_v54, %v1420_v57  ;;  %v1685_v54 = vld [vmem:[#allocation2 + $0xc0] sm:$0xff]  ;;  %v1718_v57 = vld [vmem:[#allocation2 + $0x1c8] sm:$0xff] }
 0x31b   : > { %v1429_v62 = vmul.f32 %v2438_v58, %v1422_v60  ;;  %v1421_v63 = vsel %vm1417_vm12, %v1409_v56, %v1419_v59  ;;  %v1717_v56 = vld [vmem:[#allocation2 + $0x1c0] sm:$0xff]  ;;  %v3232_v59 = vpack.c.bf16 %v1700_v53, %v1699_v51  ;;  %v3202_v60 = vpack.c.bf16 %v1686_v55, %v1685_v54 }
 0x31c   : > { %v1428_v4 = vmul.f32 %v2438_v58, %v1421_v63  ;;  %v3200_v58 = vpack.c.bf16 %v1668_v50, %v1667_v48  ;;  %v1701_v63 = vld [vmem:[#allocation2 + $0x140] sm:$0xff]  ;;  %v3234_v0 = vpack.c.bf16 %v1718_v57, %v1717_v56  ;;  %v1726_v50 = vld [vmem:[#allocation2 + $0x208] sm:$0xff]  ;;  %v1743_v57 = vld [vmem:[#allocation2 + $0x290] sm:$0xff] }
 0x31d   : > { %v1436_v7 = vadd.f32 %v2439_v61, %v1429_v62  ;;  %v1670_v62 = vld [vmem:[#allocation2 + $0x48] sm:$0xff]  ;;  %v1757_v51 = vld [vmem:[#allocation2 + $0x300] sm:$0xff] }
 0x31e   : > { %v1435_v10 = vadd.f32 %v2439_v61, %v1428_v4  ;;  %v1669_v61 = vld [vmem:[#allocation2 + $0x40] sm:$0xff]  ;;  %v1688_v4 = vld [vmem:[#allocation2 + $0xd8] sm:$0xff] }
 0x31f   : > { %1438 = vst [vmem:[%s4267_s15 + $0x8] sm:$0xff] %v1436_v7  ;;  %2965 = vmatpush3.msra.mxu0 %v1436_v7  ;;  %v3204_v6 = vpack.c.bf16 %v1670_v62, %v1669_v61  ;;  %v3236_v7 = vpack.c.bf16 %v1702_v2, %v1701_v63  ;;  %v1775_v63 = vld [vmem:[#allocation2 + $0x390] sm:$0xff] }
 0x320   : > { %1437 = vst [vmem:[%s4267_s15] sm:$0xff] %v1435_v10  ;;  %2954 = vmatpush3.msra.mxu1 %v1435_v10  ;;  %2967 = vmatmul.mubr.msk.f32.vlgmr.msra.gmra.mrb[30].mxu0 %vm1442_vm13, %v1439_v1  ;;  %v1703_v10 = vld [vmem:[#allocation2 + $0x150] sm:$0xff] }
 0x321   : > { %2956 = vmatmul.mubr.msk.f32.vlgmr.msra.gmra.mrb[32].mxu1 %vm1442_vm13, %v1439_v1  ;;  %2969 = vmatprep.mubr.msk.f32.mxu0 %vm3497_vm1, %v3498_v12  ;;  %v3206_v1 = vpack.c.bf16 %v1688_v4, %v1687_v3 }
 0x322   : > { %2958 = vmatprep.mubr.msk.f32.mxu1 %vm3497_vm1, %v3498_v12  ;;  %3187 = vmatprep.subr.bf16.mxu0 %v3186_v13  ;;  %v3238_v13 = vpack.c.bf16 %v1720_v49, %v1719_v5  ;;  %v1727_v5 = vld [vmem:[#allocation2 + $0x210] sm:$0xff] }
 0x323   : > { %3189 = vmatpush3.bf16.msra.mxu0 %v3188_v14  ;;  %3219 = vmatprep.subr.bf16.mxu1 %v3218_v15  ;;  %v1704_v14 = vld [vmem:[#allocation2 + $0x158] sm:$0xff]  ;;  %v1689_v15 = vld [vmem:[#allocation2 + $0xe0] sm:$0xff] }
 0x324   : > { %2970 = vmatmul.mubr.msk.f32.gmra.mrb[32].mxu0 %vm1442_vm13, %v1440_v23  ;;  %3221 = vmatpush3.bf16.msra.mxu1 %v3220_v19  ;;  %v3208_v19 = vpack.c.bf16 %v1672_v9, %v1671_v8  ;;  %v3240_v20 = vpack.c.bf16 %v1704_v14, %v1703_v10  ;;  %v3210_v21 = vpack.c.bf16 %v1690_v16, %v1689_v15  ;;  %v1728_v8 = vld [vmem:[#allocation2 + $0x218] sm:$0xff]  ;;  %v1759_v9 = vld [vmem:[#allocation2 + $0x310] sm:$0xff]  ;;  %v1745_v16 = vld [vmem:[#allocation2 + $0x2a0] sm:$0xff] }
 0x325   : > { %2959 = vmatmul.mubr.msk.f32.gmra.mrb[34].mxu1 %vm1442_vm13, %v1440_v23  ;;  %2972 = vmatprep.mubr.msk.f32.mxu0 %vm3497_vm1, %v3498_v12  ;;  %v1674_v23 = vld [vmem:[#allocation2 + $0x68] sm:$0xff]  ;;  %v1760_v10 = vld [vmem:[#allocation2 + $0x318] sm:$0xff]  ;;  %v3258_v32 = vpack.c.bf16 %v1746_v17, %v1745_v16  ;;  %v1735_v16 = vld [vmem:[#allocation2 + $0x250] sm:$0xff] }
 0x326   : > { %2961 = vmatprep.mubr.msk.f32.mxu1 %vm3497_vm1, %v3498_v12  ;;  %3191 = vmatprep.subr.bf16.mxu0 %v3190_v26  ;;  %v1706_v26 = vld [vmem:[#allocation2 + $0x168] sm:$0xff]  ;;  %v3212_v27 = vpack.c.bf16 %v1674_v23, %v1673_v22  ;;  %v1777_v22 = vld [vmem:[#allocation2 + $0x3a0] sm:$0xff]  ;;  %v1736_v17 = vld [vmem:[#allocation2 + $0x258] sm:$0xff] }
 0x327   : > { %3193 = vmatpush3.bf16.msra.mxu0 %v3192_v30  ;;  %3223 = vmatprep.subr.bf16.mxu1 %v3222_v31  ;;  %v3244_v28 = vpack.c.bf16 %v1706_v26, %v1705_v25  ;;  %v1692_v30 = vld [vmem:[#allocation2 + $0xf8] sm:$0xff]  ;;  %v1778_v23 = vld [vmem:[#allocation2 + $0x3a8] sm:$0xff] }
 0x328   : > { %2973 = vmatmul.mubr.msk.f32.gmra.mrb[34].mxu0 %vm1442_vm13, %v1441_v29  ;;  %3225 = vmatpush3.bf16.msra.mxu1 %v3224_v34  ;;  %v1723_v34 = vld [vmem:[#allocation2 + $0x1f0] sm:$0xff] }
 0x329   : > { %2962 = vmatmul.mubr.msk.f32.gmra.mrb[36].mxu1 %vm1442_vm13, %v1441_v29  ;;  %3195 = vmatprep.subr.bf16.mxu0 %v3194_v38  ;;  %v1691_v29 = vld [vmem:[#allocation2 + $0xf0] sm:$0xff]  ;;  %v1708_v38 = vld [vmem:[#allocation2 + $0x178] sm:$0xff]  ;;  %v3246_v39 = vpack.c.bf16 %v1724_v36, %v1723_v34  ;;  %v1730_v34 = vld [vmem:[#allocation2 + $0x228] sm:$0xff] }
 0x32a   : > { %3227 = vmatprep.subr.bf16.mxu1 %v3226_v42  ;;  %v3214_v31 = vpack.c.bf16 %v1692_v30, %v1691_v29  ;;  %v3248_v40 = vpack.c.bf16 %v1708_v38, %v1707_v37  ;;  %v1742_v42 = vld [vmem:[#allocation2 + $0x288] sm:$0xff]  ;;  %v3288_v29 = vpack.c.bf16 %v1760_v10, %v1759_v9  ;;  %v1783_v9 = vld [vmem:[#allocation2 + $0x3d0] sm:$0xff]  ;;  %v1784_v10 = vld [vmem:[#allocation2 + $0x3d8] sm:$0xff] }
 0x32b   : > { %3197 = vmatpush3.bf16.msra.mxu0 %v3196_v45  ;;  %v3250_v43 = vpack.c.bf16 %v1742_v42, %v1741_v41  ;;  %v1774_v45 = vld [vmem:[#allocation2 + $0x388] sm:$0xff]  ;;  %v1747_v41 = vld [vmem:[#allocation2 + $0x2b0] sm:$0xff]  ;;  %v1748_v42 = vld [vmem:[#allocation2 + $0x2b8] sm:$0xff] }
 0x32c   : > { %3229 = vmatpush3.bf16.msra.mxu1 %v3228_v46  ;;  %3199 = vmatprep.subr.bf16.mxu0 %v3198_v47  ;;  %v3282_v46 = vpack.c.bf16 %v1774_v45, %v1773_v44  ;;  %v1725_v47 = vld [vmem:[#allocation2 + $0x200] sm:$0xff] }
 0x32d   : > { %3231 = vmatprep.subr.bf16.mxu1 %v3230_v52  ;;  %v1758_v52 = vld [vmem:[#allocation2 + $0x308] sm:$0xff]  ;;  %v3252_v4 = vpack.c.bf16 %v1726_v50, %v1725_v47  ;;  %v1779_v47 = vld [vmem:[#allocation2 + $0x3b0] sm:$0xff] }
 0x32f   : > { %3201 = vmatpush3.bf16.msra.mxu0 %v3200_v58  ;;  %v1744_v58 = vld [vmem:[#allocation2 + $0x298] sm:$0xff] }
 0x330   : > { %3233 = vmatpush3.bf16.msra.mxu1 %v3232_v59  ;;  %3203 = vmatprep.subr.bf16.mxu0 %v3202_v60 }
 0x331   : > { %3235 = vmatprep.subr.bf16.mxu1 %v3234_v0  ;;  %v1776_v0 = vld [vmem:[#allocation2 + $0x398] sm:$0xff] }
 0x332   : > { %v3286_v15 = vpack.c.bf16 %v1776_v0, %v1775_v63  ;;  %v1782_v63 = vld [vmem:[#allocation2 + $0x3c8] sm:$0xff] }
 0x333   : > { %3205 = vmatpush3.bf16.msra.mxu0 %v3204_v6 }
 0x334   : > { %3237 = vmatpush3.bf16.msra.mxu1 %v3236_v7  ;;  %3207 = vmatprep.subr.bf16.mxu0 %v3206_v1  ;;  %v3284_v7 = vpack.c.bf16 %v1758_v52, %v1757_v51  ;;  %v3254_v1 = vpack.c.bf16 %v1744_v58, %v1743_v57  ;;  %v3260_v51 = vpack.c.bf16 %v1730_v34, %v1729_v33  ;;  %v1763_v57 = vld [vmem:[#allocation2 + $0x330] sm:$0xff]  ;;  %v1770_v33 = vld [vmem:[#allocation2 + $0x368] sm:$0xff] }
 0x335   : > { %3239 = vmatprep.subr.bf16.mxu1 %v3238_v13  ;;  %v1755_v34 = vld [vmem:[#allocation2 + $0x2f0] sm:$0xff] }
 0x337   : > { %3209 = vmatpush3.bf16.msra.mxu0 %v3208_v19 }
 0x338   : > { %3241 = vmatpush3.bf16.msra.mxu1 %v3240_v20  ;;  %3211 = vmatprep.subr.bf16.mxu0 %v3210_v21 }
 0x339   : > { %3243 = vmatprep.subr.bf16.mxu1 %v3242_v24 }
 0x33b   : > { %3213 = vmatpush3.bf16.msra.mxu0 %v3212_v27 }
 0x33c   : > { %3245 = vmatpush3.bf16.msra.mxu1 %v3244_v28  ;;  %3215 = vmatprep.subr.bf16.mxu0 %v3214_v31  ;;  %v3256_v28 = vpack.c.bf16 %v1728_v8, %v1727_v5  ;;  %v1734_v5 = vld [vmem:[#allocation2 + $0x248] sm:$0xff]  ;;  %v1752_v8 = vld [vmem:[#allocation2 + $0x2d8] sm:$0xff] }
 0x33d   : > { %3247 = vmatprep.subr.bf16.mxu1 %v3246_v39  ;;  %v3290_v39 = vpack.c.bf16 %v1778_v23, %v1777_v22  ;;  %v1754_v22 = vld [vmem:[#allocation2 + $0x2e8] sm:$0xff]  ;;  %v1785_v23 = vld [vmem:[#allocation2 + $0x3e0] sm:$0xff] }
 0x33f   : > { %3217 = vmatpush3.bf16.msra.mxu0 %v3216_v35  ;;  %v1761_v35 = vld [vmem:[#allocation2 + $0x320] sm:$0xff] }
 0x340   : > { %3249 = vmatpush3.bf16.msra.mxu1 %v3248_v40  ;;  %3251 = vmatprep.subr.bf16.mxu0 %v3250_v43  ;;  %v1762_v40 = vld [vmem:[#allocation2 + $0x328] sm:$0xff] }
 0x341   : > { %3283 = vmatprep.subr.bf16.mxu1 %v3282_v46 }
 0x3f3   : > { %v1612_v48 = vpop.f32.mrb[30].mxu0 }
 0x3f4   : > { %v1518_v53 = vpop.f32.mrb[32].mxu1  ;;  %v1629_v54 = vrot.slane %v1612_v48, 6  ;;  %v2447_v55 = vrot.slane %v1612_v48, 10  ;;  %v2968_v56 = vpop.f32.mrb[31].mxu0 }
 0x3f5   : > { %v1533_v59 = vrot.slane %v1518_v53, 2  ;;  %v1535_v60 = vrot.slane %v1518_v53, 4  ;;  %v1537_v61 = vrot.slane %v1518_v53, 6  ;;  %v2957_v62 = vpop.f32.mrb[33].mxu1  ;;  %v1732_v56 = vld [vmem:[#allocation2 + $0x238] sm:$0xff] }
 0x3f6   : > { %v1637_v2 = vrot.slane %v1629_v54, 6  ;;  %v1652_v3 = vsel %vm1651_vm14, %v1518_v53, %v1629_v54  ;;  %v3292_v53 = vpack.c.bf16 %v1762_v40, %v1761_v35  ;;  %v3262_v54 = vpack.c.bf16 %v1748_v42, %v1747_v41  ;;  %v1781_v62 = vld [vmem:[#allocation2 + $0x3c0] sm:$0xff]  ;;  %v1756_v35 = vld [vmem:[#allocation2 + $0x2f8] sm:$0xff]  ;;  %v1739_v42 = vld [vmem:[#allocation2 + $0x270] sm:$0xff] }
 0x3f7   : > { %v1653_v49 = vsel %vm1651_vm14, %v1533_v59, %v1612_v48  ;;  %v1654_v6 = vsel %vm1651_vm14, %v1535_v60, %v2447_v55  ;;  %v1617_v13 = vpop.f32.mrb[32].mxu0  ;;  %v1780_v48 = vld [vmem:[#allocation2 + $0x3b8] sm:$0xff]  ;;  %v1731_v55 = vld [vmem:[#allocation2 + $0x230] sm:$0xff]  ;;  %v1749_v60 = vld [vmem:[#allocation2 + $0x2c0] sm:$0xff]  ;;  %v3278_v41 = vpack.c.bf16 %v1756_v35, %v1755_v34 }
 0x3f8   : > { %1874 = vmatprep.mubr.f32.mxu0 %v1653_v49  ;;  %v1655_v14 = vsel %vm1651_vm14, %v1537_v61, %v1637_v2  ;;  %v1523_v18 = vpop.f32.mrb[34].mxu1  ;;  %v1633_v19 = vrot.slane %v1617_v13, 6  ;;  %v2449_v20 = vrot.slane %v1617_v13, 10  ;;  %v2971_v21 = vpop.f32.mrb[33].mxu0  ;;  %v3294_v58 = vpack.c.bf16 %v1780_v48, %v1779_v47  ;;  %v1764_v59 = vld [vmem:[#allocation2 + $0x338] sm:$0xff]  ;;  %v1750_v61 = vld [vmem:[#allocation2 + $0x2c8] sm:$0xff] }
 0x3f9   : > { %1875 = vmatmul.mubr.f32.vlgmr.msra.gmra.mrb[36].mxu0 %v1652_v3  ;;  %1944 = vmatprep.mubr.f32.mxu1 %v1655_v14  ;;  %v1540_v24 = vrot.slane %v1523_v18, 2  ;;  %v1542_v25 = vrot.slane %v1523_v18, 4  ;;  %v1544_v26 = vrot.slane %v1523_v18, 6  ;;  %v2960_v27 = vpop.f32.mrb[35].mxu1  ;;  %v3264_v0 = vpack.c.bf16 %v1732_v56, %v1731_v55  ;;  %v1765_v49 = vld [vmem:[#allocation2 + $0x340] sm:$0xff]  ;;  %v1792_v55 = vld [vmem:[#allocation2 + $0x418] sm:$0xff] }
 0x3fa   : > { %3253 = vmatpush3.bf16.msra.mxu0 %v3252_v4  ;;  %1945 = vmatmul.mubr.f32.vlgmr.msra.gmra.mrb[38].mxu1 %v1654_v6  ;;  %v1640_v30 = vrot.slane %v1633_v19, 6  ;;  %v4296_v31 = vsel %vm1651_vm14, %v1523_v18, %v1633_v19  ;;  %v3296_v2 = vpack.c.bf16 %v1764_v59, %v1763_v57  ;;  %v3266_v3 = vpack.c.bf16 %v1750_v61, %v1749_v60  ;;  %v1733_v4 = vld [vmem:[#allocation2 + $0x240] sm:$0xff]  ;;  %v1767_v18 = vld [vmem:[#allocation2 + $0x350] sm:$0xff]  ;;  %v1796_v61 = vld [vmem:[#allocation2 + $0x438] sm:$0xff] }
 0x3fb   : > { %3285 = vmatpush3.bf16.msra.mxu1 %v3284_v7  ;;  %3255 = vmatprep.subr.bf16.mxu0 %v3254_v1  ;;  %v1657_v36 = vsel %vm1651_vm14, %v1540_v24, %v1617_v13  ;;  %v4300_v37 = vsel %vm1651_vm14, %v1542_v25, %v2449_v20  ;;  %v1622_v38 = vpop.f32.mrb[34].mxu0  ;;  %v3298_v6 = vpack.c.bf16 %v1782_v63, %v1781_v62  ;;  %v1766_v7 = vld [vmem:[#allocation2 + $0x348] sm:$0xff]  ;;  %v1751_v1 = vld [vmem:[#allocation2 + $0x2d0] sm:$0xff]  ;;  %v1768_v20 = vld [vmem:[#allocation2 + $0x358] sm:$0xff] }
 0x3fc   : > { %3287 = vmatprep.subr.bf16.mxu1 %v3286_v15  ;;  %2014 = vmatprep.mubr.f32.mxu0 %v1657_v36  ;;  %v1659_v43 = vsel %vm1651_vm14, %v1544_v26, %v1640_v30  ;;  %v1641_v44 = vrot.slane %v1622_v38, 6  ;;  %v1528_v45 = vpop.f32.mrb[36].mxu1  ;;  %v2974_v46 = vpop.f32.mrb[35].mxu0  ;;  %v3268_v13 = vpack.c.bf16 %v1734_v5, %v1733_v4  ;;  %v3300_v14 = vpack.c.bf16 %v1766_v7, %v1765_v49  ;;  %v1753_v21 = vld [vmem:[#allocation2 + $0x2e0] sm:$0xff]  ;;  %v1786_v24 = vld [vmem:[#allocation2 + $0x3e8] sm:$0xff]  ;;  %v1787_v36 = vld [vmem:[#allocation2 + $0x3f0] sm:$0xff] }
 0x3fd   : > { %2084 = vmatprep.mubr.f32.mxu1 %v1659_v43  ;;  %v2963_v50 = vpop.f32.mrb[37].mxu1  ;;  %v3270_v15 = vpack.c.bf16 %v1752_v8, %v1751_v1  ;;  %v3302_v19 = vpack.c.bf16 %v1784_v10, %v1783_v9  ;;  %v3272_v25 = vpack.c.bf16 %v1736_v17, %v1735_v16  ;;  %v3304_v26 = vpack.c.bf16 %v1768_v20, %v1767_v18  ;;  %v1769_v30 = vld [vmem:[#allocation2 + $0x360] sm:$0xff]  ;;  %v1788_v38 = vld [vmem:[#allocation2 + $0x3f8] sm:$0xff]  ;;  %v1795_v60 = vld [vmem:[#allocation2 + $0x430] sm:$0xff] }
 0x3fe   : > { %3257 = vmatpush3.bf16.msra.mxu0 %v3256_v28  ;;  %v4304_v52 = vsel %vm1651_vm14, %v1528_v45, %v1641_v44  ;;  %v3274_v27 = vpack.c.bf16 %v1754_v22, %v1753_v21  ;;  %v1737_v28 = vld [vmem:[#allocation2 + $0x260] sm:$0xff]  ;;  %v3308_v40 = vpack.c.bf16 %v1770_v33, %v1769_v30  ;;  %v1740_v43 = vld [vmem:[#allocation2 + $0x278] sm:$0xff]  ;;  %v3310_v44 = vpack.c.bf16 %v1788_v38, %v1787_v36  ;;  %v1771_v45 = vld [vmem:[#allocation2 + $0x370] sm:$0xff] }
 0x3ff   : > { %3289 = vmatpush3.bf16.msra.mxu1 %v3288_v29  ;;  %3259 = vmatprep.subr.bf16.mxu0 %v3258_v32  ;;  %v1738_v29 = vld [vmem:[#allocation2 + $0x268] sm:$0xff]  ;;  %v3306_v32 = vpack.c.bf16 %v1786_v24, %v1785_v23  ;;  %v1772_v46 = vld [vmem:[#allocation2 + $0x378] sm:$0xff]  ;;  %v3280_v47 = vpack.c.bf16 %v1740_v43, %v1739_v42  ;;  %v1789_v50 = vld [vmem:[#allocation2 + $0x400] sm:$0xff]  ;;  %v3324_v62 = vpack.c.bf16 %v1796_v61, %v1795_v60 }
 0x400   : > { %3291 = vmatprep.subr.bf16.mxu1 %v3290_v39  ;;  %v3276_v39 = vpack.c.bf16 %v1738_v29, %v1737_v28  ;;  %v3312_v48 = vpack.c.bf16 %v1772_v46, %v1771_v45  ;;  %v1793_v57 = vld [vmem:[#allocation2 + $0x420] sm:$0xff]  ;;  %v1802_v4 = vld [vmem:[#allocation2 + $0x468] sm:$0xff]  ;;  %v1803_v49 = vld [vmem:[#allocation2 + $0x470] sm:$0xff] }
 0x401   : > { %v2450_v8 = vld [vmem:[%s4402_s6 + $0x6] ss:$0 sm:$0xff]  ;;  %v2176_v29 = vld [vmem:[%s4403_s7] sm:$0x3] }
 0x402   : > { %3261 = vmatpush3.bf16.msra.mxu0 %v3260_v51  ;;  %v1790_v51 = vld [vmem:[#allocation2 + $0x408] sm:$0xff]  ;;  %v2190_v34 = vrot.slane %v2176_v29, 6 }
 0x403   : > { %3293 = vmatpush3.bf16.msra.mxu1 %v3292_v53  ;;  %3263 = vmatprep.subr.bf16.mxu0 %v3262_v54  ;;  %v3315_v53 = vpack.c.bf16 %v1790_v51, %v1789_v50  ;;  %v1791_v54 = vld [vmem:[#allocation2 + $0x410] sm:$0xff] }
 0x404   : > { %3295 = vmatprep.subr.bf16.mxu1 %v3294_v58  ;;  %v3318_v56 = vpack.c.bf16 %v1792_v55, %v1791_v54  ;;  %v1794_v58 = vld [vmem:[#allocation2 + $0x428] sm:$0xff] }
 0x405   : > { %v3321_v59 = vpack.c.bf16 %v1794_v58, %v1793_v57 }
 0x406   : > { %3265 = vmatpush3.bf16.msra.mxu0 %v3264_v0  ;;  %v1799_v0 = vld [vmem:[#allocation2 + $0x450] sm:$0xff] }
 0x407   : > { %3297 = vmatpush3.bf16.msra.mxu1 %v3296_v2  ;;  %3267 = vmatprep.subr.bf16.mxu0 %v3266_v3  ;;  %v1800_v2 = vld [vmem:[#allocation2 + $0x458] sm:$0xff]  ;;  %v1801_v3 = vld [vmem:[#allocation2 + $0x460] sm:$0xff] }
 0x408   : > { %3299 = vmatprep.subr.bf16.mxu1 %v3298_v6  ;;  %v3333_v5 = vpack.c.bf16 %v1802_v4, %v1801_v3  ;;  %v1804_v6 = vld [vmem:[#allocation2 + $0x478] sm:$0xff] }
 0x409   : > { %v3336_v7 = vpack.c.bf16 %v1804_v6, %v1803_v49 }
 0x40a   : > { %3269 = vmatpush3.bf16.msra.mxu0 %v3268_v13 }
 0x40b   : > { %3301 = vmatpush3.bf16.msra.mxu1 %v3300_v14  ;;  %3271 = vmatprep.subr.bf16.mxu0 %v3270_v15 }
 0x40c   : > { %3303 = vmatprep.subr.bf16.mxu1 %v3302_v19 }
 0x40e   : > { %3273 = vmatpush3.bf16.msra.mxu0 %v3272_v25 }
 0x40f   : > { %3305 = vmatpush3.bf16.msra.mxu1 %v3304_v26  ;;  %3275 = vmatprep.subr.bf16.mxu0 %v3274_v27  ;;  %v2451_v27 = vld [vmem:[%s4402_s6 + $0x7] ss:$0 sm:$0xff] }
 0x410   : > { %3307 = vmatprep.subr.bf16.mxu1 %v3306_v32  ;;  %v2452_v32 = vld [vmem:[%s4402_s6 + $0x8] ss:$0 sm:$0xff] }
 0x412   : > { %3277 = vmatpush3.bf16.msra.mxu0 %v3276_v39 }
 0x413   : > { %3309 = vmatpush3.bf16.msra.mxu1 %v3308_v40  ;;  %3279 = vmatprep.subr.bf16.mxu0 %v3278_v41 }
 0x414   : > { %3311 = vmatprep.subr.bf16.mxu1 %v3310_v44 }
 0x416   : > { %3281 = vmatpush3.bf16.msra.mxu0 %v3280_v47 }
 0x417   : > { %3313 = vmatpush3.bf16.msra.mxu1 %v3312_v48  ;;  %3314 = vmatprep.subr.bf16.mxu0 %v3496_v11 }
 0x419   : > { %2015 = vmatmul.mubr.f32.vlgmr.msra.gmra.mrb[38].mxu0 %v4296_v31  ;;  %v1797_v31 = vld [vmem:[#allocation2 + $0x440] sm:$0xff] }
 0x41a   : > { %3316 = vmatpush3.bf16.msra.mxu0 %v3315_v53  ;;  %2085 = vmatmul.mubr.f32.vlgmr.msra.gmra.mrb[40].mxu1 %v4300_v37  ;;  %v1798_v37 = vld [vmem:[#allocation2 + $0x448] sm:$0xff] }
 0x41b   : > { %3317 = vmatprep.subr.bf16.mxu0 %v3496_v11  ;;  %3007 = vmatprep.mubr.msk.f32.mxu0 %vm3497_vm1, %v3498_v12  ;;  %v3327_v63 = vpack.c.bf16 %v1798_v37, %v1797_v31  ;;  %v3330_v12 = vpack.c.bf16 %v1800_v2, %v1799_v0 }
 0x41e   : > { %3319 = vmatpush3.bf16.msra.mxu0 %v3318_v56 }
 0x41f   : > { %3320 = vmatprep.subr.bf16.mxu0 %v3496_v11 }
 0x422   : > { %3322 = vmatpush3.bf16.msra.mxu0 %v3321_v59 }
 0x423   : > { %3323 = vmatprep.subr.bf16.mxu0 %v3496_v11 }
 0x426   : > { %3325 = vmatpush3.bf16.msra.mxu0 %v3324_v62 }
 0x427   : > { %3326 = vmatprep.subr.bf16.mxu0 %v3496_v11 }
 0x42a   : > { %3328 = vmatpush3.bf16.msra.mxu0 %v3327_v63 }
 0x42b   : > { %3329 = vmatprep.subr.bf16.mxu0 %v3496_v11 }
 0x42e   : > { %3331 = vmatpush3.bf16.msra.mxu0 %v3330_v12 }
 0x42f   : > { %3332 = vmatprep.subr.bf16.mxu0 %v3496_v11 }
 0x432   : > { %3334 = vmatpush3.bf16.msra.mxu0 %v3333_v5 }
 0x433   : > { %3335 = vmatprep.subr.bf16.mxu0 %v3496_v11 }
 0x436   : > { %3337 = vmatpush3.bf16.msra.mxu0 %v3336_v7 }
 0x439   : > { %3008 = vmatmul.mubr.f32.vlgmr.msra.gmra.mrb[40].mxu0 %v4304_v52 }
 0x4cc   : > { %v2707_v1 = vpop.f32.mrb[36].mxu0 }
 0x4cd   : > { %v2708_v9 = vpop.f32.mrb[37].mxu0  ;;  %v2742_v10 = vpop.f32.mrb[38].mxu1 }
 0x4ce   : > { %v2709_v13 = vadd.f32 %v2708_v9, %v2707_v1  ;;  %v2743_v14 = vpop.f32.mrb[39].mxu1 }
 0x4cf   : > { %v2744_v15 = vadd.f32 %v2743_v14, %v2742_v10 }
 0x4d0   : > { %v1877_v16 = vadd.f32 %v2709_v13, %v2450_v8 }
 0x4d2   : > { %v1947_v17 = vadd.f32 %v2744_v15, %v1877_v16 }
 0x4ec   : > { %v2777_v18 = vpop.f32.mrb[38].mxu0 }
 0x4ed   : > { %v2778_v19 = vpop.f32.mrb[39].mxu0  ;;  %v2812_v20 = vpop.f32.mrb[40].mxu1 }
 0x4ee   : > { %v2779_v11 = vadd.f32 %v2778_v19, %v2777_v18  ;;  %v2813_v21 = vpop.f32.mrb[41].mxu1 }
 0x4ef   : > { %v2814_v22 = vadd.f32 %v2813_v21, %v2812_v20 }
 0x4f0   : > { %v2017_v52 = vadd.f32 %v2779_v11, %v1947_v17 }
 0x4f2   : > { %v2087_v23 = vadd.f32 %v2814_v22, %v2017_v52 }
 0x50c   : > { %v2156_v24 = vpop.f32.mrb[40].mxu0 }
 0x50d   : > { %v2157_v25 = vadd.f32 %v2156_v24, %v2087_v23  ;;  %v3009_v26 = vpop.f32.mrb[41].mxu0 }
 0x50f   : > { %vm2160_vm15 = vcmp.ge.f32.partialorder %v2157_v25, 0.0  ;;  %v2161_v28 = vmul.f32 0.2, %v2157_v25 }
 0x511   : > { %v2162_v30 = vsel %vm2160_vm15, %v2157_v25, %v2161_v28 }
 0x512   : > { %v2168_v33 = vmul.f32 %v2451_v27, %v2162_v30 }
 0x514   : > { %v2174_v35 = vadd.f32 %v2452_v32, %v2168_v33 }
 0x516   : > { %2175 = vst [vmem:[%s428_s0] sm:$0xf] %v2174_v35  ;;  %v2192_v36 = vmul.f32 %v2190_v34, %v2174_v35  ;;  %v2177_v38 = vmul.f32 %v2176_v29, %v2174_v35  ;;  %s2460_s0 = sshll.u32 %s3583_s21, 8  ;;  %s3499_s21 = smov [#allocation5]  }
 0x517   : > { %s4342_s22 = scalar_lea.hbm %s4405_s9, %s2460_s0  ;;  %s3429_s15 = sshll.u32 %s3499_s21, 4  ;;  %s3430_s15 = int_to_ptr.vmem [resolvable:$false] %s3429_s15 }
 0x518   : > { %v2194_v39 = vrot.slane %v2192_v36, 2  ;;  %v2178_v40 = vsel %vm1651_vm14, %v2177_v38, 0.0  ;;  %s3431_s29 = scalar_lea.vmem %s3430_s15, 512  ;;  %p3432_p2 = scmp.lt.s32.totalorder %s4344_s30, %s3430_s15 }
 0x519   : > { %v2179_v41 = vrot.slane %v2178_v40, 4  ;;  %p3433_p3 = scmp.lt.s32.totalorder %s3431_s29, %s3425_s12 }
 0x51a   : > { %v2196_v42 = vsel %vm1651_vm14, %v2194_v39, 0.0 }
 0x51b   : > { %v2197_v43 = vrot.slane %v2196_v42, 4  ;;  %v2180_v44 = vadd.f32 %v2179_v41, %v2178_v40  ;;  %p3434_p4 = por %p3433_p3, %p3432_p2 }
 0x51d   : > { %v2198_v45 = vadd.f32 %v2197_v43, %v2196_v42  ;;  %v2181_v46 = vrot.slane %v2180_v44, 2  ;;  %p3435_p7 = pnand %p3434_p4, %p3428_p12 }
 0x51f   : > { %v2199_v47 = vrot.slane %v2198_v45, 2  ;;  %v2182_v50 = vadd.f32 %v2181_v46, %v2180_v44 }
 0x521   : > { %v2200_v48 = vadd.f32 %v2199_v47, %v2198_v45  ;;  %v2183_v54 = vrot.slane %v2182_v50, 1 }
 0x523   : > { %v2201_v51 = vrot.slane %v2200_v48, 1  ;;  %v2184_v55 = vadd.f32 %v2183_v54, %v2182_v50 }
 0x525   : > { %v2202_v53 = vadd.f32 %v2201_v51, %v2200_v48 }
 0x527   : > { %2203 = vadd.xlane.f32.xlu0 %v2202_v53 }
 0x52b   : > { %2185 = vadd.xlane.f32.xlu0 %v2184_v55 }
 0x52c   : > { %3438 = shalt.err (!%p3435_p7)
}
 0x52d   : > { %s3439_s25 = scalar_lea.hbm %s4342_s22, 256  ;;  %s3443_s13 = scalar_lea.hbm %s4405_s9, 512 }
 0x52e   : > { %p3440_p8 = scmp.ne.s32.totalorder %s4342_s22, %s3439_s25  ;;  %p3444_p1 = scmp.lt.u32.totalorder %s4342_s22, %s4405_s9 }
 0x52f   : > { %p3445_p0 = scmp.lt.u32.totalorder %s3443_s13, %s3439_s25  ;;  %p3447_p6 = scmp.lt.u32.totalorder %s3439_s25, %s4342_s22 }
 0x530   : > { %p3441_p11 = pnand %p3440_p8, %p4423_p9 }
 0x531   : > { %p3446_p5 = por %p3445_p0, %p3444_p1 }
 0x532   : > { %p3442_p13 = pneg %p3441_p11 }
 0x533   : > { %p3448_p10 = por %p3447_p6, %p3446_p5 }
 0x535   : > { %p3449_p12 = pnand %p3448_p10, %p3442_p13 }
 0x537   : > { %3452 = shalt.err (!%p3449_p12)
}
 0x538   : > { %s3500_s12 = smov 128   ;;  %s3501_s15 = smov 8   ;;  %v2187_v56 = vld [vmem:[%s4402_s6 + $0x9] sm:$0x1]  ;;  %vm2209_vm0 = vcmask 1040384  }
 0x539   : > { %3344 = dma.vmem_to_hbm [thread:$0]  (%p4423_p9), %s4344_s30, 256, %s4342_s22, %s4348_s16, %s3500_s12, %s3500_s12, %s3501_s15  }
 0x53a   : > { %s2407_s14 = sshll.u32 %s3647_s26, 1 }
 0x53b   : > { %s432_s24 = scalar_lea.vmem %s4407_s11, %s2407_s14 }
 0x5b4   : > { %v2204_v57 = vpop.xlane.xlu0 %2203 }
 0x5b5   : > { %v2205_v58 = vadd.f32 %v2204_v57, %v2187_v56 }
 0x5b7   : > { %v2207_v60 = vrot.slane %v2205_v58, 7 }
 0x5b8   : > { %v2186_v59 = vpop.xlane.xlu0 %2185 }
 0x5b9   : > { %v2188_v61 = vadd.f32 %v2187_v56, %v2186_v59 }
 0x5bb   : > { %v2210_v62 = vsel %vm2209_vm0, %v2188_v61, %v2207_v60 }
 0x5bc   : > { %2211 = vst [vmem:[%s432_s24] sm:$0x3] %v2210_v62 }
 0x5bd PF: > { %p3356_p9 = scmp.ge.s32.totalorder %s3491_s20, 2  ;;  %s2271_s27 = sand.u32 1, %s3479_s17  }
 0x5be   : > { %p4424_p2 = scmp.ne.s32.totalorder %s4415_s28, 0  ;;  %s2272_s30 = scalar_lea.sflag [#allocation4], %s2271_s27 }
 0x5c0   : > { %p3351_p3 = pnand %p3356_p9, %p4424_p2 }
 0x5c2   : > { %3474 = dma.done.wait (!%p3351_p3), %s2272_s30, 256  }
 0x5c3   : > { %3476 = vsyncadd (!%p3351_p3), %s2272_s30, 4294967040  ;;  %s4425_s26 = sld [smem:[#allocation8_spill]]  ;;  %p23_p4 = scmp.ge.s32.totalorder %s3587_s23, 4  }
 0x5c4   : > { %s4426_s17 = smov %s3483_s18  ;;  %s4427_s18 = smov %s3487_s19 }
 0x5c5   : > { %s4429_s20 = smov %s3587_s23  ;;  %25 = sbr.rel (!%p23_p4) target bundleno = 6 (0x6), region = 128 }
 0x5c9   : > { %s4428_s19 = smov %s4425_s26 }
 0x5cc   :  { %2291 = vsyncpa [#allocation3], 1 }
 0x5cd   :  { %2293 = vsyncpa [#allocation3 + $0x1], 1 }
 0x5ce   :  { %2294 = vsyncpa [#allocation4], 1 }
 0x5cf   :  { %2296 = vsyncpa [#allocation4 + $0x1], 1 }

// kernel: _single_window_forward.1
= control target key start
LH: loop header
LB: loop body
LE: loop exit
PB: predicated region body
PF: predicated region fallthrough
CT: control target
= control target key end

     0   :  { %s4396_s0 = inlined_call_operand.vmem [shape: f32[2,64,16], index: 0, kind: input, shape index: {}]   ;;  %s4397_s1 = inlined_call_operand.vmem [shape: f32[16,128], index: 1, kind: input, shape index: {}]   ;;  %s4398_s2 = inlined_call_operand.vmem [shape: f32[1152,128], index: 2, kind: input, shape index: {}]   ;;  %s4399_s3 = inlined_call_operand.hbm [shape: f32[1152,128], index: 3, kind: input, shape index: {}]   ;;  %s4400_s4 = inlined_call_operand.vmem [shape: f32[72,32], index: 4, kind: input, shape index: {}]   ;;  %s4401_s5 = inlined_call_operand.vmem [shape: f32[18,8], index: 5, kind: input, shape index: {}]   ;;  %s4402_s6 = inlined_call_operand.vmem [shape: f32[10,128], index: 6, kind: input, shape index: {}]   ;;  %s4403_s7 = inlined_call_operand.vmem [shape: f32[2,128], index: 7, kind: input, shape index: {}]   ;;  %s4404_s8 = inlined_call_operand.vmem [shape: f32[2,64,128], index: 8, kind: output, shape index: {0}]   ;;  %s4405_s9 = inlined_call_operand.hbm [shape: f32[2,16,128], index: 9, kind: output, shape index: {1}]   ;;  %s4406_s10 = inlined_call_operand.vmem [shape: f32[2,4,128], index: 10, kind: output, shape index: {2}]   ;;  %s4407_s11 = inlined_call_operand.vmem [shape: f32[2,2,128], index: 11, kind: output, shape index: {3}]  }
   0x1   :  { %4412 = sst [smem:[#allocation9_spill]] %s4396_s0 }
   0x2   :  { %17 = vsyncpa [#allocation3], 0 }
   0x3   :  { %18 = vsyncpa [#allocation4], 0 }
   0x4   :  { %20 = vsyncpa [#allocation4 + $0x1], 0  ;;  %s3562_s17 = smov 0   ;;  %s3564_s18 = smov 0  }
   0x5   :  { %s3566_s19 = smov 0   ;;  %s3568_s20 = smov 0  }
   0x6 LB: > { %s3583_s21 = sadd.s32 4294967295, %s3491_s20   ;;  %s2395_s22 = sadd.s32 4294967294, %s3491_s20   ;;  %s3491_s20 = sphi %s3568_s20, %s4429_s20   ;;  %s3487_s19 = sphi %s3566_s19, %s4428_s19   ;;  %s3483_s18 = sphi %s3564_s18, %s4427_s18   ;;  %s3479_s17 = sphi %s3562_s17, %s4426_s17  }
   0x7   : > { %s3587_s23 = sadd.s32 1, %s3491_s20   ;;  %s232_s24 = sadd.s32 1, %s3487_s19 }
   0x8   : > { %s229_s25 = ssub.s32 %s3491_s20, %s3587_s23  ;;  %p242_p0 = scmp.ne.s32.totalorder %s3487_s19, %s3483_s18 }
   0x9   : > { %p230_p1 = scmp.eq.s32.totalorder %s229_s25, 0  ;;  %p243_p2 = scmp.eq.s32.totalorder %s3583_s21, 1 }
   0xa   : > { %p248_p3 = scmp.ne.s32.totalorder %s3483_s18, %s3479_s17  ;;  %p249_p4 = scmp.eq.s32.totalorder %s2395_s22, 1 }
   0xb   : > { %s3598_s26 = scalar_select %p230_p1, %s3487_s19, %s232_s24  }
   0xc   : > { %p3600_p5 = por %p243_p2, %p242_p0  ;;  %p3604_p6 = por %p249_p4, %p248_p3 }
   0xd   : > { %4413 = sst [smem:[#allocation8_spill]] %s3598_s26  ;;  %p2396_p7 = scmp.ge.s32.totalorder %s3491_s20, 1 }
   0xe   : > { %s4414_s27 = scalar_select %p3600_p5, 1, 0 }
   0xf   : > { %s4415_s28 = scalar_select %p3604_p6, 1, 0 }
  0x10   : > { %p308_p8 = scmp.lt.s32.totalorder %s3491_s20, 3  ;;  %p4408_p9 = scmp.eq.s32.totalorder %s3583_s21, 0 }
  0x11   : > { %s3493_s30 = smov [#allocation2]   ;;  %s3397_s16 = scalar_lea.hbm %s4399_s3, 18432 }
  0x12   : > { %p3611_p10 = pnand %p2396_p7, %p308_p8  ;;  %s326_s12 = sshll.u32 %s3493_s30, 4  ;;  %s327_s12 = int_to_ptr.vmem [resolvable:$true] %s326_s12 }
  0x13   : > { %p3398_p13 = scmp.ne.s32.totalorder %s4399_s3, %s3397_s16  ;;  %p3404_p3 = scmp.lt.u32.totalorder %s3397_s16, %s4399_s3 }
  0x14   : > { %s4416_s29 = scalar_select %p3611_p10, 1, 0 }
  0x15   : > { %p3346_p11 = pneg %p3611_p10 }
  0x17   : > { %p3619_p12 = pnand %p4408_p9, %p3346_p11 }
  0x19   : > { %p3399_p0 = pneg %p3619_p12 }
  0x1b   : > { %p3400_p1 = pnand %p3399_p0, %p3398_p13 }
  0x1d   : > { %p3401_p2 = pneg %p3400_p1 }
  0x1f   : > { %p3406_p4 = pnand %p3404_p3, %p3401_p2 }
  0x21   : > { %3409 = shalt.err (!%p3406_p4)
}
  0x22   : > { %s3410_s26 = scalar_lea.vmem %s327_s12, 18432  ;;  %p3418_p9 = scmp.lt.s32.totalorder %s327_s12, %s327_s12 }
  0x23   : > { %p3411_p7 = scmp.ne.s32.totalorder %s327_s12, %s3410_s26  ;;  %p3419_p6 = scmp.lt.s32.totalorder %s3410_s26, %s3410_s26 }
  0x25   : > { %p3413_p8 = pnand %p3411_p7, %p3399_p0  ;;  %p3420_p5 = por %p3419_p6, %p3418_p9 }
  0x27   : > { %p3414_p11 = pneg %p3413_p8 }
  0x29   : > { %p3421_p10 = pnand %p3420_p5, %p3414_p11 }
  0x2b   : > { %3424 = shalt.err (!%p3421_p10)
}
  0x2c   : > { %s3494_s14 = smov 128   ;;  %s3495_s15 = smov 8  }
  0x2d   : > { %3349 = dma.hbm_to_vmem [thread:$0]  (!%p3619_p12), %s4399_s3, 18432, %s327_s12, [#allocation3], %s3494_s14, %s3494_s14, %s3495_s15  }
  0x2e   : > { %p4418_p13 = scmp.ne.s32.totalorder %s4416_s29, 0 }
  0x2f   : > { %p4419_p1 = scmp.eq.s32.totalorder (!%p4418_p13), %s3583_s21, 0 }
  0x30   : > { %362 = sbr.rel (%p4418_p13) target bundleno = 1469 (0x5bd), region = 52 }
  0x37   : > { %3470 = dma.done.wait (%p4419_p1), [#allocation3], 18432   ;;  %p4420_p0 = pmov %p4419_p1 }
  0x38   : > { %p415_p5 = scmp.lt.s32.totalorder %s3583_s21, 1  ;;  %s4421_s0 = sld [smem:[#allocation9_spill]]  ;;  %vm448_vm0 = vcmask 130048   ;;  %v441_v0 = vld [vmem:[%s4397_s1] sm:$0xff]  ;;  %v442_v1 = vld [vmem:[%s4397_s1 + $0x8] sm:$0xff]  ;;  %v3496_v11 = vmov 0.0|0.0  }
  0x39   : > { %3472 = vsyncadd (%p4420_p0), [#allocation3], 4294948864  ;;  %v3010_v3 = vpack.c.bf16 %v442_v1, %v441_v0  ;;  %vm3497_vm1 = vmmov 0   ;;  %v3498_v12 = vmov 0.0   ;;  %v2408_v13 = vld [vmem:[%s4402_s6] ss:$0 sm:$0xff] }
  0x3a   : > { %s3647_s26 = scalar_select %p415_p5, %s3583_s21, 1  ;;  %v3681_v20 = vld [vmem:[%s4402_s6 + $0x1] ss:$0 sm:$0xff]  ;;  %v3686_v29 = vld [vmem:[%s4402_s6 + $0x2] ss:$0 sm:$0xff]  ;;  %v910_v56 = vld [vmem:[%s4398_s2 + $0x88] sm:$0xff] }
  0x3b   : > { %3011 = vmatprep.subr.bf16.mxu0 %v3010_v3  ;;  %3338 = vmatprep.subr.bf16.mxu1 %v3010_v3  ;;  %v909_v55 = vld [vmem:[%s4398_s2 + $0x80] sm:$0xff]  ;;  %vm645_vm10 = vcmask 261120   ;;  %vm1442_vm13 = vcmask 64512   ;;  %vm1651_vm14 = vcmask 1041408   ;;  %p4423_p9 = scmp.ne.s32.totalorder %s4414_s27, 0 }
  0x3c   : > { %s2458_s13 = sshll.u32 %s3647_s26, 6  ;;  %3013 = vmatpush3.bf16.msra.mxu0 %v3010_v3  ;;  %3339 = vmatpush3.bf16.msra.mxu1 %v3010_v3  ;;  %v3026_v0 = vpack.c.bf16 %v910_v56, %v909_v55  ;;  %v893_v1 = vld [vmem:[%s4398_s2] sm:$0xff]  ;;  %v902_v56 = vld [vmem:[%s4398_s2 + $0x48] sm:$0xff]  ;;  %s2406_s24 = sshll.u32 %s3647_s26, 2 }
  0x3d   : > { %3014 = vmatprep.subr.bf16.mxu1 %v3496_v11  ;;  %3020 = vmatprep.subr.bf16.mxu0 %v3496_v11  ;;  %s3695_s15 = scalar_lea.vmem %s4404_s8, %s2458_s13  ;;  %v901_v55 = vld [vmem:[%s4398_s2 + $0x40] sm:$0xff] }
  0x3e   : > { %s419_s29 = scalar_lea.vmem %s4421_s0, %s2458_s13  ;;  %s4411_s0 = sand.u32 1, %s3483_s18  }
  0x3f   : > { %v433_v2 = vld [vmem:[%s419_s29] sm:$0xff]  ;;  %v434_v5 = vld [vmem:[%s419_s29 + $0x8] sm:$0xff]  ;;  %v435_v7 = vld [vmem:[%s419_s29 + $0x10] sm:$0xff] }
  0x40   : > { %2836 = vmatprep.mubr.msk.f32.mxu0 %vm448_vm0, %v433_v2  ;;  %v437_v4 = vld [vmem:[%s419_s29 + $0x20] sm:$0xff]  ;;  %v438_v6 = vld [vmem:[%s419_s29 + $0x28] sm:$0xff]  ;;  %v439_v8 = vld [vmem:[%s419_s29 + $0x30] sm:$0xff] }
  0x41   : > { %2842 = vmatprep.mubr.msk.f32.mxu1 %vm448_vm0, %v437_v4  ;;  %2837 = vmatmul.mubr.msk.f32.vlgmr.msra.gmra.mrb[0].mxu0 %vm448_vm0, %v434_v5  ;;  %v436_v9 = vld [vmem:[%s419_s29 + $0x18] sm:$0xff]  ;;  %v894_v5 = vld [vmem:[%s4398_s2 + $0x8] sm:$0xff] }
  0x42   : > { %2843 = vmatmul.mubr.msk.f32.vlgmr.msra.gmra.mrb[0].mxu1 %vm448_vm0, %v438_v6  ;;  %2839 = vmatprep.mubr.msk.f32.mxu0 %vm448_vm0, %v435_v7  ;;  %v440_v10 = vld [vmem:[%s419_s29 + $0x38] sm:$0xff]  ;;  %v941_v6 = vld [vmem:[%s4398_s2 + $0x180] sm:$0xff]  ;;  %v942_v7 = vld [vmem:[%s4398_s2 + $0x188] sm:$0xff]  ;;  %s2401_s29 = sshll.u32 %s4411_s0, 4  ;;  %s428_s0 = scalar_lea.vmem %s4406_s10, %s2406_s24 }
  0x43   : > { %2845 = vmatprep.mubr.msk.f32.mxu1 %vm448_vm0, %v439_v8  ;;  %v911_v8 = vld [vmem:[%s4398_s2 + $0x90] sm:$0xff]  ;;  %s4422_s24 = sand.u32 1, %s3483_s18  }
  0x44   : > { %s4348_s16 = scalar_lea.sflag [#allocation4], %s4422_s24 }
  0x45   : > { %2840 = vmatmul.mubr.msk.f32.gmra.mrb[2].mxu0 %vm448_vm0, %v436_v9  ;;  %v912_v9 = vld [vmem:[%s4398_s2 + $0x98] sm:$0xff] }
  0x46   : > { %2846 = vmatmul.mubr.msk.f32.gmra.mrb[2].mxu1 %vm448_vm0, %v440_v10  ;;  %2891 = vmatprep.mubr.msk.f32.mxu0 %vm3497_vm1, %v3498_v12 }
  0x47   : > { %2856 = vmatprep.mubr.msk.f32.mxu1 %vm3497_vm1, %v3498_v12 }
 0x114   : > { %v2838_v14 = vpop.f32.mrb[0].mxu0 }
 0x115   : > { %v2844_v15 = vpop.f32.mrb[0].mxu1  ;;  %v545_v16 = vadd.f32 %v2838_v14, %v2408_v13  ;;  %v539_v17 = vpop.f32.mrb[1].mxu0 }
 0x116   : > { %v565_v18 = vadd.f32 %v2844_v15, %v2408_v13  ;;  %v559_v19 = vpop.f32.mrb[1].mxu1  ;;  %v540_v21 = vadd.f32 %v2408_v13, %v539_v17  ;;  %v3028_v15 = vpack.c.bf16 %v894_v5, %v893_v1  ;;  %v896_v17 = vld [vmem:[%s4398_s2 + $0x18] sm:$0xff]  ;;  %v950_v1 = vld [vmem:[%s4398_s2 + $0x1c8] sm:$0xff] }
 0x117   : > { %v560_v22 = vadd.f32 %v2408_v13, %v559_v19  ;;  %vm579_vm2 = vcmp.ge.f32.partialorder %v545_v16, 0.0  ;;  %v587_v23 = vmul.f32 0.2, %v545_v16 }
 0x118   : > { %vm583_vm3 = vcmp.ge.f32.partialorder %v565_v18, 0.0  ;;  %v591_v24 = vmul.f32 0.2, %v565_v18  ;;  %vm578_vm4 = vcmp.ge.f32.partialorder %v540_v21, 0.0  ;;  %v586_v25 = vmul.f32 0.2, %v540_v21 }
 0x119   : > { %v2841_v26 = vpop.f32.mrb[2].mxu0  ;;  %vm582_vm5 = vcmp.ge.f32.partialorder %v560_v22, 0.0  ;;  %v2847_v27 = vpop.f32.mrb[2].mxu1  ;;  %v595_v28 = vsel %vm579_vm2, %v545_v16, %v587_v23  ;;  %v590_v33 = vmul.f32 0.2, %v560_v22  ;;  %v895_v16 = vld [vmem:[%s4398_s2 + $0x10] sm:$0xff] }
 0x11a   : > { %v555_v30 = vadd.f32 %v2841_v26, %v2408_v13  ;;  %v549_v31 = vpop.f32.mrb[3].mxu0  ;;  %v599_v32 = vsel %vm583_vm3, %v565_v18, %v591_v24  ;;  %v569_v34 = vpop.f32.mrb[3].mxu1  ;;  %v608_v35 = vmul.f32 %v3681_v20, %v595_v28  ;;  %v594_v36 = vsel %vm578_vm4, %v540_v21, %v586_v25  ;;  %v913_v21 = vld [vmem:[%s4398_s2 + $0xa0] sm:$0xff]  ;;  %v926_v23 = vld [vmem:[%s4398_s2 + $0x108] sm:$0xff]  ;;  %v943_v25 = vld [vmem:[%s4398_s2 + $0x190] sm:$0xff] }
 0x11b   : > { %v550_v37 = vadd.f32 %v2408_v13, %v549_v31  ;;  %v612_v38 = vmul.f32 %v3681_v20, %v599_v32  ;;  %v607_v39 = vmul.f32 %v3681_v20, %v594_v36  ;;  %v598_v41 = vsel %vm582_vm5, %v560_v22, %v590_v33  ;;  %v925_v22 = vld [vmem:[%s4398_s2 + $0x100] sm:$0xff]  ;;  %v914_v24 = vld [vmem:[%s4398_s2 + $0xa8] sm:$0xff]  ;;  %v944_v26 = vld [vmem:[%s4398_s2 + $0x198] sm:$0xff] }
 0x11c   : > { %vm581_vm6 = vcmp.ge.f32.partialorder %v555_v30, 0.0  ;;  %v589_v40 = vmul.f32 0.2, %v555_v30  ;;  %v621_v42 = vadd.f32 %v3686_v29, %v608_v35  ;;  %v611_v47 = vmul.f32 %v3681_v20, %v598_v41  ;;  %v915_v33 = vld [vmem:[%s4398_s2 + $0xb0] sm:$0xff]  ;;  %v928_v36 = vld [vmem:[%s4398_s2 + $0x118] sm:$0xff] }
 0x11d   : > { %vm580_vm7 = vcmp.ge.f32.partialorder %v550_v37, 0.0  ;;  %v588_v43 = vmul.f32 0.2, %v550_v37  ;;  %v625_v44 = vadd.f32 %v3686_v29, %v612_v38  ;;  %v620_v45 = vadd.f32 %v3686_v29, %v607_v39  ;;  %v927_v35 = vld [vmem:[%s4398_s2 + $0x110] sm:$0xff]  ;;  %v945_v38 = vld [vmem:[%s4398_s2 + $0x1a0] sm:$0xff]  ;;  %v946_v39 = vld [vmem:[%s4398_s2 + $0x1a8] sm:$0xff] }
 0x11e   : > { %v597_v46 = vsel %vm581_vm6, %v555_v30, %v589_v40  ;;  %v575_v48 = vadd.f32 %v2847_v27, %v2408_v13  ;;  %629 = vst [vmem:[%s3695_s15 + $0x8] sm:$0xff] %v621_v42  ;;  %v570_v51 = vadd.f32 %v2408_v13, %v569_v34  ;;  %v624_v54 = vadd.f32 %v3686_v29, %v611_v47  ;;  %v636_v13 = vld [vmem:[%s4400_s4] sm:$0xff]  ;;  %v637_v27 = vld [vmem:[%s4400_s4 + $0x8] sm:$0xff]  ;;  %v638_v40 = vld [vmem:[%s4400_s4 + $0x10] sm:$0xff] }
 0x11f   : > { %v610_v49 = vmul.f32 %v3681_v20, %v597_v46  ;;  %v596_v50 = vsel %vm580_vm7, %v550_v37, %v588_v43  ;;  %633 = vst [vmem:[%s3695_s15 + $0x28] sm:$0xff] %v625_v44  ;;  %628 = vst [vmem:[%s3695_s15] sm:$0xff] %v620_v45  ;;  %v3015_v53 = vpack.c.bf16 %v621_v42, %v620_v45  ;;  %v898_v30 = vld [vmem:[%s4398_s2 + $0x28] sm:$0xff]  ;;  %v916_v37 = vld [vmem:[%s4398_s2 + $0xb8] sm:$0xff] }
 0x120   : > { %v609_v52 = vmul.f32 %v3681_v20, %v596_v50  ;;  %vm585_vm8 = vcmp.ge.f32.partialorder %v575_v48, 0.0  ;;  %v593_v58 = vmul.f32 0.2, %v575_v48  ;;  %vm584_vm9 = vcmp.ge.f32.partialorder %v570_v51, 0.0  ;;  %632 = vst [vmem:[%s3695_s15 + $0x20] sm:$0xff] %v624_v54  ;;  %v899_v42 = vld [vmem:[%s4398_s2 + $0x30] sm:$0xff] }
 0x121   : > { %v623_v57 = vadd.f32 %v3686_v29, %v610_v49  ;;  %v592_v59 = vmul.f32 0.2, %v570_v51  ;;  %3016 = vmatpush3.bf16.msra.mxu1 %v3015_v53  ;;  %v3021_v61 = vpack.c.bf16 %v625_v44, %v624_v54  ;;  %v3058_v18 = vpack.c.bf16 %v942_v7, %v941_v6  ;;  %v900_v43 = vld [vmem:[%s4398_s2 + $0x38] sm:$0xff]  ;;  %v917_v46 = vld [vmem:[%s4398_s2 + $0xc0] sm:$0xff]  ;;  %v930_v49 = vld [vmem:[%s4398_s2 + $0x128] sm:$0xff] }
 0x122   : > { %v622_v60 = vadd.f32 %v3686_v29, %v609_v52  ;;  %3017 = vmatprep.subr.bf16.mxu1 %v3496_v11  ;;  %v601_v62 = vsel %vm585_vm8, %v575_v48, %v593_v58  ;;  %v3032_v28 = vpack.c.bf16 %v896_v17, %v895_v16  ;;  %v3060_v31 = vpack.c.bf16 %v926_v23, %v925_v22  ;;  %v929_v48 = vld [vmem:[%s4398_s2 + $0x120] sm:$0xff]  ;;  %v918_v50 = vld [vmem:[%s4398_s2 + $0xc8] sm:$0xff]  ;;  %v948_v52 = vld [vmem:[%s4398_s2 + $0x1b8] sm:$0xff] }
 0x123   : > { %631 = vst [vmem:[%s3695_s15 + $0x18] sm:$0xff] %v623_v57  ;;  %v600_v63 = vsel %vm584_vm9, %v570_v51, %v592_v59  ;;  %v614_v3 = vmul.f32 %v3681_v20, %v601_v62  ;;  %3022 = vmatpush3.bf16.msra.mxu0 %v3021_v61  ;;  %v3034_v32 = vpack.c.bf16 %v914_v24, %v913_v21  ;;  %v947_v51 = vld [vmem:[%s4398_s2 + $0x1b0] sm:$0xff]  ;;  %v639_v53 = vld [vmem:[%s4400_s4 + $0x18] sm:$0xff]  ;;  %v644_v24 = vld [vmem:[%s4400_s4 + $0x40] sm:$0xff] }
 0x124   : > { %630 = vst [vmem:[%s3695_s15 + $0x10] sm:$0xff] %v622_v60  ;;  %v3018_v2 = vpack.c.bf16 %v623_v57, %v622_v60  ;;  %v613_v4 = vmul.f32 %v3681_v20, %v600_v63  ;;  %3023 = vmatprep.subr.bf16.mxu0 %v3496_v11  ;;  %v3030_v20 = vpack.c.bf16 %v912_v9, %v911_v8  ;;  %v919_v59 = vld [vmem:[%s4398_s2 + $0xd0] sm:$0xff]  ;;  %v932_v62 = vld [vmem:[%s4398_s2 + $0x138] sm:$0xff]  ;;  %v933_v9 = vld [vmem:[%s4398_s2 + $0x140] sm:$0xff] }
 0x125   : > { %v627_v10 = vadd.f32 %v3686_v29, %v614_v3  ;;  %v3062_v34 = vpack.c.bf16 %v944_v26, %v943_v25  ;;  %v3064_v44 = vpack.c.bf16 %v928_v36, %v927_v35  ;;  %v3038_v45 = vpack.c.bf16 %v916_v37, %v915_v33  ;;  %v931_v61 = vld [vmem:[%s4398_s2 + $0x130] sm:$0xff]  ;;  %v920_v63 = vld [vmem:[%s4398_s2 + $0xd8] sm:$0xff]  ;;  %v953_v37 = vld [vmem:[%s4398_s2 + $0x1e0] sm:$0xff] }
 0x126   : > { %3019 = vmatpush3.bf16.msra.mxu1 %v3018_v2  ;;  %v626_v14 = vadd.f32 %v3686_v29, %v613_v4  ;;  %v897_v29 = vld [vmem:[%s4398_s2 + $0x20] sm:$0xff]  ;;  %v3066_v47 = vpack.c.bf16 %v946_v39, %v945_v38  ;;  %v3040_v54 = vpack.c.bf16 %v900_v43, %v899_v42  ;;  %v3068_v57 = vpack.c.bf16 %v930_v49, %v929_v48  ;;  %v903_v4 = vld [vmem:[%s4398_s2 + $0x50] sm:$0xff]  ;;  %v904_v7 = vld [vmem:[%s4398_s2 + $0x58] sm:$0xff] }
 0x127   : > { %3027 = vmatprep.subr.bf16.mxu1 %v3026_v0  ;;  %635 = vst [vmem:[%s3695_s15 + $0x38] sm:$0xff] %v627_v10  ;;  %v3036_v41 = vpack.c.bf16 %v898_v30, %v897_v29  ;;  %v3042_v58 = vpack.c.bf16 %v918_v50, %v917_v46  ;;  %v3070_v60 = vpack.c.bf16 %v948_v52, %v947_v51  ;;  %v949_v0 = vld [vmem:[%s4398_s2 + $0x1c0] sm:$0xff]  ;;  %v642_v21 = vld [vmem:[%s4400_s4 + $0x30] sm:$0xff]  ;;  %v643_v23 = vld [vmem:[%s4400_s4 + $0x38] sm:$0xff] }
 0x128   : > { %634 = vst [vmem:[%s3695_s15 + $0x30] sm:$0xff] %v626_v14  ;;  %v3024_v19 = vpack.c.bf16 %v627_v10, %v626_v14  ;;  %v640_v2 = vld [vmem:[%s4400_s4 + $0x20] sm:$0xff]  ;;  %v3044_v3 = vpack.c.bf16 %v902_v56, %v901_v55  ;;  %v3072_v5 = vpack.c.bf16 %v932_v62, %v931_v61  ;;  %v3046_v6 = vpack.c.bf16 %v920_v63, %v919_v59  ;;  %v934_v10 = vld [vmem:[%s4398_s2 + $0x148] sm:$0xff]  ;;  %v923_v25 = vld [vmem:[%s4398_s2 + $0xf0] sm:$0xff]  ;;  %s4267_s15 = scalar_lea.vmem [#allocation5], %s2401_s29 }
 0x129   : > { %2857 = vmatmul.mubr.msk.f32.vlgmr.msra.gmra.mrb[4].mxu1 %vm645_vm10, %v636_v13  ;;  %v3074_v8 = vpack.c.bf16 %v950_v1, %v949_v0  ;;  %v922_v14 = vld [vmem:[%s4398_s2 + $0xe8] sm:$0xff]  ;;  %v3048_v16 = vpack.c.bf16 %v904_v7, %v903_v4  ;;  %v3076_v17 = vpack.c.bf16 %v934_v10, %v933_v9  ;;  %v924_v26 = vld [vmem:[%s4398_s2 + $0xf8] sm:$0xff]  ;;  %v907_v30 = vld [vmem:[%s4398_s2 + $0x70] sm:$0xff]  ;;  %s2242_s30 = sshll.u32 %s4267_s15, 4  ;;  %s4344_s30 = int_to_ptr.vmem [resolvable:$true] %s2242_s30 }
 0x12a   : > { %2859 = vmatprep.mubr.msk.f32.mxu1 %vm3497_vm1, %v3498_v12  ;;  %3025 = vmatpush3.bf16.msra.mxu0 %v3024_v19  ;;  %v905_v19 = vld [vmem:[%s4398_s2 + $0x60] sm:$0xff]  ;;  %v952_v29 = vld [vmem:[%s4398_s2 + $0x1d8] sm:$0xff]  ;;  %v954_v38 = vld [vmem:[%s4398_s2 + $0x1e8] sm:$0xff]  ;;  %s3425_s12 = scalar_lea.vmem %s4344_s30, 256 }
 0x12b   : > { %3029 = vmatpush3.bf16.msra.mxu1 %v3028_v15  ;;  %3059 = vmatprep.subr.bf16.mxu0 %v3058_v18  ;;  %v641_v15 = vld [vmem:[%s4400_s4 + $0x28] sm:$0xff]  ;;  %v936_v35 = vld [vmem:[%s4398_s2 + $0x158] sm:$0xff]  ;;  %v973_v39 = vld [vmem:[%s4398_s2 + $0x280] sm:$0xff]  ;;  %p3426_p6 = scmp.ne.s32.totalorder %s4344_s30, %s3425_s12 }
 0x12c   : > { %3031 = vmatprep.subr.bf16.mxu1 %v3030_v20  ;;  %v906_v20 = vld [vmem:[%s4398_s2 + $0x68] sm:$0xff]  ;;  %v937_v42 = vld [vmem:[%s4398_s2 + $0x160] sm:$0xff]  ;;  %v955_v46 = vld [vmem:[%s4398_s2 + $0x1f0] sm:$0xff] }
 0x12d   : > { %2860 = vmatmul.mubr.msk.f32.gmra.mrb[6].mxu1 %vm645_vm10, %v637_v27  ;;  %2892 = vmatmul.mubr.msk.f32.vlgmr.msra.gmra.mrb[4].mxu0 %vm645_vm10, %v636_v13  ;;  %v921_v13 = vld [vmem:[%s4398_s2 + $0xe0] sm:$0xff]  ;;  %v3052_v22 = vpack.c.bf16 %v906_v20, %v905_v19  ;;  %v938_v43 = vld [vmem:[%s4398_s2 + $0x168] sm:$0xff]  ;;  %v939_v49 = vld [vmem:[%s4398_s2 + $0x170] sm:$0xff]  ;;  %p3427_p10 = pnand %p3426_p6, %p4423_p9 }
 0x12e   : > { %2862 = vmatprep.mubr.msk.f32.mxu1 %vm3497_vm1, %v3498_v12  ;;  %2894 = vmatprep.mubr.msk.f32.mxu0 %vm3497_vm1, %v3498_v12  ;;  %v3050_v18 = vpack.c.bf16 %v922_v14, %v921_v13  ;;  %v940_v50 = vld [vmem:[%s4398_s2 + $0x178] sm:$0xff]  ;;  %v1005_v52 = vld [vmem:[%s4398_s2 + $0x380] sm:$0xff]  ;;  %v975_v59 = vld [vmem:[%s4398_s2 + $0x290] sm:$0xff] }
 0x12f   : > { %3033 = vmatpush3.bf16.msra.mxu1 %v3032_v28  ;;  %3061 = vmatpush3.bf16.msra.mxu0 %v3060_v31  ;;  %v3054_v28 = vpack.c.bf16 %v924_v26, %v923_v25  ;;  %v908_v31 = vld [vmem:[%s4398_s2 + $0x78] sm:$0xff]  ;;  %v3088_v51 = vpack.c.bf16 %v940_v50, %v939_v49  ;;  %v957_v56 = vld [vmem:[%s4398_s2 + $0x200] sm:$0xff]  ;;  %v959_v0 = vld [vmem:[%s4398_s2 + $0x210] sm:$0xff]  ;;  %p3428_p12 = pneg %p3427_p10 }
 0x130   : > { %3035 = vmatprep.subr.bf16.mxu1 %v3034_v32  ;;  %3063 = vmatprep.subr.bf16.mxu0 %v3062_v34  ;;  %v3056_v33 = vpack.c.bf16 %v908_v31, %v907_v30  ;;  %v935_v34 = vld [vmem:[%s4398_s2 + $0x150] sm:$0xff]  ;;  %v960_v1 = vld [vmem:[%s4398_s2 + $0x218] sm:$0xff]  ;;  %v977_v4 = vld [vmem:[%s4398_s2 + $0x2a0] sm:$0xff] }
 0x131   : > { %2863 = vmatmul.mubr.msk.f32.gmra.mrb[8].mxu1 %vm645_vm10, %v638_v40  ;;  %2895 = vmatmul.mubr.msk.f32.gmra.mrb[6].mxu0 %vm645_vm10, %v637_v27  ;;  %v951_v27 = vld [vmem:[%s4398_s2 + $0x1d0] sm:$0xff]  ;;  %v3080_v36 = vpack.c.bf16 %v936_v35, %v935_v34  ;;  %v3096_v7 = vpack.c.bf16 %v960_v1, %v959_v0  ;;  %v962_v9 = vld [vmem:[%s4398_s2 + $0x228] sm:$0xff]  ;;  %v989_v14 = vld [vmem:[%s4398_s2 + $0x300] sm:$0xff] }
 0x132   : > { %2865 = vmatprep.mubr.msk.f32.mxu1 %vm3497_vm1, %v3498_v12  ;;  %2897 = vmatprep.mubr.msk.f32.mxu0 %vm3497_vm1, %v3498_v12  ;;  %v3078_v32 = vpack.c.bf16 %v952_v29, %v951_v27  ;;  %v980_v19 = vld [vmem:[%s4398_s2 + $0x2b8] sm:$0xff]  ;;  %v1007_v20 = vld [vmem:[%s4398_s2 + $0x390] sm:$0xff]  ;;  %v982_v34 = vld [vmem:[%s4398_s2 + $0x2c8] sm:$0xff] }
 0x133   : > { %3037 = vmatpush3.bf16.msra.mxu1 %v3036_v41  ;;  %3065 = vmatpush3.bf16.msra.mxu0 %v3064_v44  ;;  %v974_v41 = vld [vmem:[%s4398_s2 + $0x288] sm:$0xff]  ;;  %v963_v25 = vld [vmem:[%s4398_s2 + $0x230] sm:$0xff]  ;;  %v964_v26 = vld [vmem:[%s4398_s2 + $0x238] sm:$0xff] }
 0x134   : > { %3039 = vmatprep.subr.bf16.mxu1 %v3038_v45  ;;  %3067 = vmatprep.subr.bf16.mxu0 %v3066_v47  ;;  %v3090_v44 = vpack.c.bf16 %v974_v41, %v973_v39  ;;  %v3084_v45 = vpack.c.bf16 %v938_v43, %v937_v42  ;;  %v956_v47 = vld [vmem:[%s4398_s2 + $0x1f8] sm:$0xff]  ;;  %v991_v30 = vld [vmem:[%s4398_s2 + $0x310] sm:$0xff]  ;;  %v1009_v35 = vld [vmem:[%s4398_s2 + $0x3a0] sm:$0xff]  ;;  %v3104_v39 = vpack.c.bf16 %v964_v26, %v963_v25 }
 0x135   : > { %2866 = vmatmul.mubr.msk.f32.gmra.mrb[10].mxu1 %vm645_vm10, %v639_v53  ;;  %2898 = vmatmul.mubr.msk.f32.gmra.mrb[8].mxu0 %vm645_vm10, %v638_v40  ;;  %v3082_v40 = vpack.c.bf16 %v954_v38, %v953_v37  ;;  %v3086_v48 = vpack.c.bf16 %v956_v47, %v955_v46  ;;  %v992_v31 = vld [vmem:[%s4398_s2 + $0x318] sm:$0xff]  ;;  %v965_v41 = vld [vmem:[%s4398_s2 + $0x240] sm:$0xff]  ;;  %v966_v42 = vld [vmem:[%s4398_s2 + $0x248] sm:$0xff] }
 0x136   : > { %2900 = vmatprep.mubr.msk.f32.mxu0 %vm3497_vm1, %v3498_v12  ;;  %2868 = vmatprep.mubr.msk.f32.mxu1 %vm3497_vm1, %v3498_v12  ;;  %v994_v46 = vld [vmem:[%s4398_s2 + $0x328] sm:$0xff]  ;;  %v983_v47 = vld [vmem:[%s4398_s2 + $0x2d0] sm:$0xff]  ;;  %v984_v50 = vld [vmem:[%s4398_s2 + $0x2d8] sm:$0xff] }
 0x137   : > { %3041 = vmatpush3.bf16.msra.mxu1 %v3040_v54  ;;  %3069 = vmatpush3.bf16.msra.mxu0 %v3068_v57  ;;  %v958_v57 = vld [vmem:[%s4398_s2 + $0x208] sm:$0xff] }
 0x138   : > { %3043 = vmatprep.subr.bf16.mxu1 %v3042_v58  ;;  %3071 = vmatprep.subr.bf16.mxu0 %v3070_v60  ;;  %v976_v60 = vld [vmem:[%s4398_s2 + $0x298] sm:$0xff]  ;;  %v3092_v61 = vpack.c.bf16 %v958_v57, %v957_v56  ;;  %v967_v57 = vld [vmem:[%s4398_s2 + $0x250] sm:$0xff] }
 0x139   : > { %2901 = vmatmul.mubr.msk.f32.gmra.mrb[10].mxu0 %vm645_vm10, %v639_v53  ;;  %2869 = vmatmul.mubr.msk.f32.gmra.mrb[12].mxu1 %vm645_vm10, %v640_v2  ;;  %v1006_v53 = vld [vmem:[%s4398_s2 + $0x388] sm:$0xff]  ;;  %v3094_v63 = vpack.c.bf16 %v976_v60, %v975_v59  ;;  %v3110_v59 = vpack.c.bf16 %v984_v50, %v983_v47  ;;  %v1019_v50 = vld [vmem:[%s4398_s2 + $0x3f0] sm:$0xff] }
 0x13a   : > { %2871 = vmatprep.mubr.msk.f32.mxu1 %vm3497_vm1, %v3498_v12  ;;  %2903 = vmatprep.mubr.msk.f32.mxu0 %vm3497_vm1, %v3498_v12  ;;  %v3122_v54 = vpack.c.bf16 %v1006_v53, %v1005_v52  ;;  %v1012_v52 = vld [vmem:[%s4398_s2 + $0x3b8] sm:$0xff] }
 0x13b   : > { %3045 = vmatpush3.bf16.msra.mxu1 %v3044_v3  ;;  %3073 = vmatpush3.bf16.msra.mxu0 %v3072_v5  ;;  %v978_v5 = vld [vmem:[%s4398_s2 + $0x2a8] sm:$0xff] }
 0x13c   : > { %3047 = vmatprep.subr.bf16.mxu1 %v3046_v6  ;;  %3075 = vmatprep.subr.bf16.mxu0 %v3074_v8  ;;  %v961_v8 = vld [vmem:[%s4398_s2 + $0x220] sm:$0xff]  ;;  %v3098_v13 = vpack.c.bf16 %v978_v5, %v977_v4  ;;  %v1014_v4 = vld [vmem:[%s4398_s2 + $0x3c8] sm:$0xff] }
 0x13d   : > { %2872 = vmatmul.mubr.msk.f32.gmra.mrb[14].mxu1 %vm645_vm10, %v641_v15  ;;  %2904 = vmatmul.mubr.msk.f32.gmra.mrb[12].mxu0 %vm645_vm10, %v640_v2 }
 0x13e   : > { %2874 = vmatprep.mubr.msk.f32.mxu1 %vm3497_vm1, %v3498_v12  ;;  %2906 = vmatprep.mubr.msk.f32.mxu0 %vm3497_vm1, %v3498_v12 }
 0x13f   : > { %3049 = vmatpush3.bf16.msra.mxu1 %v3048_v16  ;;  %3077 = vmatpush3.bf16.msra.mxu0 %v3076_v17  ;;  %v979_v16 = vld [vmem:[%s4398_s2 + $0x2b0] sm:$0xff] }
 0x140   : > { %3051 = vmatprep.subr.bf16.mxu1 %v3050_v18  ;;  %3079 = vmatprep.subr.bf16.mxu0 %v3078_v32  ;;  %v981_v32 = vld [vmem:[%s4398_s2 + $0x2c0] sm:$0xff] }
 0x141   : > { %2875 = vmatmul.mubr.msk.f32.gmra.mrb[16].mxu1 %vm645_vm10, %v642_v21  ;;  %2907 = vmatmul.mubr.msk.f32.gmra.mrb[14].mxu0 %vm645_vm10, %v641_v15  ;;  %v990_v15 = vld [vmem:[%s4398_s2 + $0x308] sm:$0xff]  ;;  %v3106_v43 = vpack.c.bf16 %v982_v34, %v981_v32  ;;  %v1000_v32 = vld [vmem:[%s4398_s2 + $0x358] sm:$0xff] }
 0x142   : > { %2877 = vmatprep.mubr.msk.f32.mxu1 %vm3497_vm1, %v3498_v12  ;;  %2909 = vmatprep.mubr.msk.f32.mxu0 %vm3497_vm1, %v3498_v12 }
 0x143   : > { %3053 = vmatpush3.bf16.msra.mxu1 %v3052_v22  ;;  %3081 = vmatpush3.bf16.msra.mxu0 %v3080_v36  ;;  %v1010_v36 = vld [vmem:[%s4398_s2 + $0x3a8] sm:$0xff] }
 0x144   : > { %3055 = vmatprep.subr.bf16.mxu1 %v3054_v28  ;;  %3083 = vmatprep.subr.bf16.mxu0 %v3082_v40  ;;  %v3102_v28 = vpack.c.bf16 %v980_v19, %v979_v16  ;;  %v3128_v40 = vpack.c.bf16 %v992_v31, %v991_v30  ;;  %v998_v16 = vld [vmem:[%s4398_s2 + $0x348] sm:$0xff]  ;;  %v999_v31 = vld [vmem:[%s4398_s2 + $0x350] sm:$0xff] }
 0x145   : > { %2878 = vmatmul.mubr.msk.f32.gmra.mrb[18].mxu1 %vm645_vm10, %v643_v23  ;;  %2910 = vmatmul.mubr.msk.f32.gmra.mrb[16].mxu0 %vm645_vm10, %v642_v21  ;;  %v1008_v21 = vld [vmem:[%s4398_s2 + $0x398] sm:$0xff] }
 0x146   : > { %2912 = vmatprep.mubr.msk.f32.mxu0 %vm3497_vm1, %v3498_v12  ;;  %2880 = vmatprep.mubr.msk.f32.mxu1 %vm3497_vm1, %v3498_v12  ;;  %v3126_v29 = vpack.c.bf16 %v1008_v21, %v1007_v20  ;;  %v988_v20 = vld [vmem:[%s4398_s2 + $0x2f8] sm:$0xff]  ;;  %v1015_v21 = vld [vmem:[%s4398_s2 + $0x3d0] sm:$0xff] }
 0x147   : > { %3057 = vmatpush3.bf16.msra.mxu1 %v3056_v33  ;;  %3085 = vmatpush3.bf16.msra.mxu0 %v3084_v45  ;;  %v993_v45 = vld [vmem:[%s4398_s2 + $0x320] sm:$0xff] }
 0x148   : > { %3091 = vmatprep.subr.bf16.mxu1 %v3090_v44  ;;  %3087 = vmatprep.subr.bf16.mxu0 %v3086_v48  ;;  %v3130_v44 = vpack.c.bf16 %v1010_v36, %v1009_v35  ;;  %v3132_v56 = vpack.c.bf16 %v994_v46, %v993_v45  ;;  %v1018_v36 = vld [vmem:[%s4398_s2 + $0x3e8] sm:$0xff]  ;;  %v1001_v45 = vld [vmem:[%s4398_s2 + $0x360] sm:$0xff] }
 0x149   : > { %2913 = vmatmul.mubr.msk.f32.gmra.mrb[18].mxu0 %vm645_vm10, %v643_v23  ;;  %2881 = vmatmul.mubr.msk.f32.gmra.mrb[20].mxu1 %vm645_vm10, %v644_v24  ;;  %v3100_v23 = vpack.c.bf16 %v962_v9, %v961_v8  ;;  %v969_v9 = vld [vmem:[%s4398_s2 + $0x260] sm:$0xff]  ;;  %v1002_v46 = vld [vmem:[%s4398_s2 + $0x368] sm:$0xff] }
 0x14a   : > { %2915 = vmatprep.mubr.msk.f32.mxu0 %vm3497_vm1, %v3498_v12 }
 0x14b   : > { %3089 = vmatpush3.bf16.msra.mxu0 %v3088_v51  ;;  %v1011_v51 = vld [vmem:[%s4398_s2 + $0x3b0] sm:$0xff] }
 0x14c   : > { %3123 = vmatprep.subr.bf16.mxu0 %v3122_v54  ;;  %v3134_v60 = vpack.c.bf16 %v1012_v52, %v1011_v51  ;;  %v1020_v51 = vld [vmem:[%s4398_s2 + $0x3f8] sm:$0xff] }
 0x14d   : > { %2916 = vmatmul.mubr.msk.f32.gmra.mrb[20].mxu0 %vm645_vm10, %v644_v24  ;;  %v3124_v24 = vpack.c.bf16 %v990_v15, %v989_v14  ;;  %v997_v15 = vld [vmem:[%s4398_s2 + $0x340] sm:$0xff] }
 0x14e   : > { %v3140_v26 = vpack.c.bf16 %v998_v16, %v997_v15  ;;  %v1035_v16 = vld [vmem:[%s4398_s2 + $0x470] sm:$0xff] }
 0x1fc   : > { %v739_v55 = vpop.f32.mrb[4].mxu1 }
 0x1fd   : > { %v2858_v58 = vpop.f32.mrb[5].mxu1 }
 0x1fe   : > { %v968_v58 = vld [vmem:[%s4398_s2 + $0x258] sm:$0xff] }
 0x200   : > { %v744_v62 = vpop.f32.mrb[6].mxu1  ;;  %v849_v2 = vpop.f32.mrb[4].mxu0 }
 0x201   : > { %v2861_v3 = vpop.f32.mrb[7].mxu1  ;;  %1106 = vmatprep.mubr.f32.mxu1 %v744_v62  ;;  %v2893_v6 = vpop.f32.mrb[5].mxu0  ;;  %v996_v62 = vld [vmem:[%s4398_s2 + $0x338] sm:$0xff] }
 0x202   : > { %1107 = vmatmul.mubr.f32.vlgmr.msra.gmra.mrb[22].mxu1 %v739_v55  ;;  %v3108_v55 = vpack.c.bf16 %v966_v42, %v965_v41  ;;  %v1013_v3 = vld [vmem:[%s4398_s2 + $0x3c0] sm:$0xff]  ;;  %v3144_v42 = vpack.c.bf16 %v1000_v32, %v999_v31 }
 0x203   : > { %3093 = vmatpush3.bf16.msra.mxu1 %v3092_v61  ;;  %v995_v61 = vld [vmem:[%s4398_s2 + $0x330] sm:$0xff]  ;;  %v3138_v14 = vpack.c.bf16 %v1014_v4, %v1013_v3 }
 0x204   : > { %3095 = vmatprep.subr.bf16.mxu1 %v3094_v63  ;;  %v749_v10 = vpop.f32.mrb[8].mxu1  ;;  %v854_v17 = vpop.f32.mrb[6].mxu0  ;;  %v985_v63 = vld [vmem:[%s4398_s2 + $0x2e0] sm:$0xff]  ;;  %v3136_v8 = vpack.c.bf16 %v996_v62, %v995_v61  ;;  %v1027_v4 = vld [vmem:[%s4398_s2 + $0x430] sm:$0xff] }
 0x205   : > { %v2864_v18 = vpop.f32.mrb[9].mxu1  ;;  %v2896_v22 = vpop.f32.mrb[7].mxu0  ;;  %1111 = vmatprep.mubr.f32.mxu1 %v854_v17  ;;  %v987_v17 = vld [vmem:[%s4398_s2 + $0x2f0] sm:$0xff]  ;;  %v1025_v62 = vld [vmem:[%s4398_s2 + $0x420] sm:$0xff] }
 0x206   : > { %1112 = vmatmul.mubr.f32.gmra.mrb[24].mxu1 %v849_v2  ;;  %v986_v2 = vld [vmem:[%s4398_s2 + $0x2e8] sm:$0xff]  ;;  %v1016_v22 = vld [vmem:[%s4398_s2 + $0x3d8] sm:$0xff] }
 0x207   : > { %3097 = vmatpush3.bf16.msra.mxu1 %v3096_v7  ;;  %v3112_v7 = vpack.c.bf16 %v968_v58, %v967_v57  ;;  %v3142_v30 = vpack.c.bf16 %v1016_v22, %v1015_v21  ;;  %v3150_v57 = vpack.c.bf16 %v1020_v51, %v1019_v50  ;;  %v1003_v58 = vld [vmem:[%s4398_s2 + $0x370] sm:$0xff] }
 0x208   : > { %v754_v27 = vpop.f32.mrb[10].mxu1  ;;  %3099 = vmatprep.subr.bf16.mxu1 %v3098_v13  ;;  %v859_v33 = vpop.f32.mrb[8].mxu0  ;;  %v3114_v13 = vpack.c.bf16 %v986_v2, %v985_v63  ;;  %v1026_v63 = vld [vmem:[%s4398_s2 + $0x428] sm:$0xff] }
 0x209   : > { %1181 = vmatprep.mubr.f32.mxu0 %v754_v27  ;;  %v2867_v37 = vpop.f32.mrb[11].mxu1  ;;  %v2899_v38 = vpop.f32.mrb[9].mxu0  ;;  %v971_v27 = vld [vmem:[%s4398_s2 + $0x270] sm:$0xff]  ;;  %v3162_v3 = vpack.c.bf16 %v1026_v63, %v1025_v62 }
 0x20a   : > { %1182 = vmatmul.mubr.f32.vlgmr.msra.gmra.mrb[22].mxu0 %v749_v10  ;;  %v970_v10 = vld [vmem:[%s4398_s2 + $0x268] sm:$0xff]  ;;  %v1021_v37 = vld [vmem:[%s4398_s2 + $0x400] sm:$0xff] }
 0x20b   : > { %3101 = vmatpush3.bf16.msra.mxu1 %v3100_v23  ;;  %3125 = vmatpush3.bf16.msra.mxu0 %v3124_v24  ;;  %v3116_v25 = vpack.c.bf16 %v970_v10, %v969_v9  ;;  %v1022_v38 = vld [vmem:[%s4398_s2 + $0x408] sm:$0xff]  ;;  %v1032_v9 = vld [vmem:[%s4398_s2 + $0x458] sm:$0xff] }
 0x20c   : > { %3103 = vmatprep.subr.bf16.mxu1 %v3102_v28  ;;  %3127 = vmatprep.subr.bf16.mxu0 %v3126_v29  ;;  %v864_v48 = vpop.f32.mrb[10].mxu0  ;;  %v4090_v49 = vpop.f32.mrb[12].mxu1  ;;  %v972_v28 = vld [vmem:[%s4398_s2 + $0x278] sm:$0xff]  ;;  %v3118_v29 = vpack.c.bf16 %v988_v20, %v987_v17 }
 0x20d   : > { %1186 = vmatprep.mubr.f32.mxu0 %v864_v48  ;;  %v2870_v53 = vpop.f32.mrb[13].mxu1  ;;  %v2902_v54 = vpop.f32.mrb[11].mxu0  ;;  %v3120_v41 = vpack.c.bf16 %v972_v28, %v971_v27  ;;  %v1036_v17 = vld [vmem:[%s4398_s2 + $0x478] sm:$0xff] }
 0x20e   : > { %1187 = vmatmul.mubr.f32.gmra.mrb[24].mxu0 %v859_v33  ;;  %v1017_v33 = vld [vmem:[%s4398_s2 + $0x3e0] sm:$0xff]  ;;  %v1023_v54 = vld [vmem:[%s4398_s2 + $0x410] sm:$0xff] }
 0x20f   : > { %3105 = vmatpush3.bf16.msra.mxu1 %v3104_v39  ;;  %3129 = vmatpush3.bf16.msra.mxu0 %v3128_v40 }
 0x210   : > { %3107 = vmatprep.subr.bf16.mxu1 %v3106_v43  ;;  %3131 = vmatprep.subr.bf16.mxu0 %v3130_v44  ;;  %v764_v0 = vpop.f32.mrb[14].mxu1  ;;  %v4116_v1 = vpop.f32.mrb[12].mxu0  ;;  %v3146_v43 = vpack.c.bf16 %v1018_v36, %v1017_v33  ;;  %v3154_v44 = vpack.c.bf16 %v1022_v38, %v1021_v37 }
 0x211   : > { %v2873_v5 = vpop.f32.mrb[15].mxu1  ;;  %1256 = vmatprep.mubr.f32.mxu1 %v764_v0  ;;  %v2905_v6 = vpop.f32.mrb[13].mxu0 }
 0x212   : > { %v1028_v5 = vld [vmem:[%s4398_s2 + $0x438] sm:$0xff]  ;;  %v1029_v6 = vld [vmem:[%s4398_s2 + $0x440] sm:$0xff] }
 0x213   : > { %3109 = vmatpush3.bf16.msra.mxu1 %v3108_v55  ;;  %3133 = vmatpush3.bf16.msra.mxu0 %v3132_v56  ;;  %v1024_v55 = vld [vmem:[%s4398_s2 + $0x418] sm:$0xff]  ;;  %v3148_v56 = vpack.c.bf16 %v1002_v46, %v1001_v45 }
 0x214   : > { %3111 = vmatprep.subr.bf16.mxu1 %v3110_v59  ;;  %3135 = vmatprep.subr.bf16.mxu0 %v3134_v60  ;;  %v4142_v18 = vpop.f32.mrb[14].mxu0  ;;  %v4144_v19 = vpop.f32.mrb[16].mxu1  ;;  %v1004_v59 = vld [vmem:[%s4398_s2 + $0x378] sm:$0xff]  ;;  %v3158_v61 = vpack.c.bf16 %v1024_v55, %v1023_v54 }
 0x215   : > { %v2876_v23 = vpop.f32.mrb[17].mxu1  ;;  %v2908_v24 = vpop.f32.mrb[15].mxu0  ;;  %v3152_v2 = vpack.c.bf16 %v1004_v59, %v1003_v58  ;;  %v2438_v58 = vld [vmem:[%s4402_s6 + $0x4] ss:$0 sm:$0xff] }
 0x217   : > { %3113 = vmatpush3.bf16.msra.mxu1 %v3112_v7  ;;  %3137 = vmatpush3.bf16.msra.mxu0 %v3136_v8  ;;  %v1030_v7 = vld [vmem:[%s4398_s2 + $0x448] sm:$0xff]  ;;  %v1031_v8 = vld [vmem:[%s4398_s2 + $0x450] sm:$0xff] }
 0x218   : > { %3115 = vmatprep.subr.bf16.mxu1 %v3114_v13  ;;  %3139 = vmatprep.subr.bf16.mxu0 %v3138_v14  ;;  %v774_v34 = vpop.f32.mrb[18].mxu1  ;;  %v4170_v35 = vpop.f32.mrb[16].mxu0  ;;  %v3174_v10 = vpack.c.bf16 %v1032_v9, %v1031_v8  ;;  %v1033_v13 = vld [vmem:[%s4398_s2 + $0x460] sm:$0xff]  ;;  %v1034_v14 = vld [vmem:[%s4398_s2 + $0x468] sm:$0xff] }
 0x219   : > { %1331 = vmatprep.mubr.f32.mxu0 %v774_v34  ;;  %v2911_v39 = vpop.f32.mrb[17].mxu0  ;;  %v2879_v40 = vpop.f32.mrb[19].mxu1  ;;  %v3178_v15 = vpack.c.bf16 %v1034_v14, %v1033_v13  ;;  %v1693_v8 = vld [vmem:[#allocation2 + $0x100] sm:$0xff]  ;;  %v1694_v9 = vld [vmem:[#allocation2 + $0x108] sm:$0xff] }
 0x21b   : > { %3117 = vmatpush3.bf16.msra.mxu1 %v3116_v25  ;;  %3141 = vmatpush3.bf16.msra.mxu0 %v3140_v26  ;;  %v2437_v25 = vld [vmem:[%s4402_s6 + $0x3] ss:$0 sm:$0xff] }
 0x21c   : > { %3119 = vmatprep.subr.bf16.mxu1 %v3118_v29  ;;  %3143 = vmatprep.subr.bf16.mxu0 %v3142_v30  ;;  %v884_v47 = vpop.f32.mrb[18].mxu0  ;;  %v779_v48 = vpop.f32.mrb[20].mxu1 }
 0x21d   : > { %v2914_v52 = vpop.f32.mrb[19].mxu0  ;;  %v2882_v53 = vpop.f32.mrb[21].mxu1 }
 0x21f   : > { %3121 = vmatpush3.bf16.msra.mxu1 %v3120_v41  ;;  %3145 = vmatpush3.bf16.msra.mxu0 %v3144_v42 }
 0x220   : > { %3147 = vmatprep.subr.bf16.mxu0 %v3146_v43  ;;  %3155 = vmatprep.subr.bf16.mxu1 %v3154_v44  ;;  %v889_v60 = vpop.f32.mrb[20].mxu0 }
 0x221   : > { %v2917_v0 = vpop.f32.mrb[21].mxu0 }
 0x222   : > { %1257 = vmatmul.mubr.f32.vlgmr.msra.gmra.mrb[26].mxu1 %v4090_v49  ;;  %v3166_v49 = vpack.c.bf16 %v1028_v5, %v1027_v4  ;;  %v1677_v0 = vld [vmem:[#allocation2 + $0x80] sm:$0xff]  ;;  %v1662_v5 = vld [vmem:[#allocation2 + $0x8] sm:$0xff] }
 0x223   : > { %3149 = vmatpush3.bf16.msra.mxu0 %v3148_v56  ;;  %3157 = vmatpush3.bf16.msra.mxu1 %v3154_v44 }
 0x224   : > { %1261 = vmatprep.mubr.f32.mxu1 %v4142_v18  ;;  %3151 = vmatprep.subr.bf16.mxu0 %v3150_v57  ;;  %v3182_v18 = vpack.c.bf16 %v1036_v17, %v1035_v16  ;;  %v1679_v16 = vld [vmem:[#allocation2 + $0x90] sm:$0xff]  ;;  %v1680_v17 = vld [vmem:[#allocation2 + $0x98] sm:$0xff] }
 0x225   : > { %3159 = vmatprep.subr.bf16.mxu1 %v3158_v61 }
 0x226   : > { %1262 = vmatmul.mubr.f32.gmra.mrb[28].mxu1 %v4116_v1  ;;  %v3170_v1 = vpack.c.bf16 %v1030_v7, %v1029_v6  ;;  %v1710_v6 = vld [vmem:[#allocation2 + $0x188] sm:$0xff] }
 0x227   : > { %3153 = vmatpush3.bf16.msra.mxu0 %v3152_v2  ;;  %3161 = vmatpush3.bf16.msra.mxu1 %v3158_v61  ;;  %v2439_v61 = vld [vmem:[%s4402_s6 + $0x5] ss:$0 sm:$0xff]  ;;  %v1678_v2 = vld [vmem:[#allocation2 + $0x88] sm:$0xff] }
 0x228   : > { %3163 = vmatprep.subr.bf16.mxu1 %v3162_v3  ;;  %2950 = vmatprep.mubr.f32.mxu1 %v779_v48  ;;  %v3186_v13 = vpack.c.bf16 %v1678_v2, %v1677_v0  ;;  %v1702_v2 = vld [vmem:[#allocation2 + $0x148] sm:$0xff] }
 0x229   : > { %2964 = vmatprep.subr.mxu0 %v3498_v12 }
 0x22a   : > { %1332 = vmatmul.mubr.f32.vlgmr.msra.gmra.mrb[26].mxu0 %v4144_v19 }
 0x22b   : > { %3165 = vmatpush3.bf16.msra.mxu1 %v3162_v3  ;;  %1336 = vmatprep.mubr.f32.mxu0 %v884_v47  ;;  %v1661_v3 = vld [vmem:[#allocation2] sm:$0xff] }
 0x22c   : > { %3167 = vmatprep.subr.bf16.mxu1 %v3166_v49  ;;  %v3188_v14 = vpack.c.bf16 %v1662_v5, %v1661_v3  ;;  %v1687_v3 = vld [vmem:[#allocation2 + $0xd0] sm:$0xff] }
 0x22d   : > { %v1719_v5 = vld [vmem:[#allocation2 + $0x1d0] sm:$0xff] }
 0x22e   : > { %1337 = vmatmul.mubr.f32.gmra.mrb[28].mxu0 %v4170_v35 }
 0x22f   : > { %3169 = vmatpush3.bf16.msra.mxu1 %v3166_v49  ;;  %2966 = vmatprep.mubr.msk.f32.mxu0 %vm3497_vm1, %v3498_v12  ;;  %v1709_v49 = vld [vmem:[#allocation2 + $0x180] sm:$0xff] }
 0x230   : > { %3171 = vmatprep.subr.bf16.mxu1 %v3170_v1 }
 0x233   : > { %3173 = vmatpush3.bf16.msra.mxu1 %v3170_v1  ;;  %v1439_v1 = vld [vmem:[%s4401_s5] sm:$0xff] }
 0x234   : > { %3175 = vmatprep.subr.bf16.mxu1 %v3174_v10 }
 0x237   : > { %3177 = vmatpush3.bf16.msra.mxu1 %v3174_v10 }
 0x238   : > { %3179 = vmatprep.subr.bf16.mxu1 %v3178_v15 }
 0x23b   : > { %3181 = vmatpush3.bf16.msra.mxu1 %v3178_v15  ;;  %v3218_v15 = vpack.c.bf16 %v1710_v6, %v1709_v49  ;;  %v1720_v49 = vld [vmem:[#allocation2 + $0x1d8] sm:$0xff] }
 0x23c   : > { %3183 = vmatprep.subr.bf16.mxu1 %v3182_v18 }
 0x23f   : > { %3185 = vmatpush3.bf16.msra.mxu1 %v3182_v18  ;;  %v1663_v18 = vld [vmem:[#allocation2 + $0x10] sm:$0xff] }
 0x240   : > { %2953 = vmatprep.subr.mxu1 %v3498_v12 }
 0x242   : > { %2951 = vmatmul.mubr.f32.vlgmr.msra.gmra.mrb[30].mxu1 %v889_v60 }
 0x243   : > { %2955 = vmatprep.mubr.msk.f32.mxu1 %vm3497_vm1, %v3498_v12 }
 0x2d5   : > { %v2529_v19 = vpop.f32.mrb[22].mxu1 }
 0x2d6   : > { %v2530_v20 = vpop.f32.mrb[23].mxu1 }
 0x2d7   : > { %v2531_v21 = vadd.f32 %v2530_v20, %v2529_v19  ;;  %v3220_v19 = vpack.c.bf16 %v1694_v9, %v1693_v8  ;;  %v1664_v20 = vld [vmem:[#allocation2 + $0x18] sm:$0xff]  ;;  %v1671_v8 = vld [vmem:[#allocation2 + $0x50] sm:$0xff] }
 0x2d8   : > { %v1672_v9 = vld [vmem:[#allocation2 + $0x58] sm:$0xff] }
 0x2d9   : > { %v2532_v22 = vpop.f32.mrb[24].mxu1  ;;  %v1109_v28 = vadd.f32 %v2531_v21, %v2437_v25  ;;  %v1711_v21 = vld [vmem:[#allocation2 + $0x190] sm:$0xff] }
 0x2da   : > { %v2533_v23 = vpop.f32.mrb[25].mxu1 }
 0x2db   : > { %v2534_v24 = vadd.f32 %v2533_v23, %v2532_v22  ;;  %v1712_v22 = vld [vmem:[#allocation2 + $0x198] sm:$0xff]  ;;  %v1440_v23 = vld [vmem:[%s4401_s5 + $0x8] sm:$0xff] }
 0x2dd   : > { %v2567_v26 = vpop.f32.mrb[22].mxu0  ;;  %v1114_v31 = vadd.f32 %v2534_v24, %v2437_v25  ;;  %v1695_v24 = vld [vmem:[#allocation2 + $0x110] sm:$0xff]  ;;  %v1696_v25 = vld [vmem:[#allocation2 + $0x118] sm:$0xff] }
 0x2de   : > { %v2568_v27 = vpop.f32.mrb[23].mxu0 }
 0x2df   : > { %v2569_v29 = vadd.f32 %v2568_v27, %v2567_v26  ;;  %v3190_v26 = vpack.c.bf16 %v1680_v17, %v1679_v16  ;;  %v1681_v27 = vld [vmem:[#allocation2 + $0xa0] sm:$0xff]  ;;  %v1690_v16 = vld [vmem:[#allocation2 + $0xe8] sm:$0xff] }
 0x2e0   : > { %v1721_v17 = vld [vmem:[#allocation2 + $0x1e0] sm:$0xff] }
 0x2e1   : > { %v1184_v30 = vadd.f32 %v2569_v29, %v1109_v28  ;;  %v2570_v32 = vpop.f32.mrb[24].mxu0  ;;  %v1682_v28 = vld [vmem:[#allocation2 + $0xa8] sm:$0xff]  ;;  %v1441_v29 = vld [vmem:[%s4401_s5 + $0x10] sm:$0x3] }
 0x2e2   : > { %v2571_v33 = vpop.f32.mrb[25].mxu0 }
 0x2e3   : > { %v2572_v34 = vadd.f32 %v2571_v33, %v2570_v32  ;;  %v1713_v32 = vld [vmem:[#allocation2 + $0x1a0] sm:$0xff]  ;;  %v1714_v33 = vld [vmem:[#allocation2 + $0x1a8] sm:$0xff] }
 0x2e5   : > { %v1189_v35 = vadd.f32 %v2572_v34, %v1114_v31  ;;  %v3222_v31 = vpack.c.bf16 %v1712_v22, %v1711_v21  ;;  %v3224_v34 = vpack.c.bf16 %v1696_v25, %v1695_v24  ;;  %v1673_v22 = vld [vmem:[#allocation2 + $0x60] sm:$0xff] }
 0x2e6   : > { %v1705_v25 = vld [vmem:[#allocation2 + $0x160] sm:$0xff] }
 0x2f5   : > { %v2605_v36 = vpop.f32.mrb[26].mxu1 }
 0x2f6   : > { %v2606_v37 = vpop.f32.mrb[27].mxu1 }
 0x2f7   : > { %v2607_v38 = vadd.f32 %v2606_v37, %v2605_v36  ;;  %v1666_v36 = vld [vmem:[#allocation2 + $0x28] sm:$0xff]  ;;  %v1697_v37 = vld [vmem:[#allocation2 + $0x120] sm:$0xff] }
 0x2f9   : > { %v1259_v39 = vadd.f32 %v2607_v38, %v1184_v30  ;;  %v2608_v40 = vpop.f32.mrb[28].mxu1  ;;  %v3192_v30 = vpack.c.bf16 %v1664_v20, %v1663_v18  ;;  %v3194_v38 = vpack.c.bf16 %v1682_v28, %v1681_v27  ;;  %v1722_v18 = vld [vmem:[#allocation2 + $0x1e8] sm:$0xff] }
 0x2fa   : > { %v2609_v41 = vpop.f32.mrb[29].mxu1  ;;  %v3242_v24 = vpack.c.bf16 %v1722_v18, %v1721_v17  ;;  %v1746_v17 = vld [vmem:[#allocation2 + $0x2a8] sm:$0xff] }
 0x2fb   : > { %v2610_v42 = vadd.f32 %v2609_v41, %v2608_v40  ;;  %v1683_v40 = vld [vmem:[#allocation2 + $0xb0] sm:$0xff]  ;;  %v1684_v41 = vld [vmem:[#allocation2 + $0xb8] sm:$0xff] }
 0x2fd   : > { %v1264_v43 = vadd.f32 %v2610_v42, %v1189_v35  ;;  %v2643_v44 = vpop.f32.mrb[26].mxu0  ;;  %v1665_v35 = vld [vmem:[#allocation2 + $0x20] sm:$0xff]  ;;  %v3226_v42 = vpack.c.bf16 %v1714_v33, %v1713_v32  ;;  %v1675_v32 = vld [vmem:[#allocation2 + $0x70] sm:$0xff]  ;;  %v1676_v33 = vld [vmem:[#allocation2 + $0x78] sm:$0xff] }
 0x2fe   : > { %v2644_v45 = vpop.f32.mrb[27].mxu0 }
 0x2ff   : > { %v2645_v46 = vadd.f32 %v2644_v45, %v2643_v44  ;;  %v1716_v44 = vld [vmem:[#allocation2 + $0x1b8] sm:$0xff]  ;;  %v3196_v45 = vpack.c.bf16 %v1666_v36, %v1665_v35  ;;  %v3216_v35 = vpack.c.bf16 %v1676_v33, %v1675_v32  ;;  %v1729_v33 = vld [vmem:[#allocation2 + $0x220] sm:$0xff] }
 0x300   : > { %v1724_v36 = vld [vmem:[#allocation2 + $0x1f8] sm:$0xff] }
 0x301   : > { %v2646_v47 = vpop.f32.mrb[28].mxu0  ;;  %v1334_v48 = vadd.f32 %v2645_v46, %v1259_v39  ;;  %v1698_v39 = vld [vmem:[#allocation2 + $0x128] sm:$0xff] }
 0x302   : > { %v2647_v50 = vpop.f32.mrb[29].mxu0  ;;  %v3228_v46 = vpack.c.bf16 %v1698_v39, %v1697_v37  ;;  %v1707_v37 = vld [vmem:[#allocation2 + $0x170] sm:$0xff] }
 0x303   : > { %v2648_v51 = vadd.f32 %v2647_v50, %v2646_v47  ;;  %v3198_v47 = vpack.c.bf16 %v1684_v41, %v1683_v40  ;;  %v1668_v50 = vld [vmem:[#allocation2 + $0x38] sm:$0xff]  ;;  %v1741_v41 = vld [vmem:[#allocation2 + $0x280] sm:$0xff] }
 0x305   : > { %v1339_v52 = vadd.f32 %v2648_v51, %v1264_v43  ;;  %v1715_v43 = vld [vmem:[#allocation2 + $0x1b0] sm:$0xff] }
 0x306   : > { %v1699_v51 = vld [vmem:[#allocation2 + $0x130] sm:$0xff] }
 0x315   : > { %v2952_v53 = vpop.f32.mrb[30].mxu1 }
 0x316   : > { %v1414_v54 = vadd.f32 %v2952_v53, %v1339_v52  ;;  %v1408_v55 = vpop.f32.mrb[31].mxu1  ;;  %v3230_v52 = vpack.c.bf16 %v1716_v44, %v1715_v43  ;;  %v1700_v53 = vld [vmem:[#allocation2 + $0x138] sm:$0xff]  ;;  %v1773_v44 = vld [vmem:[#allocation2 + $0x380] sm:$0xff] }
 0x317   : > { %v1409_v56 = vadd.f32 %v1408_v55, %v1334_v48  ;;  %v1667_v48 = vld [vmem:[#allocation2 + $0x30] sm:$0xff]  ;;  %v1686_v55 = vld [vmem:[#allocation2 + $0xc8] sm:$0xff] }
 0x318   : > { %vm1418_vm11 = vcmp.ge.f32.partialorder %v1414_v54, 0.0  ;;  %v1420_v57 = vmul.f32 0.2, %v1414_v54 }
 0x319   : > { %vm1417_vm12 = vcmp.ge.f32.partialorder %v1409_v56, 0.0  ;;  %v1419_v59 = vmul.f32 0.2, %v1409_v56 }
 0x31a   : > { %v1422_v60 = vsel %vm1418_vm11, %v1414_v54, %v1420_v57  ;;  %v1685_v54 = vld [vmem:[#allocation2 + $0xc0] sm:$0xff]  ;;  %v1718_v57 = vld [vmem:[#allocation2 + $0x1c8] sm:$0xff] }
 0x31b   : > { %v1429_v62 = vmul.f32 %v2438_v58, %v1422_v60  ;;  %v1421_v63 = vsel %vm1417_vm12, %v1409_v56, %v1419_v59  ;;  %v1717_v56 = vld [vmem:[#allocation2 + $0x1c0] sm:$0xff]  ;;  %v3232_v59 = vpack.c.bf16 %v1700_v53, %v1699_v51  ;;  %v3202_v60 = vpack.c.bf16 %v1686_v55, %v1685_v54 }
 0x31c   : > { %v1428_v4 = vmul.f32 %v2438_v58, %v1421_v63  ;;  %v3200_v58 = vpack.c.bf16 %v1668_v50, %v1667_v48  ;;  %v1701_v63 = vld [vmem:[#allocation2 + $0x140] sm:$0xff]  ;;  %v3234_v0 = vpack.c.bf16 %v1718_v57, %v1717_v56  ;;  %v1726_v50 = vld [vmem:[#allocation2 + $0x208] sm:$0xff]  ;;  %v1743_v57 = vld [vmem:[#allocation2 + $0x290] sm:$0xff] }
 0x31d   : > { %v1436_v7 = vadd.f32 %v2439_v61, %v1429_v62  ;;  %v1670_v62 = vld [vmem:[#allocation2 + $0x48] sm:$0xff]  ;;  %v1757_v51 = vld [vmem:[#allocation2 + $0x300] sm:$0xff] }
 0x31e   : > { %v1435_v10 = vadd.f32 %v2439_v61, %v1428_v4  ;;  %v1669_v61 = vld [vmem:[#allocation2 + $0x40] sm:$0xff]  ;;  %v1688_v4 = vld [vmem:[#allocation2 + $0xd8] sm:$0xff] }
 0x31f   : > { %1438 = vst [vmem:[%s4267_s15 + $0x8] sm:$0xff] %v1436_v7  ;;  %2965 = vmatpush3.msra.mxu0 %v1436_v7  ;;  %v3204_v6 = vpack.c.bf16 %v1670_v62, %v1669_v61  ;;  %v3236_v7 = vpack.c.bf16 %v1702_v2, %v1701_v63  ;;  %v1775_v63 = vld [vmem:[#allocation2 + $0x390] sm:$0xff] }
 0x320   : > { %1437 = vst [vmem:[%s4267_s15] sm:$0xff] %v1435_v10  ;;  %2954 = vmatpush3.msra.mxu1 %v1435_v10  ;;  %2967 = vmatmul.mubr.msk.f32.vlgmr.msra.gmra.mrb[30].mxu0 %vm1442_vm13, %v1439_v1  ;;  %v1703_v10 = vld [vmem:[#allocation2 + $0x150] sm:$0xff] }
 0x321   : > { %2956 = vmatmul.mubr.msk.f32.vlgmr.msra.gmra.mrb[32].mxu1 %vm1442_vm13, %v1439_v1  ;;  %2969 = vmatprep.mubr.msk.f32.mxu0 %vm3497_vm1, %v3498_v12  ;;  %v3206_v1 = vpack.c.bf16 %v1688_v4, %v1687_v3 }
 0x322   : > { %2958 = vmatprep.mubr.msk.f32.mxu1 %vm3497_vm1, %v3498_v12  ;;  %3187 = vmatprep.subr.bf16.mxu0 %v3186_v13  ;;  %v3238_v13 = vpack.c.bf16 %v1720_v49, %v1719_v5  ;;  %v1727_v5 = vld [vmem:[#allocation2 + $0x210] sm:$0xff] }
 0x323   : > { %3189 = vmatpush3.bf16.msra.mxu0 %v3188_v14  ;;  %3219 = vmatprep.subr.bf16.mxu1 %v3218_v15  ;;  %v1704_v14 = vld [vmem:[#allocation2 + $0x158] sm:$0xff]  ;;  %v1689_v15 = vld [vmem:[#allocation2 + $0xe0] sm:$0xff] }
 0x324   : > { %2970 = vmatmul.mubr.msk.f32.gmra.mrb[32].mxu0 %vm1442_vm13, %v1440_v23  ;;  %3221 = vmatpush3.bf16.msra.mxu1 %v3220_v19  ;;  %v3208_v19 = vpack.c.bf16 %v1672_v9, %v1671_v8  ;;  %v3240_v20 = vpack.c.bf16 %v1704_v14, %v1703_v10  ;;  %v3210_v21 = vpack.c.bf16 %v1690_v16, %v1689_v15  ;;  %v1728_v8 = vld [vmem:[#allocation2 + $0x218] sm:$0xff]  ;;  %v1759_v9 = vld [vmem:[#allocation2 + $0x310] sm:$0xff]  ;;  %v1745_v16 = vld [vmem:[#allocation2 + $0x2a0] sm:$0xff] }
 0x325   : > { %2959 = vmatmul.mubr.msk.f32.gmra.mrb[34].mxu1 %vm1442_vm13, %v1440_v23  ;;  %2972 = vmatprep.mubr.msk.f32.mxu0 %vm3497_vm1, %v3498_v12  ;;  %v1674_v23 = vld [vmem:[#allocation2 + $0x68] sm:$0xff]  ;;  %v1760_v10 = vld [vmem:[#allocation2 + $0x318] sm:$0xff]  ;;  %v3258_v32 = vpack.c.bf16 %v1746_v17, %v1745_v16  ;;  %v1735_v16 = vld [vmem:[#allocation2 + $0x250] sm:$0xff] }
 0x326   : > { %2961 = vmatprep.mubr.msk.f32.mxu1 %vm3497_vm1, %v3498_v12  ;;  %3191 = vmatprep.subr.bf16.mxu0 %v3190_v26  ;;  %v1706_v26 = vld [vmem:[#allocation2 + $0x168] sm:$0xff]  ;;  %v3212_v27 = vpack.c.bf16 %v1674_v23, %v1673_v22  ;;  %v1777_v22 = vld [vmem:[#allocation2 + $0x3a0] sm:$0xff]  ;;  %v1736_v17 = vld [vmem:[#allocation2 + $0x258] sm:$0xff] }
 0x327   : > { %3193 = vmatpush3.bf16.msra.mxu0 %v3192_v30  ;;  %3223 = vmatprep.subr.bf16.mxu1 %v3222_v31  ;;  %v3244_v28 = vpack.c.bf16 %v1706_v26, %v1705_v25  ;;  %v1692_v30 = vld [vmem:[#allocation2 + $0xf8] sm:$0xff]  ;;  %v1778_v23 = vld [vmem:[#allocation2 + $0x3a8] sm:$0xff] }
 0x328   : > { %2973 = vmatmul.mubr.msk.f32.gmra.mrb[34].mxu0 %vm1442_vm13, %v1441_v29  ;;  %3225 = vmatpush3.bf16.msra.mxu1 %v3224_v34  ;;  %v1723_v34 = vld [vmem:[#allocation2 + $0x1f0] sm:$0xff] }
 0x329   : > { %2962 = vmatmul.mubr.msk.f32.gmra.mrb[36].mxu1 %vm1442_vm13, %v1441_v29  ;;  %3195 = vmatprep.subr.bf16.mxu0 %v3194_v38  ;;  %v1691_v29 = vld [vmem:[#allocation2 + $0xf0] sm:$0xff]  ;;  %v1708_v38 = vld [vmem:[#allocation2 + $0x178] sm:$0xff]  ;;  %v3246_v39 = vpack.c.bf16 %v1724_v36, %v1723_v34  ;;  %v1730_v34 = vld [vmem:[#allocation2 + $0x228] sm:$0xff] }
 0x32a   : > { %3227 = vmatprep.subr.bf16.mxu1 %v3226_v42  ;;  %v3214_v31 = vpack.c.bf16 %v1692_v30, %v1691_v29  ;;  %v3248_v40 = vpack.c.bf16 %v1708_v38, %v1707_v37  ;;  %v1742_v42 = vld [vmem:[#allocation2 + $0x288] sm:$0xff]  ;;  %v3288_v29 = vpack.c.bf16 %v1760_v10, %v1759_v9  ;;  %v1783_v9 = vld [vmem:[#allocation2 + $0x3d0] sm:$0xff]  ;;  %v1784_v10 = vld [vmem:[#allocation2 + $0x3d8] sm:$0xff] }
 0x32b   : > { %3197 = vmatpush3.bf16.msra.mxu0 %v3196_v45  ;;  %v3250_v43 = vpack.c.bf16 %v1742_v42, %v1741_v41  ;;  %v1774_v45 = vld [vmem:[#allocation2 + $0x388] sm:$0xff]  ;;  %v1747_v41 = vld [vmem:[#allocation2 + $0x2b0] sm:$0xff]  ;;  %v1748_v42 = vld [vmem:[#allocation2 + $0x2b8] sm:$0xff] }
 0x32c   : > { %3229 = vmatpush3.bf16.msra.mxu1 %v3228_v46  ;;  %3199 = vmatprep.subr.bf16.mxu0 %v3198_v47  ;;  %v3282_v46 = vpack.c.bf16 %v1774_v45, %v1773_v44  ;;  %v1725_v47 = vld [vmem:[#allocation2 + $0x200] sm:$0xff] }
 0x32d   : > { %3231 = vmatprep.subr.bf16.mxu1 %v3230_v52  ;;  %v1758_v52 = vld [vmem:[#allocation2 + $0x308] sm:$0xff]  ;;  %v3252_v4 = vpack.c.bf16 %v1726_v50, %v1725_v47  ;;  %v1779_v47 = vld [vmem:[#allocation2 + $0x3b0] sm:$0xff] }
 0x32f   : > { %3201 = vmatpush3.bf16.msra.mxu0 %v3200_v58  ;;  %v1744_v58 = vld [vmem:[#allocation2 + $0x298] sm:$0xff] }
 0x330   : > { %3233 = vmatpush3.bf16.msra.mxu1 %v3232_v59  ;;  %3203 = vmatprep.subr.bf16.mxu0 %v3202_v60 }
 0x331   : > { %3235 = vmatprep.subr.bf16.mxu1 %v3234_v0  ;;  %v1776_v0 = vld [vmem:[#allocation2 + $0x398] sm:$0xff] }
 0x332   : > { %v3286_v15 = vpack.c.bf16 %v1776_v0, %v1775_v63  ;;  %v1782_v63 = vld [vmem:[#allocation2 + $0x3c8] sm:$0xff] }
 0x333   : > { %3205 = vmatpush3.bf16.msra.mxu0 %v3204_v6 }
 0x334   : > { %3237 = vmatpush3.bf16.msra.mxu1 %v3236_v7  ;;  %3207 = vmatprep.subr.bf16.mxu0 %v3206_v1  ;;  %v3284_v7 = vpack.c.bf16 %v1758_v52, %v1757_v51  ;;  %v3254_v1 = vpack.c.bf16 %v1744_v58, %v1743_v57  ;;  %v3260_v51 = vpack.c.bf16 %v1730_v34, %v1729_v33  ;;  %v1763_v57 = vld [vmem:[#allocation2 + $0x330] sm:$0xff]  ;;  %v1770_v33 = vld [vmem:[#allocation2 + $0x368] sm:$0xff] }
 0x335   : > { %3239 = vmatprep.subr.bf16.mxu1 %v3238_v13  ;;  %v1755_v34 = vld [vmem:[#allocation2 + $0x2f0] sm:$0xff] }
 0x337   : > { %3209 = vmatpush3.bf16.msra.mxu0 %v3208_v19 }
 0x338   : > { %3241 = vmatpush3.bf16.msra.mxu1 %v3240_v20  ;;  %3211 = vmatprep.subr.bf16.mxu0 %v3210_v21 }
 0x339   : > { %3243 = vmatprep.subr.bf16.mxu1 %v3242_v24 }
 0x33b   : > { %3213 = vmatpush3.bf16.msra.mxu0 %v3212_v27 }
 0x33c   : > { %3245 = vmatpush3.bf16.msra.mxu1 %v3244_v28  ;;  %3215 = vmatprep.subr.bf16.mxu0 %v3214_v31  ;;  %v3256_v28 = vpack.c.bf16 %v1728_v8, %v1727_v5  ;;  %v1734_v5 = vld [vmem:[#allocation2 + $0x248] sm:$0xff]  ;;  %v1752_v8 = vld [vmem:[#allocation2 + $0x2d8] sm:$0xff] }
 0x33d   : > { %3247 = vmatprep.subr.bf16.mxu1 %v3246_v39  ;;  %v3290_v39 = vpack.c.bf16 %v1778_v23, %v1777_v22  ;;  %v1754_v22 = vld [vmem:[#allocation2 + $0x2e8] sm:$0xff]  ;;  %v1785_v23 = vld [vmem:[#allocation2 + $0x3e0] sm:$0xff] }
 0x33f   : > { %3217 = vmatpush3.bf16.msra.mxu0 %v3216_v35  ;;  %v1761_v35 = vld [vmem:[#allocation2 + $0x320] sm:$0xff] }
 0x340   : > { %3249 = vmatpush3.bf16.msra.mxu1 %v3248_v40  ;;  %3251 = vmatprep.subr.bf16.mxu0 %v3250_v43  ;;  %v1762_v40 = vld [vmem:[#allocation2 + $0x328] sm:$0xff] }
 0x341   : > { %3283 = vmatprep.subr.bf16.mxu1 %v3282_v46 }
 0x3f3   : > { %v1612_v48 = vpop.f32.mrb[30].mxu0 }
 0x3f4   : > { %v1518_v53 = vpop.f32.mrb[32].mxu1  ;;  %v1629_v54 = vrot.slane %v1612_v48, 6  ;;  %v2447_v55 = vrot.slane %v1612_v48, 10  ;;  %v2968_v56 = vpop.f32.mrb[31].mxu0 }
 0x3f5   : > { %v1533_v59 = vrot.slane %v1518_v53, 2  ;;  %v1535_v60 = vrot.slane %v1518_v53, 4  ;;  %v1537_v61 = vrot.slane %v1518_v53, 6  ;;  %v2957_v62 = vpop.f32.mrb[33].mxu1  ;;  %v1732_v56 = vld [vmem:[#allocation2 + $0x238] sm:$0xff] }
 0x3f6   : > { %v1637_v2 = vrot.slane %v1629_v54, 6  ;;  %v1652_v3 = vsel %vm1651_vm14, %v1518_v53, %v1629_v54  ;;  %v3292_v53 = vpack.c.bf16 %v1762_v40, %v1761_v35  ;;  %v3262_v54 = vpack.c.bf16 %v1748_v42, %v1747_v41  ;;  %v1781_v62 = vld [vmem:[#allocation2 + $0x3c0] sm:$0xff]  ;;  %v1756_v35 = vld [vmem:[#allocation2 + $0x2f8] sm:$0xff]  ;;  %v1739_v42 = vld [vmem:[#allocation2 + $0x270] sm:$0xff] }
 0x3f7   : > { %v1653_v49 = vsel %vm1651_vm14, %v1533_v59, %v1612_v48  ;;  %v1654_v6 = vsel %vm1651_vm14, %v1535_v60, %v2447_v55  ;;  %v1617_v13 = vpop.f32.mrb[32].mxu0  ;;  %v1780_v48 = vld [vmem:[#allocation2 + $0x3b8] sm:$0xff]  ;;  %v1731_v55 = vld [vmem:[#allocation2 + $0x230] sm:$0xff]  ;;  %v1749_v60 = vld [vmem:[#allocation2 + $0x2c0] sm:$0xff]  ;;  %v3278_v41 = vpack.c.bf16 %v1756_v35, %v1755_v34 }
 0x3f8   : > { %1874 = vmatprep.mubr.f32.mxu0 %v1653_v49  ;;  %v1655_v14 = vsel %vm1651_vm14, %v1537_v61, %v1637_v2  ;;  %v1523_v18 = vpop.f32.mrb[34].mxu1  ;;  %v1633_v19 = vrot.slane %v1617_v13, 6  ;;  %v2449_v20 = vrot.slane %v1617_v13, 10  ;;  %v2971_v21 = vpop.f32.mrb[33].mxu0  ;;  %v3294_v58 = vpack.c.bf16 %v1780_v48, %v1779_v47  ;;  %v1764_v59 = vld [vmem:[#allocation2 + $0x338] sm:$0xff]  ;;  %v1750_v61 = vld [vmem:[#allocation2 + $0x2c8] sm:$0xff] }
 0x3f9   : > { %1875 = vmatmul.mubr.f32.vlgmr.msra.gmra.mrb[36].mxu0 %v1652_v3  ;;  %1944 = vmatprep.mubr.f32.mxu1 %v1655_v14  ;;  %v1540_v24 = vrot.slane %v1523_v18, 2  ;;  %v1542_v25 = vrot.slane %v1523_v18, 4  ;;  %v1544_v26 = vrot.slane %v1523_v18, 6  ;;  %v2960_v27 = vpop.f32.mrb[35].mxu1  ;;  %v3264_v0 = vpack.c.bf16 %v1732_v56, %v1731_v55  ;;  %v1765_v49 = vld [vmem:[#allocation2 + $0x340] sm:$0xff]  ;;  %v1792_v55 = vld [vmem:[#allocation2 + $0x418] sm:$0xff] }
 0x3fa   : > { %3253 = vmatpush3.bf16.msra.mxu0 %v3252_v4  ;;  %1945 = vmatmul.mubr.f32.vlgmr.msra.gmra.mrb[38].mxu1 %v1654_v6  ;;  %v1640_v30 = vrot.slane %v1633_v19, 6  ;;  %v4296_v31 = vsel %vm1651_vm14, %v1523_v18, %v1633_v19  ;;  %v3296_v2 = vpack.c.bf16 %v1764_v59, %v1763_v57  ;;  %v3266_v3 = vpack.c.bf16 %v1750_v61, %v1749_v60  ;;  %v1733_v4 = vld [vmem:[#allocation2 + $0x240] sm:$0xff]  ;;  %v1767_v18 = vld [vmem:[#allocation2 + $0x350] sm:$0xff]  ;;  %v1796_v61 = vld [vmem:[#allocation2 + $0x438] sm:$0xff] }
 0x3fb   : > { %3285 = vmatpush3.bf16.msra.mxu1 %v3284_v7  ;;  %3255 = vmatprep.subr.bf16.mxu0 %v3254_v1  ;;  %v1657_v36 = vsel %vm1651_vm14, %v1540_v24, %v1617_v13  ;;  %v4300_v37 = vsel %vm1651_vm14, %v1542_v25, %v2449_v20  ;;  %v1622_v38 = vpop.f32.mrb[34].mxu0  ;;  %v3298_v6 = vpack.c.bf16 %v1782_v63, %v1781_v62  ;;  %v1766_v7 = vld [vmem:[#allocation2 + $0x348] sm:$0xff]  ;;  %v1751_v1 = vld [vmem:[#allocation2 + $0x2d0] sm:$0xff]  ;;  %v1768_v20 = vld [vmem:[#allocation2 + $0x358] sm:$0xff] }
 0x3fc   : > { %3287 = vmatprep.subr.bf16.mxu1 %v3286_v15  ;;  %2014 = vmatprep.mubr.f32.mxu0 %v1657_v36  ;;  %v1659_v43 = vsel %vm1651_vm14, %v1544_v26, %v1640_v30  ;;  %v1641_v44 = vrot.slane %v1622_v38, 6  ;;  %v1528_v45 = vpop.f32.mrb[36].mxu1  ;;  %v2974_v46 = vpop.f32.mrb[35].mxu0  ;;  %v3268_v13 = vpack.c.bf16 %v1734_v5, %v1733_v4  ;;  %v3300_v14 = vpack.c.bf16 %v1766_v7, %v1765_v49  ;;  %v1753_v21 = vld [vmem:[#allocation2 + $0x2e0] sm:$0xff]  ;;  %v1786_v24 = vld [vmem:[#allocation2 + $0x3e8] sm:$0xff]  ;;  %v1787_v36 = vld [vmem:[#allocation2 + $0x3f0] sm:$0xff] }
 0x3fd   : > { %2084 = vmatprep.mubr.f32.mxu1 %v1659_v43  ;;  %v2963_v50 = vpop.f32.mrb[37].mxu1  ;;  %v3270_v15 = vpack.c.bf16 %v1752_v8, %v1751_v1  ;;  %v3302_v19 = vpack.c.bf16 %v1784_v10, %v1783_v9  ;;  %v3272_v25 = vpack.c.bf16 %v1736_v17, %v1735_v16  ;;  %v3304_v26 = vpack.c.bf16 %v1768_v20, %v1767_v18  ;;  %v1769_v30 = vld [vmem:[#allocation2 + $0x360] sm:$0xff]  ;;  %v1788_v38 = vld [vmem:[#allocation2 + $0x3f8] sm:$0xff]  ;;  %v1795_v60 = vld [vmem:[#allocation2 + $0x430] sm:$0xff] }
 0x3fe   : > { %3257 = vmatpush3.bf16.msra.mxu0 %v3256_v28  ;;  %v4304_v52 = vsel %vm1651_vm14, %v1528_v45, %v1641_v44  ;;  %v3274_v27 = vpack.c.bf16 %v1754_v22, %v1753_v21  ;;  %v1737_v28 = vld [vmem:[#allocation2 + $0x260] sm:$0xff]  ;;  %v3308_v40 = vpack.c.bf16 %v1770_v33, %v1769_v30  ;;  %v1740_v43 = vld [vmem:[#allocation2 + $0x278] sm:$0xff]  ;;  %v3310_v44 = vpack.c.bf16 %v1788_v38, %v1787_v36  ;;  %v1771_v45 = vld [vmem:[#allocation2 + $0x370] sm:$0xff] }
 0x3ff   : > { %3289 = vmatpush3.bf16.msra.mxu1 %v3288_v29  ;;  %3259 = vmatprep.subr.bf16.mxu0 %v3258_v32  ;;  %v1738_v29 = vld [vmem:[#allocation2 + $0x268] sm:$0xff]  ;;  %v3306_v32 = vpack.c.bf16 %v1786_v24, %v1785_v23  ;;  %v1772_v46 = vld [vmem:[#allocation2 + $0x378] sm:$0xff]  ;;  %v3280_v47 = vpack.c.bf16 %v1740_v43, %v1739_v42  ;;  %v1789_v50 = vld [vmem:[#allocation2 + $0x400] sm:$0xff]  ;;  %v3324_v62 = vpack.c.bf16 %v1796_v61, %v1795_v60 }
 0x400   : > { %3291 = vmatprep.subr.bf16.mxu1 %v3290_v39  ;;  %v3276_v39 = vpack.c.bf16 %v1738_v29, %v1737_v28  ;;  %v3312_v48 = vpack.c.bf16 %v1772_v46, %v1771_v45  ;;  %v1793_v57 = vld [vmem:[#allocation2 + $0x420] sm:$0xff]  ;;  %v1802_v4 = vld [vmem:[#allocation2 + $0x468] sm:$0xff]  ;;  %v1803_v49 = vld [vmem:[#allocation2 + $0x470] sm:$0xff] }
 0x401   : > { %v2450_v8 = vld [vmem:[%s4402_s6 + $0x6] ss:$0 sm:$0xff]  ;;  %v2176_v29 = vld [vmem:[%s4403_s7] sm:$0x3] }
 0x402   : > { %3261 = vmatpush3.bf16.msra.mxu0 %v3260_v51  ;;  %v1790_v51 = vld [vmem:[#allocation2 + $0x408] sm:$0xff]  ;;  %v2190_v34 = vrot.slane %v2176_v29, 6 }
 0x403   : > { %3293 = vmatpush3.bf16.msra.mxu1 %v3292_v53  ;;  %3263 = vmatprep.subr.bf16.mxu0 %v3262_v54  ;;  %v3315_v53 = vpack.c.bf16 %v1790_v51, %v1789_v50  ;;  %v1791_v54 = vld [vmem:[#allocation2 + $0x410] sm:$0xff] }
 0x404   : > { %3295 = vmatprep.subr.bf16.mxu1 %v3294_v58  ;;  %v3318_v56 = vpack.c.bf16 %v1792_v55, %v1791_v54  ;;  %v1794_v58 = vld [vmem:[#allocation2 + $0x428] sm:$0xff] }
 0x405   : > { %v3321_v59 = vpack.c.bf16 %v1794_v58, %v1793_v57 }
 0x406   : > { %3265 = vmatpush3.bf16.msra.mxu0 %v3264_v0  ;;  %v1799_v0 = vld [vmem:[#allocation2 + $0x450] sm:$0xff] }
 0x407   : > { %3297 = vmatpush3.bf16.msra.mxu1 %v3296_v2  ;;  %3267 = vmatprep.subr.bf16.mxu0 %v3266_v3  ;;  %v1800_v2 = vld [vmem:[#allocation2 + $0x458] sm:$0xff]  ;;  %v1801_v3 = vld [vmem:[#allocation2 + $0x460] sm:$0xff] }
 0x408   : > { %3299 = vmatprep.subr.bf16.mxu1 %v3298_v6  ;;  %v3333_v5 = vpack.c.bf16 %v1802_v4, %v1801_v3  ;;  %v1804_v6 = vld [vmem:[#allocation2 + $0x478] sm:$0xff] }
 0x409   : > { %v3336_v7 = vpack.c.bf16 %v1804_v6, %v1803_v49 }
 0x40a   : > { %3269 = vmatpush3.bf16.msra.mxu0 %v3268_v13 }
 0x40b   : > { %3301 = vmatpush3.bf16.msra.mxu1 %v3300_v14  ;;  %3271 = vmatprep.subr.bf16.mxu0 %v3270_v15 }
 0x40c   : > { %3303 = vmatprep.subr.bf16.mxu1 %v3302_v19 }
 0x40e   : > { %3273 = vmatpush3.bf16.msra.mxu0 %v3272_v25 }
 0x40f   : > { %3305 = vmatpush3.bf16.msra.mxu1 %v3304_v26  ;;  %3275 = vmatprep.subr.bf16.mxu0 %v3274_v27  ;;  %v2451_v27 = vld [vmem:[%s4402_s6 + $0x7] ss:$0 sm:$0xff] }
 0x410   : > { %3307 = vmatprep.subr.bf16.mxu1 %v3306_v32  ;;  %v2452_v32 = vld [vmem:[%s4402_s6 + $0x8] ss:$0 sm:$0xff] }
 0x412   : > { %3277 = vmatpush3.bf16.msra.mxu0 %v3276_v39 }
 0x413   : > { %3309 = vmatpush3.bf16.msra.mxu1 %v3308_v40  ;;  %3279 = vmatprep.subr.bf16.mxu0 %v3278_v41 }
 0x414   : > { %3311 = vmatprep.subr.bf16.mxu1 %v3310_v44 }
 0x416   : > { %3281 = vmatpush3.bf16.msra.mxu0 %v3280_v47 }
 0x417   : > { %3313 = vmatpush3.bf16.msra.mxu1 %v3312_v48  ;;  %3314 = vmatprep.subr.bf16.mxu0 %v3496_v11 }
 0x419   : > { %2015 = vmatmul.mubr.f32.vlgmr.msra.gmra.mrb[38].mxu0 %v4296_v31  ;;  %v1797_v31 = vld [vmem:[#allocation2 + $0x440] sm:$0xff] }
 0x41a   : > { %3316 = vmatpush3.bf16.msra.mxu0 %v3315_v53  ;;  %2085 = vmatmul.mubr.f32.vlgmr.msra.gmra.mrb[40].mxu1 %v4300_v37  ;;  %v1798_v37 = vld [vmem:[#allocation2 + $0x448] sm:$0xff] }
 0x41b   : > { %3317 = vmatprep.subr.bf16.mxu0 %v3496_v11  ;;  %3007 = vmatprep.mubr.msk.f32.mxu0 %vm3497_vm1, %v3498_v12  ;;  %v3327_v63 = vpack.c.bf16 %v1798_v37, %v1797_v31  ;;  %v3330_v12 = vpack.c.bf16 %v1800_v2, %v1799_v0 }
 0x41e   : > { %3319 = vmatpush3.bf16.msra.mxu0 %v3318_v56 }
 0x41f   : > { %3320 = vmatprep.subr.bf16.mxu0 %v3496_v11 }
 0x422   : > { %3322 = vmatpush3.bf16.msra.mxu0 %v3321_v59 }
 0x423   : > { %3323 = vmatprep.subr.bf16.mxu0 %v3496_v11 }
 0x426   : > { %3325 = vmatpush3.bf16.msra.mxu0 %v3324_v62 }
 0x427   : > { %3326 = vmatprep.subr.bf16.mxu0 %v3496_v11 }
 0x42a   : > { %3328 = vmatpush3.bf16.msra.mxu0 %v3327_v63 }
 0x42b   : > { %3329 = vmatprep.subr.bf16.mxu0 %v3496_v11 }
 0x42e   : > { %3331 = vmatpush3.bf16.msra.mxu0 %v3330_v12 }
 0x42f   : > { %3332 = vmatprep.subr.bf16.mxu0 %v3496_v11 }
 0x432   : > { %3334 = vmatpush3.bf16.msra.mxu0 %v3333_v5 }
 0x433   : > { %3335 = vmatprep.subr.bf16.mxu0 %v3496_v11 }
 0x436   : > { %3337 = vmatpush3.bf16.msra.mxu0 %v3336_v7 }
 0x439   : > { %3008 = vmatmul.mubr.f32.vlgmr.msra.gmra.mrb[40].mxu0 %v4304_v52 }
 0x4cc   : > { %v2707_v1 = vpop.f32.mrb[36].mxu0 }
 0x4cd   : > { %v2708_v9 = vpop.f32.mrb[37].mxu0  ;;  %v2742_v10 = vpop.f32.mrb[38].mxu1 }
 0x4ce   : > { %v2709_v13 = vadd.f32 %v2708_v9, %v2707_v1  ;;  %v2743_v14 = vpop.f32.mrb[39].mxu1 }
 0x4cf   : > { %v2744_v15 = vadd.f32 %v2743_v14, %v2742_v10 }
 0x4d0   : > { %v1877_v16 = vadd.f32 %v2709_v13, %v2450_v8 }
 0x4d2   : > { %v1947_v17 = vadd.f32 %v2744_v15, %v1877_v16 }
 0x4ec   : > { %v2777_v18 = vpop.f32.mrb[38].mxu0 }
 0x4ed   : > { %v2778_v19 = vpop.f32.mrb[39].mxu0  ;;  %v2812_v20 = vpop.f32.mrb[40].mxu1 }
 0x4ee   : > { %v2779_v11 = vadd.f32 %v2778_v19, %v2777_v18  ;;  %v2813_v21 = vpop.f32.mrb[41].mxu1 }
 0x4ef   : > { %v2814_v22 = vadd.f32 %v2813_v21, %v2812_v20 }
 0x4f0   : > { %v2017_v52 = vadd.f32 %v2779_v11, %v1947_v17 }
 0x4f2   : > { %v2087_v23 = vadd.f32 %v2814_v22, %v2017_v52 }
 0x50c   : > { %v2156_v24 = vpop.f32.mrb[40].mxu0 }
 0x50d   : > { %v2157_v25 = vadd.f32 %v2156_v24, %v2087_v23  ;;  %v3009_v26 = vpop.f32.mrb[41].mxu0 }
 0x50f   : > { %vm2160_vm15 = vcmp.ge.f32.partialorder %v2157_v25, 0.0  ;;  %v2161_v28 = vmul.f32 0.2, %v2157_v25 }
 0x511   : > { %v2162_v30 = vsel %vm2160_vm15, %v2157_v25, %v2161_v28 }
 0x512   : > { %v2168_v33 = vmul.f32 %v2451_v27, %v2162_v30 }
 0x514   : > { %v2174_v35 = vadd.f32 %v2452_v32, %v2168_v33 }
 0x516   : > { %2175 = vst [vmem:[%s428_s0] sm:$0xf] %v2174_v35  ;;  %v2192_v36 = vmul.f32 %v2190_v34, %v2174_v35  ;;  %v2177_v38 = vmul.f32 %v2176_v29, %v2174_v35  ;;  %s2460_s0 = sshll.u32 %s3583_s21, 8  ;;  %s3499_s21 = smov [#allocation5]  }
 0x517   : > { %s4342_s22 = scalar_lea.hbm %s4405_s9, %s2460_s0  ;;  %s3429_s15 = sshll.u32 %s3499_s21, 4  ;;  %s3430_s15 = int_to_ptr.vmem [resolvable:$false] %s3429_s15 }
 0x518   : > { %v2194_v39 = vrot.slane %v2192_v36, 2  ;;  %v2178_v40 = vsel %vm1651_vm14, %v2177_v38, 0.0  ;;  %s3431_s29 = scalar_lea.vmem %s3430_s15, 512  ;;  %p3432_p2 = scmp.lt.s32.totalorder %s4344_s30, %s3430_s15 }
 0x519   : > { %v2179_v41 = vrot.slane %v2178_v40, 4  ;;  %p3433_p3 = scmp.lt.s32.totalorder %s3431_s29, %s3425_s12 }
 0x51a   : > { %v2196_v42 = vsel %vm1651_vm14, %v2194_v39, 0.0 }
 0x51b   : > { %v2197_v43 = vrot.slane %v2196_v42, 4  ;;  %v2180_v44 = vadd.f32 %v2179_v41, %v2178_v40  ;;  %p3434_p4 = por %p3433_p3, %p3432_p2 }
 0x51d   : > { %v2198_v45 = vadd.f32 %v2197_v43, %v2196_v42  ;;  %v2181_v46 = vrot.slane %v2180_v44, 2  ;;  %p3435_p7 = pnand %p3434_p4, %p3428_p12 }
 0x51f   : > { %v2199_v47 = vrot.slane %v2198_v45, 2  ;;  %v2182_v50 = vadd.f32 %v2181_v46, %v2180_v44 }
 0x521   : > { %v2200_v48 = vadd.f32 %v2199_v47, %v2198_v45  ;;  %v2183_v54 = vrot.slane %v2182_v50, 1 }
 0x523   : > { %v2201_v51 = vrot.slane %v2200_v48, 1  ;;  %v2184_v55 = vadd.f32 %v2183_v54, %v2182_v50 }
 0x525   : > { %v2202_v53 = vadd.f32 %v2201_v51, %v2200_v48 }
 0x527   : > { %2203 = vadd.xlane.f32.xlu0 %v2202_v53 }
 0x52b   : > { %2185 = vadd.xlane.f32.xlu0 %v2184_v55 }
 0x52c   : > { %3438 = shalt.err (!%p3435_p7)
}
 0x52d   : > { %s3439_s25 = scalar_lea.hbm %s4342_s22, 256  ;;  %s3443_s13 = scalar_lea.hbm %s4405_s9, 512 }
 0x52e   : > { %p3440_p8 = scmp.ne.s32.totalorder %s4342_s22, %s3439_s25  ;;  %p3444_p1 = scmp.lt.u32.totalorder %s4342_s22, %s4405_s9 }
 0x52f   : > { %p3445_p0 = scmp.lt.u32.totalorder %s3443_s13, %s3439_s25  ;;  %p3447_p6 = scmp.lt.u32.totalorder %s3439_s25, %s4342_s22 }
 0x530   : > { %p3441_p11 = pnand %p3440_p8, %p4423_p9 }
 0x531   : > { %p3446_p5 = por %p3445_p0, %p3444_p1 }
 0x532   : > { %p3442_p13 = pneg %p3441_p11 }
 0x533   : > { %p3448_p10 = por %p3447_p6, %p3446_p5 }
 0x535   : > { %p3449_p12 = pnand %p3448_p10, %p3442_p13 }
 0x537   : > { %3452 = shalt.err (!%p3449_p12)
}
 0x538   : > { %s3500_s12 = smov 128   ;;  %s3501_s15 = smov 8   ;;  %v2187_v56 = vld [vmem:[%s4402_s6 + $0x9] sm:$0x1]  ;;  %vm2209_vm0 = vcmask 1040384  }
 0x539   : > { %3344 = dma.vmem_to_hbm [thread:$0]  (%p4423_p9), %s4344_s30, 256, %s4342_s22, %s4348_s16, %s3500_s12, %s3500_s12, %s3501_s15  }
 0x53a   : > { %s2407_s14 = sshll.u32 %s3647_s26, 1 }
 0x53b   : > { %s432_s24 = scalar_lea.vmem %s4407_s11, %s2407_s14 }
 0x5b4   : > { %v2204_v57 = vpop.xlane.xlu0 %2203 }
 0x5b5   : > { %v2205_v58 = vadd.f32 %v2204_v57, %v2187_v56 }
 0x5b7   : > { %v2207_v60 = vrot.slane %v2205_v58, 7 }
 0x5b8   : > { %v2186_v59 = vpop.xlane.xlu0 %2185 }
 0x5b9   : > { %v2188_v61 = vadd.f32 %v2187_v56, %v2186_v59 }
 0x5bb   : > { %v2210_v62 = vsel %vm2209_vm0, %v2188_v61, %v2207_v60 }
 0x5bc   : > { %2211 = vst [vmem:[%s432_s24] sm:$0x3] %v2210_v62 }
 0x5bd PF: > { %p3356_p9 = scmp.ge.s32.totalorder %s3491_s20, 2  ;;  %s2271_s27 = sand.u32 1, %s3479_s17  }
 0x5be   : > { %p4424_p2 = scmp.ne.s32.totalorder %s4415_s28, 0  ;;  %s2272_s30 = scalar_lea.sflag [#allocation4], %s2271_s27 }
 0x5c0   : > { %p3351_p3 = pnand %p3356_p9, %p4424_p2 }
 0x5c2   : > { %3474 = dma.done.wait (!%p3351_p3), %s2272_s30, 256  }
 0x5c3   : > { %3476 = vsyncadd (!%p3351_p3), %s2272_s30, 4294967040  ;;  %s4425_s26 = sld [smem:[#allocation8_spill]]  ;;  %p23_p4 = scmp.ge.s32.totalorder %s3587_s23, 4  }
 0x5c4   : > { %s4426_s17 = smov %s3483_s18  ;;  %s4427_s18 = smov %s3487_s19 }
 0x5c5   : > { %s4429_s20 = smov %s3587_s23  ;;  %25 = sbr.rel (!%p23_p4) target bundleno = 6 (0x6), region = 128 }
 0x5c9   : > { %s4428_s19 = smov %s4425_s26 }
 0x5cc   :  { %2291 = vsyncpa [#allocation3], 1 }
 0x5cd   :  { %2293 = vsyncpa [#allocation3 + $0x1], 1 }
 0x5ce   :  { %2294 = vsyncpa [#allocation4], 1 }
 0x5cf   :  { %2296 = vsyncpa [#allocation4 + $0x1], 1 }

</bundles_post_ra>
